<compile_context>
chip_gen: v7x
topology: tpu7x:2x2x1
jax: 0.10.0
libtpu: 0.0.40
codegen_flags: <defaults>
</compile_context>

<pallas_src>
import jax
import jax.numpy as jnp
from jax import lax
from jax.experimental import pallas as pl
from jax.experimental.pallas import tpu as pltpu
import numpy as np

# ---- model hyperparameters (small, consistent with the PyTorch module) ----
VOCAB_SIZE = 50
EMBED_DIM = 100
HIDDEN_LSTM = 64
HIDDEN_GRU = 32
NUM_CLASSES = 4
BATCH = 2
SEQ_LEN = 8

# padded (lane/sublane aligned) sizes used inside the kernel
B_PAD = 8      # sublane tile
E_PAD = 128    # lane tile
HL_PAD = 128   # per-gate lane padding for LSTM (64 -> 128)
HG_PAD = 128   # per-gate lane padding for GRU  (32 -> 128)
OUT_PAD = 128  # lane-padded FC output


def lstm_gru_kernel(x_ref,
                    w_ih_l_ref, w_hh_l_ref, b_l_ref,
                    w_ih_g_ref, w_hh_g_ref, b_ih_g_ref, b_hh_g_ref,
                    w_fc_ref, b_fc_ref,
                    out_ref):
    T, Bp, Ep = x_ref.shape

    # ---- hoisted LSTM input projection: one (T*Bp, Ep) @ (Ep, 4*HL_PAD) ----
    x_all = x_ref[...].reshape(T * Bp, Ep)
    gates_x = (jnp.dot(x_all, w_ih_l_ref[...], preferred_element_type=jnp.float32)
               + jnp.broadcast_to(b_l_ref[...], (T * Bp, 4 * HL_PAD)))

    h_l = jnp.zeros((Bp, HL_PAD), jnp.float32)
    c_l = jnp.zeros((Bp, HL_PAD), jnp.float32)
    hs = []
    # fully unrolled time loop: only h_l @ w_hh_l is on the serial chain
    for t in range(T):
        g = gates_x[t * Bp:(t + 1) * Bp, :] + jnp.dot(
            h_l, w_hh_l_ref[...], preferred_element_type=jnp.float32)
        # PyTorch LSTM gate order: i, f, g, o — each a full 128-lane slab
        i_g = jax.nn.sigmoid(g[:, 0 * HL_PAD:1 * HL_PAD])
        f_g = jax.nn.sigmoid(g[:, 1 * HL_PAD:2 * HL_PAD])
        g_g = jnp.tanh(g[:, 2 * HL_PAD:3 * HL_PAD])
        o_g = jax.nn.sigmoid(g[:, 3 * HL_PAD:4 * HL_PAD])
        c_l = f_g * c_l + i_g * g_g
        h_l = o_g * jnp.tanh(c_l)
        hs.append(h_l)

    # dropout1 (p=0.1) is identity at inference time

    # ---- hoisted GRU input projection over the whole LSTM hidden sequence ----
    h_seq = jnp.concatenate(hs, axis=0)                     # (T*Bp, HL_PAD)
    gi_all = (jnp.dot(h_seq, w_ih_g_ref[...], preferred_element_type=jnp.float32)
              + jnp.broadcast_to(b_ih_g_ref[...], (T * Bp, 3 * HG_PAD)))
    # b_hh stays inside the recurrence (PyTorch: n = tanh(W_in x + b_in +
    # r*(W_hn h + b_hn))); broadcast hoisted once.
    b_hh_g = jnp.broadcast_to(b_hh_g_ref[...], (Bp, 3 * HG_PAD))

    h_g = jnp.zeros((Bp, HG_PAD), jnp.float32)
    for t in range(T):
        gi = gi_all[t * Bp:(t + 1) * Bp, :]
        gh = jnp.dot(h_g, w_hh_g_ref[...],
                     preferred_element_type=jnp.float32) + b_hh_g
        # PyTorch GRU gate order: r, z, n — each a full 128-lane slab
        r = jax.nn.sigmoid(gi[:, 0 * HG_PAD:1 * HG_PAD] + gh[:, 0 * HG_PAD:1 * HG_PAD])
        z = jax.nn.sigmoid(gi[:, 1 * HG_PAD:2 * HG_PAD] + gh[:, 1 * HG_PAD:2 * HG_PAD])
        n = jnp.tanh(gi[:, 2 * HG_PAD:3 * HG_PAD] + r * gh[:, 2 * HG_PAD:3 * HG_PAD])
        h_g = (1.0 - z) * n + z * h_g

    # dropout2 identity; FC on the LAST timestep GRU hidden, lane-padded output
    out_ref[...] = (jnp.dot(h_g, w_fc_ref[...], preferred_element_type=jnp.float32)
                    + b_fc_ref[...])


def init_params(key):
    ks = jax.random.split(key, 11)
    s_l = 1.0 / np.sqrt(HIDDEN_LSTM)
    s_g = 1.0 / np.sqrt(HIDDEN_GRU)
    p = {
        # embedding ~ N(0,1), like nn.Embedding default
        "embedding": jax.random.normal(ks[0], (VOCAB_SIZE, EMBED_DIM), jnp.float32),
        # LSTM params (stored transposed: (in, 4H)), gate order i,f,g,o
        "w_ih_l": jax.random.uniform(ks[1], (EMBED_DIM, 4 * HIDDEN_LSTM), jnp.float32, -s_l, s_l),
        "w_hh_l": jax.random.uniform(ks[2], (HIDDEN_LSTM, 4 * HIDDEN_LSTM), jnp.float32, -s_l, s_l),
        "b_ih_l": jax.random.uniform(ks[3], (1, 4 * HIDDEN_LSTM), jnp.float32, -s_l, s_l),
        "b_hh_l": jax.random.uniform(ks[4], (1, 4 * HIDDEN_LSTM), jnp.float32, -s_l, s_l),
        # GRU params (stored transposed: (in, 3H)), gate order r,z,n
        "w_ih_g": jax.random.uniform(ks[5], (HIDDEN_LSTM, 3 * HIDDEN_GRU), jnp.float32, -s_g, s_g),
        "w_hh_g": jax.random.uniform(ks[6], (HIDDEN_GRU, 3 * HIDDEN_GRU), jnp.float32, -s_g, s_g),
        "b_ih_g": jax.random.uniform(ks[7], (1, 3 * HIDDEN_GRU), jnp.float32, -s_g, s_g),
        "b_hh_g": jax.random.uniform(ks[8], (1, 3 * HIDDEN_GRU), jnp.float32, -s_g, s_g),
        # Linear
        "w_fc": jax.random.uniform(ks[9], (HIDDEN_GRU, NUM_CLASSES), jnp.float32, -s_g, s_g),
        "b_fc": jax.random.uniform(ks[10], (1, NUM_CLASSES), jnp.float32, -s_g, s_g),
    }
    return p


def _pad_gate_weight(w, n_gates, h, h_pad, in_pad):
    """(in, n_gates*h) -> (in_pad, n_gates*h_pad), each gate zero-padded to h_pad lanes."""
    in_dim = w.shape[0]
    w = w.reshape(in_dim, n_gates, h)
    w = jnp.pad(w, ((0, in_pad - in_dim), (0, 0), (0, h_pad - h)))
    return w.reshape(in_pad, n_gates * h_pad)


def _pad_gate_bias(b, n_gates, h, h_pad):
    b = b.reshape(1, n_gates, h)
    b = jnp.pad(b, ((0, 0), (0, 0), (0, h_pad - h)))
    return b.reshape(1, n_gates * h_pad)


@jax.jit
def lstm_gru_forward(tokens, params):
    B, T = tokens.shape

    # embedding lookup (glue: gather in plain JAX), lane-pad E 100 -> 128
    emb_tab = jnp.pad(params["embedding"], ((0, 0), (0, E_PAD - EMBED_DIM)))
    emb = jnp.take(emb_tab, tokens, axis=0)           # (B, T, 128)
    x = jnp.transpose(emb, (1, 0, 2))                 # (T, B, 128) time-major
    x = jnp.pad(x, ((0, 0), (0, B_PAD - B), (0, 0)))  # sublane-pad B -> 8

    # lane-pad every gate to 128; pre-sum LSTM biases (legal: both outside
    # nonlinearity interaction).  GRU b_hh must stay separate (b_hn sits
    # inside r*(...)).
    w_ih_l = _pad_gate_weight(params["w_ih_l"], 4, HIDDEN_LSTM, HL_PAD, E_PAD)
    w_hh_l = _pad_gate_weight(params["w_hh_l"], 4, HIDDEN_LSTM, HL_PAD, HL_PAD)
    b_l = _pad_gate_bias(params["b_ih_l"] + params["b_hh_l"], 4, HIDDEN_LSTM, HL_PAD)

    w_ih_g = _pad_gate_weight(params["w_ih_g"], 3, HIDDEN_GRU, HG_PAD, HL_PAD)
    w_hh_g = _pad_gate_weight(params["w_hh_g"], 3, HIDDEN_GRU, HG_PAD, HG_PAD)
    b_ih_g = _pad_gate_bias(params["b_ih_g"], 3, HIDDEN_GRU, HG_PAD)
    b_hh_g = _pad_gate_bias(params["b_hh_g"], 3, HIDDEN_GRU, HG_PAD)

    w_fc = jnp.pad(params["w_fc"],
                   ((0, HG_PAD - HIDDEN_GRU), (0, OUT_PAD - NUM_CLASSES)))
    b_fc = jnp.pad(params["b_fc"], ((0, 0), (0, OUT_PAD - NUM_CLASSES)))

    vmem = pl.BlockSpec(memory_space=pltpu.MemorySpace.VMEM)
    out_padded = pl.pallas_call(
        lstm_gru_kernel,
        out_shape=jax.ShapeDtypeStruct((B_PAD, OUT_PAD), jnp.float32),
        in_specs=[vmem] * 10,
        out_specs=vmem,
    )(x,
      w_ih_l, w_hh_l, b_l,
      w_ih_g, w_hh_g, b_ih_g, b_hh_g,
      w_fc, b_fc)

    # slice off batch-row and lane padding
    return out_padded[:B, :NUM_CLASSES]


def reference_forward(tokens, params):
    """Pure-JAX reference replicating torch.nn.LSTM / GRU semantics."""
    HL, HG = HIDDEN_LSTM, HIDDEN_GRU
    emb = jnp.take(params["embedding"], tokens, axis=0)   # (B, T, E)
    x_tbe = jnp.transpose(emb, (1, 0, 2))                 # (T, B, E)
    B = tokens.shape[0]

    def step(carry, x_t):
        h_l, c_l, h_g = carry
        gates = (x_t @ params["w_ih_l"] + params["b_ih_l"][0]
                 + h_l @ params["w_hh_l"] + params["b_hh_l"][0])
        i = jax.nn.sigmoid(gates[:, 0 * HL:1 * HL])
        f = jax.nn.sigmoid(gates[:, 1 * HL:2 * HL])
        g = jnp.tanh(gates[:, 2 * HL:3 * HL])
        o = jax.nn.sigmoid(gates[:, 3 * HL:4 * HL])
        c_l = f * c_l + i * g
        h_l = o * jnp.tanh(c_l)
        gi = h_l @ params["w_ih_g"] + params["b_ih_g"][0]
        gh = h_g @ params["w_hh_g"] + params["b_hh_g"][0]
        r = jax.nn.sigmoid(gi[:, 0 * HG:1 * HG] + gh[:, 0 * HG:1 * HG])
        z = jax.nn.sigmoid(gi[:, 1 * HG:2 * HG] + gh[:, 1 * HG:2 * HG])
        n = jnp.tanh(gi[:, 2 * HG:3 * HG] + r * gh[:, 2 * HG:3 * HG])
        h_g = (1.0 - z) * n + z * h_g
        return (h_l, c_l, h_g), None

    init = (jnp.zeros((B, HL), jnp.float32),
            jnp.zeros((B, HL), jnp.float32),
            jnp.zeros((B, HG), jnp.float32))
    (h_l, c_l, h_g), _ = lax.scan(step, init, x_tbe)
    return h_g @ params["w_fc"] + params["b_fc"][0]


if __name__ == "__main__":
    key = jax.random.PRNGKey(0)
    k_param, k_tok = jax.random.split(key)
    params = init_params(k_param)
    tokens = jax.random.randint(k_tok, (BATCH, SEQ_LEN), 0, VOCAB_SIZE, jnp.int32)

    out = lstm_gru_forward(tokens, params)
    out = jax.block_until_ready(out)

    ref = jax.block_until_ready(reference_forward(tokens, params))
    np.testing.assert_allclose(np.asarray(out), np.asarray(ref),
                               rtol=1e-4, atol=1e-4)

    assert out.shape == (BATCH, NUM_CLASSES)
    print("KERNEL_OK")
</pallas_src>

<mosaic_0001>
module attributes {stable_mosaic.version = 11 : i64} {
  func.func @lstm_gru_kernel(%arg0: memref<8x8x128xf32, #tpu.memory_space<vmem>>, %arg1: memref<128x512xf32, #tpu.memory_space<vmem>>, %arg2: memref<128x512xf32, #tpu.memory_space<vmem>>, %arg3: memref<1x512xf32, #tpu.memory_space<vmem>>, %arg4: memref<128x384xf32, #tpu.memory_space<vmem>>, %arg5: memref<128x384xf32, #tpu.memory_space<vmem>>, %arg6: memref<1x384xf32, #tpu.memory_space<vmem>>, %arg7: memref<1x384xf32, #tpu.memory_space<vmem>>, %arg8: memref<128x128xf32, #tpu.memory_space<vmem>>, %arg9: memref<1x128xf32, #tpu.memory_space<vmem>>, %arg10: memref<8x128xf32, #tpu.memory_space<vmem>>) attributes {dimension_semantics = [], scalar_prefetch = 0 : i64, scratch_operands = 0 : i64, tpu.core_type = #tpu.core_type<tc>} {
    %c0 = arith.constant 0 : index
    %c0_0 = arith.constant 0 : index
    %c0_1 = arith.constant 0 : index
    %0 = vector.load %arg0[%c0, %c0_0, %c0_1] : memref<8x8x128xf32, #tpu.memory_space<vmem>>, vector<8x8x128xf32>
    %1 = vector.shape_cast %0 : vector<8x8x128xf32> to vector<64x128xf32>
    %c0_2 = arith.constant 0 : index
    %c0_3 = arith.constant 0 : index
    %2 = vector.load %arg1[%c0_2, %c0_3] : memref<128x512xf32, #tpu.memory_space<vmem>>, vector<128x512xf32>
    %cst = arith.constant dense<0.000000e+00> : vector<64x512xf32>
    %3 = tpu.matmul %1, %2, %cst {dimension_numbers = #tpu.dot_dimension_numbers<[1], [0], [0], [1], [0, 0, 1, 1], [], []>} : vector<64x128xf32>, vector<128x512xf32>, vector<64x512xf32> -> vector<64x512xf32>
    %c0_4 = arith.constant 0 : index
    %c0_5 = arith.constant 0 : index
    %4 = vector.load %arg3[%c0_4, %c0_5] : memref<1x512xf32, #tpu.memory_space<vmem>>, vector<1x512xf32>
    %5 = vector.shape_cast %4 : vector<1x512xf32> to vector<1x512xf32>
    %6 = vector.broadcast %5 : vector<1x512xf32> to vector<64x512xf32>
    %7 = arith.addf %3, %6 : vector<64x512xf32>
    %cst_6 = arith.constant 0.000000e+00 : f32
    %8 = vector.broadcast %cst_6 : f32 to vector<8x128xf32>
    %cst_7 = arith.constant 0.000000e+00 : f32
    %9 = vector.broadcast %cst_7 : f32 to vector<8x128xf32>
    %10 = vector.extract_strided_slice %7 {offsets = [0, 0], sizes = [8, 512], strides = [1, 1]} : vector<64x512xf32> to vector<8x512xf32>
    %c0_8 = arith.constant 0 : index
    %c0_9 = arith.constant 0 : index
    %11 = vector.load %arg2[%c0_8, %c0_9] : memref<128x512xf32, #tpu.memory_space<vmem>>, vector<128x512xf32>
    %cst_10 = arith.constant dense<0.000000e+00> : vector<8x512xf32>
    %12 = tpu.matmul %8, %11, %cst_10 {dimension_numbers = #tpu.dot_dimension_numbers<[1], [0], [0], [1], [0, 0, 1, 1], [], []>} : vector<8x128xf32>, vector<128x512xf32>, vector<8x512xf32> -> vector<8x512xf32>
    %13 = arith.addf %10, %12 : vector<8x512xf32>
    %14 = vector.extract_strided_slice %13 {offsets = [0, 0], sizes = [8, 128], strides = [1, 1]} : vector<8x512xf32> to vector<8x128xf32>
    %15 = arith.negf %14 : vector<8x128xf32>
    %16 = math.exp %15 : vector<8x128xf32>
    %cst_11 = arith.constant 1.000000e+00 : f32
    %17 = vector.broadcast %cst_11 : f32 to vector<8x128xf32>
    %18 = arith.addf %17, %16 : vector<8x128xf32>
    %19 = arith.divf %17, %18 : vector<8x128xf32>
    %20 = vector.extract_strided_slice %13 {offsets = [0, 128], sizes = [8, 128], strides = [1, 1]} : vector<8x512xf32> to vector<8x128xf32>
    %21 = arith.negf %20 : vector<8x128xf32>
    %22 = math.exp %21 : vector<8x128xf32>
    %cst_12 = arith.constant 1.000000e+00 : f32
    %23 = vector.broadcast %cst_12 : f32 to vector<8x128xf32>
    %24 = arith.addf %23, %22 : vector<8x128xf32>
    %25 = arith.divf %23, %24 : vector<8x128xf32>
    %26 = vector.extract_strided_slice %13 {offsets = [0, 256], sizes = [8, 128], strides = [1, 1]} : vector<8x512xf32> to vector<8x128xf32>
    %27 = math.tanh %26 : vector<8x128xf32>
    %28 = vector.extract_strided_slice %13 {offsets = [0, 384], sizes = [8, 128], strides = [1, 1]} : vector<8x512xf32> to vector<8x128xf32>
    %29 = arith.negf %28 : vector<8x128xf32>
    %30 = math.exp %29 : vector<8x128xf32>
    %cst_13 = arith.constant 1.000000e+00 : f32
    %31 = vector.broadcast %cst_13 : f32 to vector<8x128xf32>
    %32 = arith.addf %31, %30 : vector<8x128xf32>
    %33 = arith.divf %31, %32 : vector<8x128xf32>
    %34 = arith.mulf %25, %9 : vector<8x128xf32>
    %35 = arith.mulf %19, %27 : vector<8x128xf32>
    %36 = arith.addf %34, %35 : vector<8x128xf32>
    %37 = math.tanh %36 : vector<8x128xf32>
    %38 = arith.mulf %33, %37 : vector<8x128xf32>
    %39 = vector.extract_strided_slice %7 {offsets = [8, 0], sizes = [8, 512], strides = [1, 1]} : vector<64x512xf32> to vector<8x512xf32>
    %c0_14 = arith.constant 0 : index
    %c0_15 = arith.constant 0 : index
    %40 = vector.load %arg2[%c0_14, %c0_15] : memref<128x512xf32, #tpu.memory_space<vmem>>, vector<128x512xf32>
    %cst_16 = arith.constant dense<0.000000e+00> : vector<8x512xf32>
    %41 = tpu.matmul %38, %40, %cst_16 {dimension_numbers = #tpu.dot_dimension_numbers<[1], [0], [0], [1], [0, 0, 1, 1], [], []>} : vector<8x128xf32>, vector<128x512xf32>, vector<8x512xf32> -> vector<8x512xf32>
    %42 = arith.addf %39, %41 : vector<8x512xf32>
    %43 = vector.extract_strided_slice %42 {offsets = [0, 0], sizes = [8, 128], strides = [1, 1]} : vector<8x512xf32> to vector<8x128xf32>
    %44 = arith.negf %43 : vector<8x128xf32>
    %45 = math.exp %44 : vector<8x128xf32>
    %cst_17 = arith.constant 1.000000e+00 : f32
    %46 = vector.broadcast %cst_17 : f32 to vector<8x128xf32>
    %47 = arith.addf %46, %45 : vector<8x128xf32>
    %48 = arith.divf %46, %47 : vector<8x128xf32>
    %49 = vector.extract_strided_slice %42 {offsets = [0, 128], sizes = [8, 128], strides = [1, 1]} : vector<8x512xf32> to vector<8x128xf32>
    %50 = arith.negf %49 : vector<8x128xf32>
    %51 = math.exp %50 : vector<8x128xf32>
    %cst_18 = arith.constant 1.000000e+00 : f32
    %52 = vector.broadcast %cst_18 : f32 to vector<8x128xf32>
    %53 = arith.addf %52, %51 : vector<8x128xf32>
    %54 = arith.divf %52, %53 : vector<8x128xf32>
    %55 = vector.extract_strided_slice %42 {offsets = [0, 256], sizes = [8, 128], strides = [1, 1]} : vector<8x512xf32> to vector<8x128xf32>
    %56 = math.tanh %55 : vector<8x128xf32>
    %57 = vector.extract_strided_slice %42 {offsets = [0, 384], sizes = [8, 128], strides = [1, 1]} : vector<8x512xf32> to vector<8x128xf32>
    %58 = arith.negf %57 : vector<8x128xf32>
    %59 = math.exp %58 : vector<8x128xf32>
    %cst_19 = arith.constant 1.000000e+00 : f32
    %60 = vector.broadcast %cst_19 : f32 to vector<8x128xf32>
    %61 = arith.addf %60, %59 : vector<8x128xf32>
    %62 = arith.divf %60, %61 : vector<8x128xf32>
    %63 = arith.mulf %54, %36 : vector<8x128xf32>
    %64 = arith.mulf %48, %56 : vector<8x128xf32>
    %65 = arith.addf %63, %64 : vector<8x128xf32>
    %66 = math.tanh %65 : vector<8x128xf32>
    %67 = arith.mulf %62, %66 : vector<8x128xf32>
    %68 = vector.extract_strided_slice %7 {offsets = [16, 0], sizes = [8, 512], strides = [1, 1]} : vector<64x512xf32> to vector<8x512xf32>
    %c0_20 = arith.constant 0 : index
    %c0_21 = arith.constant 0 : index
    %69 = vector.load %arg2[%c0_20, %c0_21] : memref<128x512xf32, #tpu.memory_space<vmem>>, vector<128x512xf32>
    %cst_22 = arith.constant dense<0.000000e+00> : vector<8x512xf32>
    %70 = tpu.matmul %67, %69, %cst_22 {dimension_numbers = #tpu.dot_dimension_numbers<[1], [0], [0], [1], [0, 0, 1, 1], [], []>} : vector<8x128xf32>, vector<128x512xf32>, vector<8x512xf32> -> vector<8x512xf32>
    %71 = arith.addf %68, %70 : vector<8x512xf32>
    %72 = vector.extract_strided_slice %71 {offsets = [0, 0], sizes = [8, 128], strides = [1, 1]} : vector<8x512xf32> to vector<8x128xf32>
    %73 = arith.negf %72 : vector<8x128xf32>
    %74 = math.exp %73 : vector<8x128xf32>
    %cst_23 = arith.constant 1.000000e+00 : f32
    %75 = vector.broadcast %cst_23 : f32 to vector<8x128xf32>
    %76 = arith.addf %75, %74 : vector<8x128xf32>
    %77 = arith.divf %75, %76 : vector<8x128xf32>
    %78 = vector.extract_strided_slice %71 {offsets = [0, 128], sizes = [8, 128], strides = [1, 1]} : vector<8x512xf32> to vector<8x128xf32>
    %79 = arith.negf %78 : vector<8x128xf32>
    %80 = math.exp %79 : vector<8x128xf32>
    %cst_24 = arith.constant 1.000000e+00 : f32
    %81 = vector.broadcast %cst_24 : f32 to vector<8x128xf32>
    %82 = arith.addf %81, %80 : vector<8x128xf32>
    %83 = arith.divf %81, %82 : vector<8x128xf32>
    %84 = vector.extract_strided_slice %71 {offsets = [0, 256], sizes = [8, 128], strides = [1, 1]} : vector<8x512xf32> to vector<8x128xf32>
    %85 = math.tanh %84 : vector<8x128xf32>
    %86 = vector.extract_strided_slice %71 {offsets = [0, 384], sizes = [8, 128], strides = [1, 1]} : vector<8x512xf32> to vector<8x128xf32>
    %87 = arith.negf %86 : vector<8x128xf32>
    %88 = math.exp %87 : vector<8x128xf32>
    %cst_25 = arith.constant 1.000000e+00 : f32
    %89 = vector.broadcast %cst_25 : f32 to vector<8x128xf32>
    %90 = arith.addf %89, %88 : vector<8x128xf32>
    %91 = arith.divf %89, %90 : vector<8x128xf32>
    %92 = arith.mulf %83, %65 : vector<8x128xf32>
    %93 = arith.mulf %77, %85 : vector<8x128xf32>
    %94 = arith.addf %92, %93 : vector<8x128xf32>
    %95 = math.tanh %94 : vector<8x128xf32>
    %96 = arith.mulf %91, %95 : vector<8x128xf32>
    %97 = vector.extract_strided_slice %7 {offsets = [24, 0], sizes = [8, 512], strides = [1, 1]} : vector<64x512xf32> to vector<8x512xf32>
    %c0_26 = arith.constant 0 : index
    %c0_27 = arith.constant 0 : index
    %98 = vector.load %arg2[%c0_26, %c0_27] : memref<128x512xf32, #tpu.memory_space<vmem>>, vector<128x512xf32>
    %cst_28 = arith.constant dense<0.000000e+00> : vector<8x512xf32>
    %99 = tpu.matmul %96, %98, %cst_28 {dimension_numbers = #tpu.dot_dimension_numbers<[1], [0], [0], [1], [0, 0, 1, 1], [], []>} : vector<8x128xf32>, vector<128x512xf32>, vector<8x512xf32> -> vector<8x512xf32>
    %100 = arith.addf %97, %99 : vector<8x512xf32>
    %101 = vector.extract_strided_slice %100 {offsets = [0, 0], sizes = [8, 128], strides = [1, 1]} : vector<8x512xf32> to vector<8x128xf32>
    %102 = arith.negf %101 : vector<8x128xf32>
    %103 = math.exp %102 : vector<8x128xf32>
    %cst_29 = arith.constant 1.000000e+00 : f32
    %104 = vector.broadcast %cst_29 : f32 to vector<8x128xf32>
    %105 = arith.addf %104, %103 : vector<8x128xf32>
    %106 = arith.divf %104, %105 : vector<8x128xf32>
    %107 = vector.extract_strided_slice %100 {offsets = [0, 128], sizes = [8, 128], strides = [1, 1]} : vector<8x512xf32> to vector<8x128xf32>
    %108 = arith.negf %107 : vector<8x128xf32>
    %109 = math.exp %108 : vector<8x128xf32>
    %cst_30 = arith.constant 1.000000e+00 : f32
    %110 = vector.broadcast %cst_30 : f32 to vector<8x128xf32>
    %111 = arith.addf %110, %109 : vector<8x128xf32>
    %112 = arith.divf %110, %111 : vector<8x128xf32>
    %113 = vector.extract_strided_slice %100 {offsets = [0, 256], sizes = [8, 128], strides = [1, 1]} : vector<8x512xf32> to vector<8x128xf32>
    %114 = math.tanh %113 : vector<8x128xf32>
    %115 = vector.extract_strided_slice %100 {offsets = [0, 384], sizes = [8, 128], strides = [1, 1]} : vector<8x512xf32> to vector<8x128xf32>
    %116 = arith.negf %115 : vector<8x128xf32>
    %117 = math.exp %116 : vector<8x128xf32>
    %cst_31 = arith.constant 1.000000e+00 : f32
    %118 = vector.broadcast %cst_31 : f32 to vector<8x128xf32>
    %119 = arith.addf %118, %117 : vector<8x128xf32>
    %120 = arith.divf %118, %119 : vector<8x128xf32>
    %121 = arith.mulf %112, %94 : vector<8x128xf32>
    %122 = arith.mulf %106, %114 : vector<8x128xf32>
    %123 = arith.addf %121, %122 : vector<8x128xf32>
    %124 = math.tanh %123 : vector<8x128xf32>
    %125 = arith.mulf %120, %124 : vector<8x128xf32>
    %126 = vector.extract_strided_slice %7 {offsets = [32, 0], sizes = [8, 512], strides = [1, 1]} : vector<64x512xf32> to vector<8x512xf32>
    %c0_32 = arith.constant 0 : index
    %c0_33 = arith.constant 0 : index
    %127 = vector.load %arg2[%c0_32, %c0_33] : memref<128x512xf32, #tpu.memory_space<vmem>>, vector<128x512xf32>
    %cst_34 = arith.constant dense<0.000000e+00> : vector<8x512xf32>
    %128 = tpu.matmul %125, %127, %cst_34 {dimension_numbers = #tpu.dot_dimension_numbers<[1], [0], [0], [1], [0, 0, 1, 1], [], []>} : vector<8x128xf32>, vector<128x512xf32>, vector<8x512xf32> -> vector<8x512xf32>
    %129 = arith.addf %126, %128 : vector<8x512xf32>
    %130 = vector.extract_strided_slice %129 {offsets = [0, 0], sizes = [8, 128], strides = [1, 1]} : vector<8x512xf32> to vector<8x128xf32>
    %131 = arith.negf %130 : vector<8x128xf32>
    %132 = math.exp %131 : vector<8x128xf32>
    %cst_35 = arith.constant 1.000000e+00 : f32
    %133 = vector.broadcast %cst_35 : f32 to vector<8x128xf32>
    %134 = arith.addf %133, %132 : vector<8x128xf32>
    %135 = arith.divf %133, %134 : vector<8x128xf32>
    %136 = vector.extract_strided_slice %129 {offsets = [0, 128], sizes = [8, 128], strides = [1, 1]} : vector<8x512xf32> to vector<8x128xf32>
    %137 = arith.negf %136 : vector<8x128xf32>
    %138 = math.exp %137 : vector<8x128xf32>
    %cst_36 = arith.constant 1.000000e+00 : f32
    %139 = vector.broadcast %cst_36 : f32 to vector<8x128xf32>
    %140 = arith.addf %139, %138 : vector<8x128xf32>
    %141 = arith.divf %139, %140 : vector<8x128xf32>
    %142 = vector.extract_strided_slice %129 {offsets = [0, 256], sizes = [8, 128], strides = [1, 1]} : vector<8x512xf32> to vector<8x128xf32>
    %143 = math.tanh %142 : vector<8x128xf32>
    %144 = vector.extract_strided_slice %129 {offsets = [0, 384], sizes = [8, 128], strides = [1, 1]} : vector<8x512xf32> to vector<8x128xf32>
    %145 = arith.negf %144 : vector<8x128xf32>
    %146 = math.exp %145 : vector<8x128xf32>
    %cst_37 = arith.constant 1.000000e+00 : f32
    %147 = vector.broadcast %cst_37 : f32 to vector<8x128xf32>
    %148 = arith.addf %147, %146 : vector<8x128xf32>
    %149 = arith.divf %147, %148 : vector<8x128xf32>
    %150 = arith.mulf %141, %123 : vector<8x128xf32>
    %151 = arith.mulf %135, %143 : vector<8x128xf32>
    %152 = arith.addf %150, %151 : vector<8x128xf32>
    %153 = math.tanh %152 : vector<8x128xf32>
    %154 = arith.mulf %149, %153 : vector<8x128xf32>
    %155 = vector.extract_strided_slice %7 {offsets = [40, 0], sizes = [8, 512], strides = [1, 1]} : vector<64x512xf32> to vector<8x512xf32>
    %c0_38 = arith.constant 0 : index
    %c0_39 = arith.constant 0 : index
    %156 = vector.load %arg2[%c0_38, %c0_39] : memref<128x512xf32, #tpu.memory_space<vmem>>, vector<128x512xf32>
    %cst_40 = arith.constant dense<0.000000e+00> : vector<8x512xf32>
    %157 = tpu.matmul %154, %156, %cst_40 {dimension_numbers = #tpu.dot_dimension_numbers<[1], [0], [0], [1], [0, 0, 1, 1], [], []>} : vector<8x128xf32>, vector<128x512xf32>, vector<8x512xf32> -> vector<8x512xf32>
    %158 = arith.addf %155, %157 : vector<8x512xf32>
    %159 = vector.extract_strided_slice %158 {offsets = [0, 0], sizes = [8, 128], strides = [1, 1]} : vector<8x512xf32> to vector<8x128xf32>
    %160 = arith.negf %159 : vector<8x128xf32>
    %161 = math.exp %160 : vector<8x128xf32>
    %cst_41 = arith.constant 1.000000e+00 : f32
    %162 = vector.broadcast %cst_41 : f32 to vector<8x128xf32>
    %163 = arith.addf %162, %161 : vector<8x128xf32>
    %164 = arith.divf %162, %163 : vector<8x128xf32>
    %165 = vector.extract_strided_slice %158 {offsets = [0, 128], sizes = [8, 128], strides = [1, 1]} : vector<8x512xf32> to vector<8x128xf32>
    %166 = arith.negf %165 : vector<8x128xf32>
    %167 = math.exp %166 : vector<8x128xf32>
    %cst_42 = arith.constant 1.000000e+00 : f32
    %168 = vector.broadcast %cst_42 : f32 to vector<8x128xf32>
    %169 = arith.addf %168, %167 : vector<8x128xf32>
    %170 = arith.divf %168, %169 : vector<8x128xf32>
    %171 = vector.extract_strided_slice %158 {offsets = [0, 256], sizes = [8, 128], strides = [1, 1]} : vector<8x512xf32> to vector<8x128xf32>
    %172 = math.tanh %171 : vector<8x128xf32>
    %173 = vector.extract_strided_slice %158 {offsets = [0, 384], sizes = [8, 128], strides = [1, 1]} : vector<8x512xf32> to vector<8x128xf32>
    %174 = arith.negf %173 : vector<8x128xf32>
    %175 = math.exp %174 : vector<8x128xf32>
    %cst_43 = arith.constant 1.000000e+00 : f32
    %176 = vector.broadcast %cst_43 : f32 to vector<8x128xf32>
    %177 = arith.addf %176, %175 : vector<8x128xf32>
    %178 = arith.divf %176, %177 : vector<8x128xf32>
    %179 = arith.mulf %170, %152 : vector<8x128xf32>
    %180 = arith.mulf %164, %172 : vector<8x128xf32>
    %181 = arith.addf %179, %180 : vector<8x128xf32>
    %182 = math.tanh %181 : vector<8x128xf32>
    %183 = arith.mulf %178, %182 : vector<8x128xf32>
    %184 = vector.extract_strided_slice %7 {offsets = [48, 0], sizes = [8, 512], strides = [1, 1]} : vector<64x512xf32> to vector<8x512xf32>
    %c0_44 = arith.constant 0 : index
    %c0_45 = arith.constant 0 : index
    %185 = vector.load %arg2[%c0_44, %c0_45] : memref<128x512xf32, #tpu.memory_space<vmem>>, vector<128x512xf32>
    %cst_46 = arith.constant dense<0.000000e+00> : vector<8x512xf32>
    %186 = tpu.matmul %183, %185, %cst_46 {dimension_numbers = #tpu.dot_dimension_numbers<[1], [0], [0], [1], [0, 0, 1, 1], [], []>} : vector<8x128xf32>, vector<128x512xf32>, vector<8x512xf32> -> vector<8x512xf32>
    %187 = arith.addf %184, %186 : vector<8x512xf32>
    %188 = vector.extract_strided_slice %187 {offsets = [0, 0], sizes = [8, 128], strides = [1, 1]} : vector<8x512xf32> to vector<8x128xf32>
    %189 = arith.negf %188 : vector<8x128xf32>
    %190 = math.exp %189 : vector<8x128xf32>
    %cst_47 = arith.constant 1.000000e+00 : f32
    %191 = vector.broadcast %cst_47 : f32 to vector<8x128xf32>
    %192 = arith.addf %191, %190 : vector<8x128xf32>
    %193 = arith.divf %191, %192 : vector<8x128xf32>
    %194 = vector.extract_strided_slice %187 {offsets = [0, 128], sizes = [8, 128], strides = [1, 1]} : vector<8x512xf32> to vector<8x128xf32>
    %195 = arith.negf %194 : vector<8x128xf32>
    %196 = math.exp %195 : vector<8x128xf32>
    %cst_48 = arith.constant 1.000000e+00 : f32
    %197 = vector.broadcast %cst_48 : f32 to vector<8x128xf32>
    %198 = arith.addf %197, %196 : vector<8x128xf32>
    %199 = arith.divf %197, %198 : vector<8x128xf32>
    %200 = vector.extract_strided_slice %187 {offsets = [0, 256], sizes = [8, 128], strides = [1, 1]} : vector<8x512xf32> to vector<8x128xf32>
    %201 = math.tanh %200 : vector<8x128xf32>
    %202 = vector.extract_strided_slice %187 {offsets = [0, 384], sizes = [8, 128], strides = [1, 1]} : vector<8x512xf32> to vector<8x128xf32>
    %203 = arith.negf %202 : vector<8x128xf32>
    %204 = math.exp %203 : vector<8x128xf32>
    %cst_49 = arith.constant 1.000000e+00 : f32
    %205 = vector.broadcast %cst_49 : f32 to vector<8x128xf32>
    %206 = arith.addf %205, %204 : vector<8x128xf32>
    %207 = arith.divf %205, %206 : vector<8x128xf32>
    %208 = arith.mulf %199, %181 : vector<8x128xf32>
    %209 = arith.mulf %193, %201 : vector<8x128xf32>
    %210 = arith.addf %208, %209 : vector<8x128xf32>
    %211 = math.tanh %210 : vector<8x128xf32>
    %212 = arith.mulf %207, %211 : vector<8x128xf32>
    %213 = vector.extract_strided_slice %7 {offsets = [56, 0], sizes = [8, 512], strides = [1, 1]} : vector<64x512xf32> to vector<8x512xf32>
    %c0_50 = arith.constant 0 : index
    %c0_51 = arith.constant 0 : index
    %214 = vector.load %arg2[%c0_50, %c0_51] : memref<128x512xf32, #tpu.memory_space<vmem>>, vector<128x512xf32>
    %cst_52 = arith.constant dense<0.000000e+00> : vector<8x512xf32>
    %215 = tpu.matmul %212, %214, %cst_52 {dimension_numbers = #tpu.dot_dimension_numbers<[1], [0], [0], [1], [0, 0, 1, 1], [], []>} : vector<8x128xf32>, vector<128x512xf32>, vector<8x512xf32> -> vector<8x512xf32>
    %216 = arith.addf %213, %215 : vector<8x512xf32>
    %217 = vector.extract_strided_slice %216 {offsets = [0, 0], sizes = [8, 128], strides = [1, 1]} : vector<8x512xf32> to vector<8x128xf32>
    %218 = arith.negf %217 : vector<8x128xf32>
    %219 = math.exp %218 : vector<8x128xf32>
    %cst_53 = arith.constant 1.000000e+00 : f32
    %220 = vector.broadcast %cst_53 : f32 to vector<8x128xf32>
    %221 = arith.addf %220, %219 : vector<8x128xf32>
    %222 = arith.divf %220, %221 : vector<8x128xf32>
    %223 = vector.extract_strided_slice %216 {offsets = [0, 128], sizes = [8, 128], strides = [1, 1]} : vector<8x512xf32> to vector<8x128xf32>
    %224 = arith.negf %223 : vector<8x128xf32>
    %225 = math.exp %224 : vector<8x128xf32>
    %cst_54 = arith.constant 1.000000e+00 : f32
    %226 = vector.broadcast %cst_54 : f32 to vector<8x128xf32>
    %227 = arith.addf %226, %225 : vector<8x128xf32>
    %228 = arith.divf %226, %227 : vector<8x128xf32>
    %229 = vector.extract_strided_slice %216 {offsets = [0, 256], sizes = [8, 128], strides = [1, 1]} : vector<8x512xf32> to vector<8x128xf32>
    %230 = math.tanh %229 : vector<8x128xf32>
    %231 = vector.extract_strided_slice %216 {offsets = [0, 384], sizes = [8, 128], strides = [1, 1]} : vector<8x512xf32> to vector<8x128xf32>
    %232 = arith.negf %231 : vector<8x128xf32>
    %233 = math.exp %232 : vector<8x128xf32>
    %cst_55 = arith.constant 1.000000e+00 : f32
    %234 = vector.broadcast %cst_55 : f32 to vector<8x128xf32>
    %235 = arith.addf %234, %233 : vector<8x128xf32>
    %236 = arith.divf %234, %235 : vector<8x128xf32>
    %237 = arith.mulf %228, %210 : vector<8x128xf32>
    %238 = arith.mulf %222, %230 : vector<8x128xf32>
    %239 = arith.addf %237, %238 : vector<8x128xf32>
    %240 = math.tanh %239 : vector<8x128xf32>
    %241 = arith.mulf %236, %240 : vector<8x128xf32>
    %242 = tpu.concatenate %38, %67, %96, %125, %154, %183, %212, %241 in 0 : vector<8x128xf32>, vector<8x128xf32>, vector<8x128xf32>, vector<8x128xf32>, vector<8x128xf32>, vector<8x128xf32>, vector<8x128xf32>, vector<8x128xf32> -> vector<64x128xf32>
    %c0_56 = arith.constant 0 : index
    %c0_57 = arith.constant 0 : index
    %243 = vector.load %arg4[%c0_56, %c0_57] : memref<128x384xf32, #tpu.memory_space<vmem>>, vector<128x384xf32>
    %cst_58 = arith.constant dense<0.000000e+00> : vector<64x384xf32>
    %244 = tpu.matmul %242, %243, %cst_58 {dimension_numbers = #tpu.dot_dimension_numbers<[1], [0], [0], [1], [0, 0, 1, 1], [], []>} : vector<64x128xf32>, vector<128x384xf32>, vector<64x384xf32> -> vector<64x384xf32>
    %c0_59 = arith.constant 0 : index
    %c0_60 = arith.constant 0 : index
    %245 = vector.load %arg6[%c0_59, %c0_60] : memref<1x384xf32, #tpu.memory_space<vmem>>, vector<1x384xf32>
    %246 = vector.shape_cast %245 : vector<1x384xf32> to vector<1x384xf32>
    %247 = vector.broadcast %246 : vector<1x384xf32> to vector<64x384xf32>
    %248 = arith.addf %244, %247 : vector<64x384xf32>
    %c0_61 = arith.constant 0 : index
    %c0_62 = arith.constant 0 : index
    %249 = vector.load %arg7[%c0_61, %c0_62] : memref<1x384xf32, #tpu.memory_space<vmem>>, vector<1x384xf32>
    %250 = vector.shape_cast %249 : vector<1x384xf32> to vector<1x384xf32>
    %251 = vector.broadcast %250 : vector<1x384xf32> to vector<8x384xf32>
    %cst_63 = arith.constant 0.000000e+00 : f32
    %252 = vector.broadcast %cst_63 : f32 to vector<8x128xf32>
    %253 = vector.extract_strided_slice %248 {offsets = [0, 0], sizes = [8, 384], strides = [1, 1]} : vector<64x384xf32> to vector<8x384xf32>
    %c0_64 = arith.constant 0 : index
    %c0_65 = arith.constant 0 : index
    %254 = vector.load %arg5[%c0_64, %c0_65] : memref<128x384xf32, #tpu.memory_space<vmem>>, vector<128x384xf32>
    %cst_66 = arith.constant dense<0.000000e+00> : vector<8x384xf32>
    %255 = tpu.matmul %252, %254, %cst_66 {dimension_numbers = #tpu.dot_dimension_numbers<[1], [0], [0], [1], [0, 0, 1, 1], [], []>} : vector<8x128xf32>, vector<128x384xf32>, vector<8x384xf32> -> vector<8x384xf32>
    %256 = arith.addf %255, %251 : vector<8x384xf32>
    %257 = vector.extract_strided_slice %253 {offsets = [0, 0], sizes = [8, 128], strides = [1, 1]} : vector<8x384xf32> to vector<8x128xf32>
    %258 = vector.extract_strided_slice %256 {offsets = [0, 0], sizes = [8, 128], strides = [1, 1]} : vector<8x384xf32> to vector<8x128xf32>
    %259 = arith.addf %257, %258 : vector<8x128xf32>
    %260 = arith.negf %259 : vector<8x128xf32>
    %261 = math.exp %260 : vector<8x128xf32>
    %cst_67 = arith.constant 1.000000e+00 : f32
    %262 = vector.broadcast %cst_67 : f32 to vector<8x128xf32>
    %263 = arith.addf %262, %261 : vector<8x128xf32>
    %264 = arith.divf %262, %263 : vector<8x128xf32>
    %265 = vector.extract_strided_slice %253 {offsets = [0, 128], sizes = [8, 128], strides = [1, 1]} : vector<8x384xf32> to vector<8x128xf32>
    %266 = vector.extract_strided_slice %256 {offsets = [0, 128], sizes = [8, 128], strides = [1, 1]} : vector<8x384xf32> to vector<8x128xf32>
    %267 = arith.addf %265, %266 : vector<8x128xf32>
    %268 = arith.negf %267 : vector<8x128xf32>
    %269 = math.exp %268 : vector<8x128xf32>
    %cst_68 = arith.constant 1.000000e+00 : f32
    %270 = vector.broadcast %cst_68 : f32 to vector<8x128xf32>
    %271 = arith.addf %270, %269 : vector<8x128xf32>
    %272 = arith.divf %270, %271 : vector<8x128xf32>
    %273 = vector.extract_strided_slice %253 {offsets = [0, 256], sizes = [8, 128], strides = [1, 1]} : vector<8x384xf32> to vector<8x128xf32>
    %274 = vector.extract_strided_slice %256 {offsets = [0, 256], sizes = [8, 128], strides = [1, 1]} : vector<8x384xf32> to vector<8x128xf32>
    %275 = arith.mulf %264, %274 : vector<8x128xf32>
    %276 = arith.addf %273, %275 : vector<8x128xf32>
    %277 = math.tanh %276 : vector<8x128xf32>
    %cst_69 = arith.constant 1.000000e+00 : f32
    %278 = vector.broadcast %cst_69 : f32 to vector<8x128xf32>
    %279 = arith.subf %278, %272 : vector<8x128xf32>
    %280 = arith.mulf %279, %277 : vector<8x128xf32>
    %281 = arith.mulf %272, %252 : vector<8x128xf32>
    %282 = arith.addf %280, %281 : vector<8x128xf32>
    %283 = vector.extract_strided_slice %248 {offsets = [8, 0], sizes = [8, 384], strides = [1, 1]} : vector<64x384xf32> to vector<8x384xf32>
    %c0_70 = arith.constant 0 : index
    %c0_71 = arith.constant 0 : index
    %284 = vector.load %arg5[%c0_70, %c0_71] : memref<128x384xf32, #tpu.memory_space<vmem>>, vector<128x384xf32>
    %cst_72 = arith.constant dense<0.000000e+00> : vector<8x384xf32>
    %285 = tpu.matmul %282, %284, %cst_72 {dimension_numbers = #tpu.dot_dimension_numbers<[1], [0], [0], [1], [0, 0, 1, 1], [], []>} : vector<8x128xf32>, vector<128x384xf32>, vector<8x384xf32> -> vector<8x384xf32>
    %286 = arith.addf %285, %251 : vector<8x384xf32>
    %287 = vector.extract_strided_slice %283 {offsets = [0, 0], sizes = [8, 128], strides = [1, 1]} : vector<8x384xf32> to vector<8x128xf32>
    %288 = vector.extract_strided_slice %286 {offsets = [0, 0], sizes = [8, 128], strides = [1, 1]} : vector<8x384xf32> to vector<8x128xf32>
    %289 = arith.addf %287, %288 : vector<8x128xf32>
    %290 = arith.negf %289 : vector<8x128xf32>
    %291 = math.exp %290 : vector<8x128xf32>
    %cst_73 = arith.constant 1.000000e+00 : f32
    %292 = vector.broadcast %cst_73 : f32 to vector<8x128xf32>
    %293 = arith.addf %292, %291 : vector<8x128xf32>
    %294 = arith.divf %292, %293 : vector<8x128xf32>
    %295 = vector.extract_strided_slice %283 {offsets = [0, 128], sizes = [8, 128], strides = [1, 1]} : vector<8x384xf32> to vector<8x128xf32>
    %296 = vector.extract_strided_slice %286 {offsets = [0, 128], sizes = [8, 128], strides = [1, 1]} : vector<8x384xf32> to vector<8x128xf32>
    %297 = arith.addf %295, %296 : vector<8x128xf32>
    %298 = arith.negf %297 : vector<8x128xf32>
    %299 = math.exp %298 : vector<8x128xf32>
    %cst_74 = arith.constant 1.000000e+00 : f32
    %300 = vector.broadcast %cst_74 : f32 to vector<8x128xf32>
    %301 = arith.addf %300, %299 : vector<8x128xf32>
    %302 = arith.divf %300, %301 : vector<8x128xf32>
    %303 = vector.extract_strided_slice %283 {offsets = [0, 256], sizes = [8, 128], strides = [1, 1]} : vector<8x384xf32> to vector<8x128xf32>
    %304 = vector.extract_strided_slice %286 {offsets = [0, 256], sizes = [8, 128], strides = [1, 1]} : vector<8x384xf32> to vector<8x128xf32>
    %305 = arith.mulf %294, %304 : vector<8x128xf32>
    %306 = arith.addf %303, %305 : vector<8x128xf32>
    %307 = math.tanh %306 : vector<8x128xf32>
    %cst_75 = arith.constant 1.000000e+00 : f32
    %308 = vector.broadcast %cst_75 : f32 to vector<8x128xf32>
    %309 = arith.subf %308, %302 : vector<8x128xf32>
    %310 = arith.mulf %309, %307 : vector<8x128xf32>
    %311 = arith.mulf %302, %282 : vector<8x128xf32>
    %312 = arith.addf %310, %311 : vector<8x128xf32>
    %313 = vector.extract_strided_slice %248 {offsets = [16, 0], sizes = [8, 384], strides = [1, 1]} : vector<64x384xf32> to vector<8x384xf32>
    %c0_76 = arith.constant 0 : index
    %c0_77 = arith.constant 0 : index
    %314 = vector.load %arg5[%c0_76, %c0_77] : memref<128x384xf32, #tpu.memory_space<vmem>>, vector<128x384xf32>
    %cst_78 = arith.constant dense<0.000000e+00> : vector<8x384xf32>
    %315 = tpu.matmul %312, %314, %cst_78 {dimension_numbers = #tpu.dot_dimension_numbers<[1], [0], [0], [1], [0, 0, 1, 1], [], []>} : vector<8x128xf32>, vector<128x384xf32>, vector<8x384xf32> -> vector<8x384xf32>
    %316 = arith.addf %315, %251 : vector<8x384xf32>
    %317 = vector.extract_strided_slice %313 {offsets = [0, 0], sizes = [8, 128], strides = [1, 1]} : vector<8x384xf32> to vector<8x128xf32>
    %318 = vector.extract_strided_slice %316 {offsets = [0, 0], sizes = [8, 128], strides = [1, 1]} : vector<8x384xf32> to vector<8x128xf32>
    %319 = arith.addf %317, %318 : vector<8x128xf32>
    %320 = arith.negf %319 : vector<8x128xf32>
    %321 = math.exp %320 : vector<8x128xf32>
    %cst_79 = arith.constant 1.000000e+00 : f32
    %322 = vector.broadcast %cst_79 : f32 to vector<8x128xf32>
    %323 = arith.addf %322, %321 : vector<8x128xf32>
    %324 = arith.divf %322, %323 : vector<8x128xf32>
    %325 = vector.extract_strided_slice %313 {offsets = [0, 128], sizes = [8, 128], strides = [1, 1]} : vector<8x384xf32> to vector<8x128xf32>
    %326 = vector.extract_strided_slice %316 {offsets = [0, 128], sizes = [8, 128], strides = [1, 1]} : vector<8x384xf32> to vector<8x128xf32>
    %327 = arith.addf %325, %326 : vector<8x128xf32>
    %328 = arith.negf %327 : vector<8x128xf32>
    %329 = math.exp %328 : vector<8x128xf32>
    %cst_80 = arith.constant 1.000000e+00 : f32
    %330 = vector.broadcast %cst_80 : f32 to vector<8x128xf32>
    %331 = arith.addf %330, %329 : vector<8x128xf32>
    %332 = arith.divf %330, %331 : vector<8x128xf32>
    %333 = vector.extract_strided_slice %313 {offsets = [0, 256], sizes = [8, 128], strides = [1, 1]} : vector<8x384xf32> to vector<8x128xf32>
    %334 = vector.extract_strided_slice %316 {offsets = [0, 256], sizes = [8, 128], strides = [1, 1]} : vector<8x384xf32> to vector<8x128xf32>
    %335 = arith.mulf %324, %334 : vector<8x128xf32>
    %336 = arith.addf %333, %335 : vector<8x128xf32>
    %337 = math.tanh %336 : vector<8x128xf32>
    %cst_81 = arith.constant 1.000000e+00 : f32
    %338 = vector.broadcast %cst_81 : f32 to vector<8x128xf32>
    %339 = arith.subf %338, %332 : vector<8x128xf32>
    %340 = arith.mulf %339, %337 : vector<8x128xf32>
    %341 = arith.mulf %332, %312 : vector<8x128xf32>
    %342 = arith.addf %340, %341 : vector<8x128xf32>
    %343 = vector.extract_strided_slice %248 {offsets = [24, 0], sizes = [8, 384], strides = [1, 1]} : vector<64x384xf32> to vector<8x384xf32>
    %c0_82 = arith.constant 0 : index
    %c0_83 = arith.constant 0 : index
    %344 = vector.load %arg5[%c0_82, %c0_83] : memref<128x384xf32, #tpu.memory_space<vmem>>, vector<128x384xf32>
    %cst_84 = arith.constant dense<0.000000e+00> : vector<8x384xf32>
    %345 = tpu.matmul %342, %344, %cst_84 {dimension_numbers = #tpu.dot_dimension_numbers<[1], [0], [0], [1], [0, 0, 1, 1], [], []>} : vector<8x128xf32>, vector<128x384xf32>, vector<8x384xf32> -> vector<8x384xf32>
    %346 = arith.addf %345, %251 : vector<8x384xf32>
    %347 = vector.extract_strided_slice %343 {offsets = [0, 0], sizes = [8, 128], strides = [1, 1]} : vector<8x384xf32> to vector<8x128xf32>
    %348 = vector.extract_strided_slice %346 {offsets = [0, 0], sizes = [8, 128], strides = [1, 1]} : vector<8x384xf32> to vector<8x128xf32>
    %349 = arith.addf %347, %348 : vector<8x128xf32>
    %350 = arith.negf %349 : vector<8x128xf32>
    %351 = math.exp %350 : vector<8x128xf32>
    %cst_85 = arith.constant 1.000000e+00 : f32
    %352 = vector.broadcast %cst_85 : f32 to vector<8x128xf32>
    %353 = arith.addf %352, %351 : vector<8x128xf32>
    %354 = arith.divf %352, %353 : vector<8x128xf32>
    %355 = vector.extract_strided_slice %343 {offsets = [0, 128], sizes = [8, 128], strides = [1, 1]} : vector<8x384xf32> to vector<8x128xf32>
    %356 = vector.extract_strided_slice %346 {offsets = [0, 128], sizes = [8, 128], strides = [1, 1]} : vector<8x384xf32> to vector<8x128xf32>
    %357 = arith.addf %355, %356 : vector<8x128xf32>
    %358 = arith.negf %357 : vector<8x128xf32>
    %359 = math.exp %358 : vector<8x128xf32>
    %cst_86 = arith.constant 1.000000e+00 : f32
    %360 = vector.broadcast %cst_86 : f32 to vector<8x128xf32>
    %361 = arith.addf %360, %359 : vector<8x128xf32>
    %362 = arith.divf %360, %361 : vector<8x128xf32>
    %363 = vector.extract_strided_slice %343 {offsets = [0, 256], sizes = [8, 128], strides = [1, 1]} : vector<8x384xf32> to vector<8x128xf32>
    %364 = vector.extract_strided_slice %346 {offsets = [0, 256], sizes = [8, 128], strides = [1, 1]} : vector<8x384xf32> to vector<8x128xf32>
    %365 = arith.mulf %354, %364 : vector<8x128xf32>
    %366 = arith.addf %363, %365 : vector<8x128xf32>
    %367 = math.tanh %366 : vector<8x128xf32>
    %cst_87 = arith.constant 1.000000e+00 : f32
    %368 = vector.broadcast %cst_87 : f32 to vector<8x128xf32>
    %369 = arith.subf %368, %362 : vector<8x128xf32>
    %370 = arith.mulf %369, %367 : vector<8x128xf32>
    %371 = arith.mulf %362, %342 : vector<8x128xf32>
    %372 = arith.addf %370, %371 : vector<8x128xf32>
    %373 = vector.extract_strided_slice %248 {offsets = [32, 0], sizes = [8, 384], strides = [1, 1]} : vector<64x384xf32> to vector<8x384xf32>
    %c0_88 = arith.constant 0 : index
    %c0_89 = arith.constant 0 : index
    %374 = vector.load %arg5[%c0_88, %c0_89] : memref<128x384xf32, #tpu.memory_space<vmem>>, vector<128x384xf32>
    %cst_90 = arith.constant dense<0.000000e+00> : vector<8x384xf32>
    %375 = tpu.matmul %372, %374, %cst_90 {dimension_numbers = #tpu.dot_dimension_numbers<[1], [0], [0], [1], [0, 0, 1, 1], [], []>} : vector<8x128xf32>, vector<128x384xf32>, vector<8x384xf32> -> vector<8x384xf32>
    %376 = arith.addf %375, %251 : vector<8x384xf32>
    %377 = vector.extract_strided_slice %373 {offsets = [0, 0], sizes = [8, 128], strides = [1, 1]} : vector<8x384xf32> to vector<8x128xf32>
    %378 = vector.extract_strided_slice %376 {offsets = [0, 0], sizes = [8, 128], strides = [1, 1]} : vector<8x384xf32> to vector<8x128xf32>
    %379 = arith.addf %377, %378 : vector<8x128xf32>
    %380 = arith.negf %379 : vector<8x128xf32>
    %381 = math.exp %380 : vector<8x128xf32>
    %cst_91 = arith.constant 1.000000e+00 : f32
    %382 = vector.broadcast %cst_91 : f32 to vector<8x128xf32>
    %383 = arith.addf %382, %381 : vector<8x128xf32>
    %384 = arith.divf %382, %383 : vector<8x128xf32>
    %385 = vector.extract_strided_slice %373 {offsets = [0, 128], sizes = [8, 128], strides = [1, 1]} : vector<8x384xf32> to vector<8x128xf32>
    %386 = vector.extract_strided_slice %376 {offsets = [0, 128], sizes = [8, 128], strides = [1, 1]} : vector<8x384xf32> to vector<8x128xf32>
    %387 = arith.addf %385, %386 : vector<8x128xf32>
    %388 = arith.negf %387 : vector<8x128xf32>
    %389 = math.exp %388 : vector<8x128xf32>
    %cst_92 = arith.constant 1.000000e+00 : f32
    %390 = vector.broadcast %cst_92 : f32 to vector<8x128xf32>
    %391 = arith.addf %390, %389 : vector<8x128xf32>
    %392 = arith.divf %390, %391 : vector<8x128xf32>
    %393 = vector.extract_strided_slice %373 {offsets = [0, 256], sizes = [8, 128], strides = [1, 1]} : vector<8x384xf32> to vector<8x128xf32>
    %394 = vector.extract_strided_slice %376 {offsets = [0, 256], sizes = [8, 128], strides = [1, 1]} : vector<8x384xf32> to vector<8x128xf32>
    %395 = arith.mulf %384, %394 : vector<8x128xf32>
    %396 = arith.addf %393, %395 : vector<8x128xf32>
    %397 = math.tanh %396 : vector<8x128xf32>
    %cst_93 = arith.constant 1.000000e+00 : f32
    %398 = vector.broadcast %cst_93 : f32 to vector<8x128xf32>
    %399 = arith.subf %398, %392 : vector<8x128xf32>
    %400 = arith.mulf %399, %397 : vector<8x128xf32>
    %401 = arith.mulf %392, %372 : vector<8x128xf32>
    %402 = arith.addf %400, %401 : vector<8x128xf32>
    %403 = vector.extract_strided_slice %248 {offsets = [40, 0], sizes = [8, 384], strides = [1, 1]} : vector<64x384xf32> to vector<8x384xf32>
    %c0_94 = arith.constant 0 : index
    %c0_95 = arith.constant 0 : index
    %404 = vector.load %arg5[%c0_94, %c0_95] : memref<128x384xf32, #tpu.memory_space<vmem>>, vector<128x384xf32>
    %cst_96 = arith.constant dense<0.000000e+00> : vector<8x384xf32>
    %405 = tpu.matmul %402, %404, %cst_96 {dimension_numbers = #tpu.dot_dimension_numbers<[1], [0], [0], [1], [0, 0, 1, 1], [], []>} : vector<8x128xf32>, vector<128x384xf32>, vector<8x384xf32> -> vector<8x384xf32>
    %406 = arith.addf %405, %251 : vector<8x384xf32>
    %407 = vector.extract_strided_slice %403 {offsets = [0, 0], sizes = [8, 128], strides = [1, 1]} : vector<8x384xf32> to vector<8x128xf32>
    %408 = vector.extract_strided_slice %406 {offsets = [0, 0], sizes = [8, 128], strides = [1, 1]} : vector<8x384xf32> to vector<8x128xf32>
    %409 = arith.addf %407, %408 : vector<8x128xf32>
    %410 = arith.negf %409 : vector<8x128xf32>
    %411 = math.exp %410 : vector<8x128xf32>
    %cst_97 = arith.constant 1.000000e+00 : f32
    %412 = vector.broadcast %cst_97 : f32 to vector<8x128xf32>
    %413 = arith.addf %412, %411 : vector<8x128xf32>
    %414 = arith.divf %412, %413 : vector<8x128xf32>
    %415 = vector.extract_strided_slice %403 {offsets = [0, 128], sizes = [8, 128], strides = [1, 1]} : vector<8x384xf32> to vector<8x128xf32>
    %416 = vector.extract_strided_slice %406 {offsets = [0, 128], sizes = [8, 128], strides = [1, 1]} : vector<8x384xf32> to vector<8x128xf32>
    %417 = arith.addf %415, %416 : vector<8x128xf32>
    %418 = arith.negf %417 : vector<8x128xf32>
    %419 = math.exp %418 : vector<8x128xf32>
    %cst_98 = arith.constant 1.000000e+00 : f32
    %420 = vector.broadcast %cst_98 : f32 to vector<8x128xf32>
    %421 = arith.addf %420, %419 : vector<8x128xf32>
    %422 = arith.divf %420, %421 : vector<8x128xf32>
    %423 = vector.extract_strided_slice %403 {offsets = [0, 256], sizes = [8, 128], strides = [1, 1]} : vector<8x384xf32> to vector<8x128xf32>
    %424 = vector.extract_strided_slice %406 {offsets = [0, 256], sizes = [8, 128], strides = [1, 1]} : vector<8x384xf32> to vector<8x128xf32>
    %425 = arith.mulf %414, %424 : vector<8x128xf32>
    %426 = arith.addf %423, %425 : vector<8x128xf32>
    %427 = math.tanh %426 : vector<8x128xf32>
    %cst_99 = arith.constant 1.000000e+00 : f32
    %428 = vector.broadcast %cst_99 : f32 to vector<8x128xf32>
    %429 = arith.subf %428, %422 : vector<8x128xf32>
    %430 = arith.mulf %429, %427 : vector<8x128xf32>
    %431 = arith.mulf %422, %402 : vector<8x128xf32>
    %432 = arith.addf %430, %431 : vector<8x128xf32>
    %433 = vector.extract_strided_slice %248 {offsets = [48, 0], sizes = [8, 384], strides = [1, 1]} : vector<64x384xf32> to vector<8x384xf32>
    %c0_100 = arith.constant 0 : index
    %c0_101 = arith.constant 0 : index
    %434 = vector.load %arg5[%c0_100, %c0_101] : memref<128x384xf32, #tpu.memory_space<vmem>>, vector<128x384xf32>
    %cst_102 = arith.constant dense<0.000000e+00> : vector<8x384xf32>
    %435 = tpu.matmul %432, %434, %cst_102 {dimension_numbers = #tpu.dot_dimension_numbers<[1], [0], [0], [1], [0, 0, 1, 1], [], []>} : vector<8x128xf32>, vector<128x384xf32>, vector<8x384xf32> -> vector<8x384xf32>
    %436 = arith.addf %435, %251 : vector<8x384xf32>
    %437 = vector.extract_strided_slice %433 {offsets = [0, 0], sizes = [8, 128], strides = [1, 1]} : vector<8x384xf32> to vector<8x128xf32>
    %438 = vector.extract_strided_slice %436 {offsets = [0, 0], sizes = [8, 128], strides = [1, 1]} : vector<8x384xf32> to vector<8x128xf32>
    %439 = arith.addf %437, %438 : vector<8x128xf32>
    %440 = arith.negf %439 : vector<8x128xf32>
    %441 = math.exp %440 : vector<8x128xf32>
    %cst_103 = arith.constant 1.000000e+00 : f32
    %442 = vector.broadcast %cst_103 : f32 to vector<8x128xf32>
    %443 = arith.addf %442, %441 : vector<8x128xf32>
    %444 = arith.divf %442, %443 : vector<8x128xf32>
    %445 = vector.extract_strided_slice %433 {offsets = [0, 128], sizes = [8, 128], strides = [1, 1]} : vector<8x384xf32> to vector<8x128xf32>
    %446 = vector.extract_strided_slice %436 {offsets = [0, 128], sizes = [8, 128], strides = [1, 1]} : vector<8x384xf32> to vector<8x128xf32>
    %447 = arith.addf %445, %446 : vector<8x128xf32>
    %448 = arith.negf %447 : vector<8x128xf32>
    %449 = math.exp %448 : vector<8x128xf32>
    %cst_104 = arith.constant 1.000000e+00 : f32
    %450 = vector.broadcast %cst_104 : f32 to vector<8x128xf32>
    %451 = arith.addf %450, %449 : vector<8x128xf32>
    %452 = arith.divf %450, %451 : vector<8x128xf32>
    %453 = vector.extract_strided_slice %433 {offsets = [0, 256], sizes = [8, 128], strides = [1, 1]} : vector<8x384xf32> to vector<8x128xf32>
    %454 = vector.extract_strided_slice %436 {offsets = [0, 256], sizes = [8, 128], strides = [1, 1]} : vector<8x384xf32> to vector<8x128xf32>
    %455 = arith.mulf %444, %454 : vector<8x128xf32>
    %456 = arith.addf %453, %455 : vector<8x128xf32>
    %457 = math.tanh %456 : vector<8x128xf32>
    %cst_105 = arith.constant 1.000000e+00 : f32
    %458 = vector.broadcast %cst_105 : f32 to vector<8x128xf32>
    %459 = arith.subf %458, %452 : vector<8x128xf32>
    %460 = arith.mulf %459, %457 : vector<8x128xf32>
    %461 = arith.mulf %452, %432 : vector<8x128xf32>
    %462 = arith.addf %460, %461 : vector<8x128xf32>
    %463 = vector.extract_strided_slice %248 {offsets = [56, 0], sizes = [8, 384], strides = [1, 1]} : vector<64x384xf32> to vector<8x384xf32>
    %c0_106 = arith.constant 0 : index
    %c0_107 = arith.constant 0 : index
    %464 = vector.load %arg5[%c0_106, %c0_107] : memref<128x384xf32, #tpu.memory_space<vmem>>, vector<128x384xf32>
    %cst_108 = arith.constant dense<0.000000e+00> : vector<8x384xf32>
    %465 = tpu.matmul %462, %464, %cst_108 {dimension_numbers = #tpu.dot_dimension_numbers<[1], [0], [0], [1], [0, 0, 1, 1], [], []>} : vector<8x128xf32>, vector<128x384xf32>, vector<8x384xf32> -> vector<8x384xf32>
    %466 = arith.addf %465, %251 : vector<8x384xf32>
    %467 = vector.extract_strided_slice %463 {offsets = [0, 0], sizes = [8, 128], strides = [1, 1]} : vector<8x384xf32> to vector<8x128xf32>
    %468 = vector.extract_strided_slice %466 {offsets = [0, 0], sizes = [8, 128], strides = [1, 1]} : vector<8x384xf32> to vector<8x128xf32>
    %469 = arith.addf %467, %468 : vector<8x128xf32>
    %470 = arith.negf %469 : vector<8x128xf32>
    %471 = math.exp %470 : vector<8x128xf32>
    %cst_109 = arith.constant 1.000000e+00 : f32
    %472 = vector.broadcast %cst_109 : f32 to vector<8x128xf32>
    %473 = arith.addf %472, %471 : vector<8x128xf32>
    %474 = arith.divf %472, %473 : vector<8x128xf32>
    %475 = vector.extract_strided_slice %463 {offsets = [0, 128], sizes = [8, 128], strides = [1, 1]} : vector<8x384xf32> to vector<8x128xf32>
    %476 = vector.extract_strided_slice %466 {offsets = [0, 128], sizes = [8, 128], strides = [1, 1]} : vector<8x384xf32> to vector<8x128xf32>
    %477 = arith.addf %475, %476 : vector<8x128xf32>
    %478 = arith.negf %477 : vector<8x128xf32>
    %479 = math.exp %478 : vector<8x128xf32>
    %cst_110 = arith.constant 1.000000e+00 : f32
    %480 = vector.broadcast %cst_110 : f32 to vector<8x128xf32>
    %481 = arith.addf %480, %479 : vector<8x128xf32>
    %482 = arith.divf %480, %481 : vector<8x128xf32>
    %483 = vector.extract_strided_slice %463 {offsets = [0, 256], sizes = [8, 128], strides = [1, 1]} : vector<8x384xf32> to vector<8x128xf32>
    %484 = vector.extract_strided_slice %466 {offsets = [0, 256], sizes = [8, 128], strides = [1, 1]} : vector<8x384xf32> to vector<8x128xf32>
    %485 = arith.mulf %474, %484 : vector<8x128xf32>
    %486 = arith.addf %483, %485 : vector<8x128xf32>
    %487 = math.tanh %486 : vector<8x128xf32>
    %cst_111 = arith.constant 1.000000e+00 : f32
    %488 = vector.broadcast %cst_111 : f32 to vector<8x128xf32>
    %489 = arith.subf %488, %482 : vector<8x128xf32>
    %490 = arith.mulf %489, %487 : vector<8x128xf32>
    %491 = arith.mulf %482, %462 : vector<8x128xf32>
    %492 = arith.addf %490, %491 : vector<8x128xf32>
    %c0_112 = arith.constant 0 : index
    %c0_113 = arith.constant 0 : index
    %493 = vector.load %arg8[%c0_112, %c0_113] : memref<128x128xf32, #tpu.memory_space<vmem>>, vector<128x128xf32>
    %cst_114 = arith.constant dense<0.000000e+00> : vector<8x128xf32>
    %494 = tpu.matmul %492, %493, %cst_114 {dimension_numbers = #tpu.dot_dimension_numbers<[1], [0], [0], [1], [0, 0, 1, 1], [], []>} : vector<8x128xf32>, vector<128x128xf32>, vector<8x128xf32> -> vector<8x128xf32>
    %c0_115 = arith.constant 0 : index
    %c0_116 = arith.constant 0 : index
    %495 = vector.load %arg9[%c0_115, %c0_116] : memref<1x128xf32, #tpu.memory_space<vmem>>, vector<1x128xf32>
    %496 = vector.broadcast %495 : vector<1x128xf32> to vector<8x128xf32>
    %497 = arith.addf %494, %496 : vector<8x128xf32>
    %c0_117 = arith.constant 0 : index
    %c0_118 = arith.constant 0 : index
    %498 = vector.load %arg10[%c0_117, %c0_118] : memref<8x128xf32, #tpu.memory_space<vmem>>, vector<8x128xf32>
    tpu.vector_store %arg10[%c0_117, %c0_118], %497 {strides = array<i32>} : memref<8x128xf32, #tpu.memory_space<vmem>>, vector<8x128xf32>,
    return
  }
}

</mosaic_0001>

<bundles_post_ra>
// kernel: lstm_gru_forward.1
= control target key start
LH: loop header
LB: loop body
LE: loop exit
PB: predicated region body
PF: predicated region fallthrough
CT: control target
= control target key end

     0   :  { %v5533_v3 = vmov 0.0   ;;  %vm5535_vm0 = vmmov 0   ;;  %s7271_s1 = inlined_call_operand.vmem [shape: f32[128,512], index: 1, kind: input, shape index: {}]   ;;  %s7272_s2 = inlined_call_operand.vmem [shape: f32[128,512], index: 2, kind: input, shape index: {}]   ;;  %s7273_s0 = inlined_call_operand.vmem [shape: f32[8,8,128], index: 0, kind: input, shape index: {}]   ;;  %s7274_s3 = inlined_call_operand.vmem [shape: f32[1,512], index: 3, kind: input, shape index: {}]   ;;  %s7275_s4 = inlined_call_operand.vmem [shape: f32[128,384], index: 4, kind: input, shape index: {}]   ;;  %s7276_s5 = inlined_call_operand.vmem [shape: f32[128,384], index: 5, kind: input, shape index: {}]   ;;  %s7277_s7 = inlined_call_operand.vmem [shape: f32[1,384], index: 7, kind: input, shape index: {}]   ;;  %s7278_s6 = inlined_call_operand.vmem [shape: f32[1,384], index: 6, kind: input, shape index: {}]   ;;  %s7279_s8 = inlined_call_operand.vmem [shape: f32[128,128], index: 8, kind: input, shape index: {}]   ;;  %s7280_s9 = inlined_call_operand.vmem [shape: f32[1,128], index: 9, kind: input, shape index: {}]   ;;  %s7281_s10 = inlined_call_operand.vmem [shape: f32[8,128], index: 10, kind: output, shape index: {}]  }
   0x1   :  { %v44_v0 = vld [vmem:[%s7271_s1 + $0x8] sm:$0xff]  ;;  %v46_v2 = vld [vmem:[%s7271_s1 + $0x18] sm:$0xff]  ;;  %193 = vmatprep.mubr.f32.mxu0 %v5533_v3  ;;  %306 = vmatprep.mubr.f32.mxu1 %v5533_v3  ;;  %v43_v6 = vld [vmem:[%s7271_s1] sm:$0xff] }
   0x2   :  { %v48_v1 = vld [vmem:[%s7271_s1 + $0x28] sm:$0xff]  ;;  %v50_v5 = vld [vmem:[%s7271_s1 + $0x38] sm:$0xff]  ;;  %v47_v7 = vld [vmem:[%s7271_s1 + $0x20] sm:$0xff] }
   0x3   :  { %v4098_v4 = vpack.c.bf16 %v48_v1, %v44_v0  ;;  %v4130_v8 = vpack.c.bf16 %v50_v5, %v46_v2  ;;  %v4100_v9 = vpack.c.bf16 %v47_v7, %v43_v6  ;;  %v45_v10 = vld [vmem:[%s7271_s1 + $0x10] sm:$0xff]  ;;  %v52_v12 = vld [vmem:[%s7271_s1 + $0x48] sm:$0xff]  ;;  %v54_v15 = vld [vmem:[%s7271_s1 + $0x58] sm:$0xff] }
   0x4   :  { %v49_v11 = vld [vmem:[%s7271_s1 + $0x30] sm:$0xff]  ;;  %v56_v14 = vld [vmem:[%s7271_s1 + $0x68] sm:$0xff]  ;;  %v58_v16 = vld [vmem:[%s7271_s1 + $0x78] sm:$0xff] }
   0x5   :  { %4099 = vmatprep.subr.bf16.mxu0 %v4098_v4  ;;  %v4132_v13 = vpack.c.bf16 %v49_v11, %v45_v10  ;;  %4131 = vmatprep.subr.bf16.mxu1 %v4130_v8  ;;  %v4102_v17 = vpack.c.bf16 %v56_v14, %v52_v12  ;;  %v4134_v18 = vpack.c.bf16 %v58_v16, %v54_v15  ;;  %v51_v19 = vld [vmem:[%s7271_s1 + $0x40] sm:$0xff]  ;;  %v53_v21 = vld [vmem:[%s7271_s1 + $0x50] sm:$0xff]  ;;  %v60_v24 = vld [vmem:[%s7271_s1 + $0x88] sm:$0xff] }
   0x6   :  { %4101 = vmatpush1.bf16.msra.mxu0 %v4100_v9  ;;  %v55_v20 = vld [vmem:[%s7271_s1 + $0x60] sm:$0xff]  ;;  %v57_v23 = vld [vmem:[%s7271_s1 + $0x70] sm:$0xff]  ;;  %v64_v25 = vld [vmem:[%s7271_s1 + $0xa8] sm:$0xff] }
   0x7   :  { %4133 = vmatpush1.bf16.msra.mxu1 %v4132_v13  ;;  %v4104_v22 = vpack.c.bf16 %v55_v20, %v51_v19  ;;  %4103 = vmatprep.subr.bf16.mxu0 %v4102_v17  ;;  %v4136_v26 = vpack.c.bf16 %v57_v23, %v53_v21  ;;  %v4106_v27 = vpack.c.bf16 %v64_v25, %v60_v24  ;;  %v62_v28 = vld [vmem:[%s7271_s1 + $0x98] sm:$0xff]  ;;  %v59_v30 = vld [vmem:[%s7271_s1 + $0x80] sm:$0xff]  ;;  %v61_v33 = vld [vmem:[%s7271_s1 + $0x90] sm:$0xff] }
   0x8   :  { %4135 = vmatprep.subr.bf16.mxu1 %v4134_v18  ;;  %v66_v29 = vld [vmem:[%s7271_s1 + $0xb8] sm:$0xff]  ;;  %v63_v32 = vld [vmem:[%s7271_s1 + $0xa0] sm:$0xff]  ;;  %v65_v34 = vld [vmem:[%s7271_s1 + $0xb0] sm:$0xff] }
   0x9   :  { %v4138_v31 = vpack.c.bf16 %v66_v29, %v62_v28  ;;  %v4108_v35 = vpack.c.bf16 %v63_v32, %v59_v30  ;;  %v68_v36 = vld [vmem:[%s7271_s1 + $0xc8] sm:$0xff]  ;;  %v70_v38 = vld [vmem:[%s7271_s1 + $0xd8] sm:$0xff]  ;;  %v4140_v39 = vpack.c.bf16 %v65_v34, %v61_v33  ;;  %v67_v42 = vld [vmem:[%s7271_s1 + $0xc0] sm:$0xff] }
   0xa   :  { %4105 = vmatpush1.bf16.msra.mxu0 %v4104_v22  ;;  %v72_v37 = vld [vmem:[%s7271_s1 + $0xe8] sm:$0xff]  ;;  %v74_v41 = vld [vmem:[%s7271_s1 + $0xf8] sm:$0xff]  ;;  %v71_v43 = vld [vmem:[%s7271_s1 + $0xe0] sm:$0xff] }
   0xb   :  { %4137 = vmatpush1.bf16.msra.mxu1 %v4136_v26  ;;  %4107 = vmatprep.subr.bf16.mxu0 %v4106_v27  ;;  %v4110_v40 = vpack.c.bf16 %v72_v37, %v68_v36  ;;  %v4142_v44 = vpack.c.bf16 %v74_v41, %v70_v38  ;;  %v69_v45 = vld [vmem:[%s7271_s1 + $0xd0] sm:$0xff]  ;;  %v76_v47 = vld [vmem:[%s7271_s1 + $0x108] sm:$0xff]  ;;  %v78_v49 = vld [vmem:[%s7271_s1 + $0x118] sm:$0xff]  ;;  %v4112_v51 = vpack.c.bf16 %v71_v43, %v67_v42 }
   0xc   :  { %4139 = vmatprep.subr.bf16.mxu1 %v4138_v31  ;;  %v73_v46 = vld [vmem:[%s7271_s1 + $0xf0] sm:$0xff]  ;;  %v80_v48 = vld [vmem:[%s7271_s1 + $0x128] sm:$0xff]  ;;  %v82_v50 = vld [vmem:[%s7271_s1 + $0x138] sm:$0xff] }
   0xd   :  { %v4144_v52 = vpack.c.bf16 %v73_v46, %v69_v45  ;;  %v4114_v53 = vpack.c.bf16 %v80_v48, %v76_v47  ;;  %v75_v54 = vld [vmem:[%s7271_s1 + $0x100] sm:$0xff]  ;;  %v77_v56 = vld [vmem:[%s7271_s1 + $0x110] sm:$0xff]  ;;  %v4146_v57 = vpack.c.bf16 %v82_v50, %v78_v49  ;;  %v84_v59 = vld [vmem:[%s7271_s1 + $0x148] sm:$0xff] }
   0xe   :  { %4109 = vmatpush1.bf16.msra.mxu0 %v4108_v35  ;;  %v79_v55 = vld [vmem:[%s7271_s1 + $0x120] sm:$0xff]  ;;  %v81_v58 = vld [vmem:[%s7271_s1 + $0x130] sm:$0xff]  ;;  %v88_v60 = vld [vmem:[%s7271_s1 + $0x168] sm:$0xff] }
   0xf   :  { %4141 = vmatpush1.bf16.msra.mxu1 %v4140_v39  ;;  %4111 = vmatprep.subr.bf16.mxu0 %v4110_v40  ;;  %v86_v61 = vld [vmem:[%s7271_s1 + $0x158] sm:$0xff]  ;;  %v4116_v63 = vpack.c.bf16 %v79_v55, %v75_v54  ;;  %v4148_v0 = vpack.c.bf16 %v81_v58, %v77_v56  ;;  %v4118_v1 = vpack.c.bf16 %v88_v60, %v84_v59  ;;  %v83_v2 = vld [vmem:[%s7271_s1 + $0x140] sm:$0xff]  ;;  %v85_v5 = vld [vmem:[%s7271_s1 + $0x150] sm:$0xff] }
  0x10   :  { %4143 = vmatprep.subr.bf16.mxu1 %v4142_v44  ;;  %v90_v62 = vld [vmem:[%s7271_s1 + $0x178] sm:$0xff]  ;;  %v87_v4 = vld [vmem:[%s7271_s1 + $0x160] sm:$0xff]  ;;  %v89_v7 = vld [vmem:[%s7271_s1 + $0x170] sm:$0xff] }
  0x11   :  { %v4150_v6 = vpack.c.bf16 %v90_v62, %v86_v61  ;;  %v92_v8 = vld [vmem:[%s7271_s1 + $0x188] sm:$0xff]  ;;  %v94_v10 = vld [vmem:[%s7271_s1 + $0x198] sm:$0xff]  ;;  %v4120_v12 = vpack.c.bf16 %v87_v4, %v83_v2  ;;  %v4152_v13 = vpack.c.bf16 %v89_v7, %v85_v5  ;;  %v91_v15 = vld [vmem:[%s7271_s1 + $0x180] sm:$0xff] }
  0x12   :  { %4113 = vmatpush1.bf16.msra.mxu0 %v4112_v51  ;;  %v96_v9 = vld [vmem:[%s7271_s1 + $0x1a8] sm:$0xff]  ;;  %v98_v11 = vld [vmem:[%s7271_s1 + $0x1b8] sm:$0xff]  ;;  %v95_v16 = vld [vmem:[%s7271_s1 + $0x1a0] sm:$0xff] }
  0x13   :  { %4145 = vmatpush1.bf16.msra.mxu1 %v4144_v52  ;;  %4115 = vmatprep.subr.bf16.mxu0 %v4114_v53  ;;  %v4122_v14 = vpack.c.bf16 %v96_v9, %v92_v8  ;;  %v93_v17 = vld [vmem:[%s7271_s1 + $0x190] sm:$0xff]  ;;  %v4154_v18 = vpack.c.bf16 %v98_v11, %v94_v10  ;;  %v100_v20 = vld [vmem:[%s7271_s1 + $0x1c8] sm:$0xff]  ;;  %v102_v22 = vld [vmem:[%s7271_s1 + $0x1d8] sm:$0xff]  ;;  %v4124_v24 = vpack.c.bf16 %v95_v16, %v91_v15 }
  0x14   :  { %4147 = vmatprep.subr.bf16.mxu1 %v4146_v57  ;;  %v97_v19 = vld [vmem:[%s7271_s1 + $0x1b0] sm:$0xff]  ;;  %v104_v21 = vld [vmem:[%s7271_s1 + $0x1e8] sm:$0xff]  ;;  %v106_v23 = vld [vmem:[%s7271_s1 + $0x1f8] sm:$0xff] }
  0x15   :  { %v4156_v25 = vpack.c.bf16 %v97_v19, %v93_v17  ;;  %v4126_v26 = vpack.c.bf16 %v104_v21, %v100_v20  ;;  %v99_v27 = vld [vmem:[%s7271_s1 + $0x1c0] sm:$0xff]  ;;  %v101_v29 = vld [vmem:[%s7271_s1 + $0x1d0] sm:$0xff]  ;;  %v4158_v30 = vpack.c.bf16 %v106_v23, %v102_v22  ;;  %v356_v32 = vld [vmem:[%s7272_s2 + $0x8] sm:$0xff] }
  0x16   :  { %4117 = vmatpush1.bf16.msra.mxu0 %v4116_v63  ;;  %v103_v28 = vld [vmem:[%s7271_s1 + $0x1e0] sm:$0xff]  ;;  %v105_v31 = vld [vmem:[%s7271_s1 + $0x1f0] sm:$0xff]  ;;  %v360_v33 = vld [vmem:[%s7272_s2 + $0x28] sm:$0xff] }
  0x17   :  { %4149 = vmatpush1.bf16.msra.mxu1 %v4148_v0  ;;  %4119 = vmatprep.subr.bf16.mxu0 %v4118_v1  ;;  %v358_v34 = vld [vmem:[%s7272_s2 + $0x18] sm:$0xff]  ;;  %v4128_v36 = vpack.c.bf16 %v103_v28, %v99_v27  ;;  %v4160_v37 = vpack.c.bf16 %v105_v31, %v101_v29  ;;  %v5797_v38 = vpack.c.bf16 %v360_v33, %v356_v32  ;;  %v355_v39 = vld [vmem:[%s7272_s2] sm:$0xff]  ;;  %v357_v42 = vld [vmem:[%s7272_s2 + $0x10] sm:$0xff] }
  0x18   :  { %4151 = vmatprep.subr.bf16.mxu1 %v4150_v6  ;;  %v362_v35 = vld [vmem:[%s7272_s2 + $0x38] sm:$0xff]  ;;  %v359_v40 = vld [vmem:[%s7272_s2 + $0x20] sm:$0xff]  ;;  %v361_v43 = vld [vmem:[%s7272_s2 + $0x30] sm:$0xff] }
  0x19   :  { %v5805_v41 = vpack.c.bf16 %v362_v35, %v358_v34  ;;  %v364_v44 = vld [vmem:[%s7272_s2 + $0x48] sm:$0xff]  ;;  %v35_v46 = vld [vmem:[%s7273_s0] sm:$0xff]  ;;  %v5822_v47 = vpack.c.bf16 %v359_v40, %v355_v39  ;;  %v366_v48 = vld [vmem:[%s7272_s2 + $0x58] sm:$0xff]  ;;  %v5831_v50 = vpack.c.bf16 %v361_v43, %v357_v42 }
  0x1a   :  { %4121 = vmatpush1.bf16.msra.mxu0 %v4120_v12  ;;  %v368_v45 = vld [vmem:[%s7272_s2 + $0x68] sm:$0xff]  ;;  %v370_v49 = vld [vmem:[%s7272_s2 + $0x78] sm:$0xff]  ;;  %v363_v51 = vld [vmem:[%s7272_s2 + $0x40] sm:$0xff] }
  0x1b   :  { %4153 = vmatpush1.bf16.msra.mxu1 %v4152_v13  ;;  %4123 = vmatprep.subr.bf16.mxu0 %v4122_v14  ;;  %v367_v52 = vld [vmem:[%s7272_s2 + $0x60] sm:$0xff]  ;;  %v5840_v53 = vpack.c.bf16 %v368_v45, %v364_v44  ;;  %v365_v54 = vld [vmem:[%s7272_s2 + $0x50] sm:$0xff]  ;;  %v5848_v56 = vpack.c.bf16 %v370_v49, %v366_v48  ;;  %v372_v57 = vld [vmem:[%s7272_s2 + $0x88] sm:$0xff] }
  0x1c   :  { %4155 = vmatprep.subr.bf16.mxu1 %v4154_v18  ;;  %v369_v55 = vld [vmem:[%s7272_s2 + $0x70] sm:$0xff]  ;;  %v376_v58 = vld [vmem:[%s7272_s2 + $0xa8] sm:$0xff]  ;;  %v5860_v60 = vpack.c.bf16 %v367_v52, %v363_v51  ;;  %v374_v61 = vld [vmem:[%s7272_s2 + $0x98] sm:$0xff] }
  0x1d   :  { %v36_v59 = vld [vmem:[%s7273_s0 + $0x8] sm:$0xff]  ;;  %v378_v62 = vld [vmem:[%s7272_s2 + $0xb8] sm:$0xff]  ;;  %v5870_v63 = vpack.c.bf16 %v369_v55, %v365_v54  ;;  %v371_v0 = vld [vmem:[%s7272_s2 + $0x80] sm:$0xff]  ;;  %v5880_v2 = vpack.c.bf16 %v376_v58, %v372_v57 }
  0x1e   :  { %4125 = vmatpush1.bf16.msra.mxu0 %v4124_v24  ;;  %v375_v1 = vld [vmem:[%s7272_s2 + $0xa0] sm:$0xff]  ;;  %v373_v4 = vld [vmem:[%s7272_s2 + $0x90] sm:$0xff]  ;;  %v5889_v6 = vpack.c.bf16 %v378_v62, %v374_v61  ;;  %v380_v7 = vld [vmem:[%s7272_s2 + $0xc8] sm:$0xff] }
  0x1f   :  { %4157 = vmatpush1.bf16.msra.mxu1 %v4156_v25  ;;  %4127 = vmatprep.subr.bf16.mxu0 %v4126_v26  ;;  %v377_v5 = vld [vmem:[%s7272_s2 + $0xb0] sm:$0xff]  ;;  %v384_v8 = vld [vmem:[%s7272_s2 + $0xe8] sm:$0xff]  ;;  %v5901_v10 = vpack.c.bf16 %v375_v1, %v371_v0  ;;  %v382_v11 = vld [vmem:[%s7272_s2 + $0xd8] sm:$0xff] }
  0x20   :  { %4159 = vmatprep.subr.bf16.mxu1 %v4158_v30  ;;  %v37_v9 = vld [vmem:[%s7273_s0 + $0x10] sm:$0xff]  ;;  %v386_v12 = vld [vmem:[%s7272_s2 + $0xf8] sm:$0xff]  ;;  %v5911_v13 = vpack.c.bf16 %v377_v5, %v373_v4  ;;  %v379_v14 = vld [vmem:[%s7272_s2 + $0xc0] sm:$0xff]  ;;  %v5921_v16 = vpack.c.bf16 %v384_v8, %v380_v7 }
  0x21   :  { %v383_v15 = vld [vmem:[%s7272_s2 + $0xe0] sm:$0xff]  ;;  %v381_v17 = vld [vmem:[%s7272_s2 + $0xd0] sm:$0xff]  ;;  %v5930_v19 = vpack.c.bf16 %v386_v12, %v382_v11  ;;  %v388_v20 = vld [vmem:[%s7272_s2 + $0x108] sm:$0xff] }
  0x22   :  { %4129 = vmatpush1.bf16.msra.mxu0 %v4128_v36  ;;  %v385_v18 = vld [vmem:[%s7272_s2 + $0xf0] sm:$0xff]  ;;  %v392_v21 = vld [vmem:[%s7272_s2 + $0x128] sm:$0xff]  ;;  %v38_v22 = vld [vmem:[%s7273_s0 + $0x18] sm:$0xff]  ;;  %v5942_v23 = vpack.c.bf16 %v383_v15, %v379_v14 }
  0x23   :  { %4161 = vmatpush1.bf16.msra.mxu1 %v4160_v37  ;;  %4163 = vmatprep.subr.bf16.mxu0 %v5797_v38  ;;  %v390_v24 = vld [vmem:[%s7272_s2 + $0x118] sm:$0xff]  ;;  %v5952_v26 = vpack.c.bf16 %v385_v18, %v381_v17  ;;  %v387_v27 = vld [vmem:[%s7272_s2 + $0x100] sm:$0xff]  ;;  %v5962_v29 = vpack.c.bf16 %v392_v21, %v388_v20  ;;  %v389_v30 = vld [vmem:[%s7272_s2 + $0x110] sm:$0xff] }
  0x24   :  { %4195 = vmatprep.subr.bf16.mxu1 %v5805_v41  ;;  %v394_v25 = vld [vmem:[%s7272_s2 + $0x138] sm:$0xff]  ;;  %v391_v28 = vld [vmem:[%s7272_s2 + $0x120] sm:$0xff]  ;;  %v393_v31 = vld [vmem:[%s7272_s2 + $0x130] sm:$0xff] }
  0x25   :  { %194 = vmatmul.mubr.f32.vlgmr.msra.gmra.mrb[0].mxu0 %v35_v46  ;;  %v5971_v32 = vpack.c.bf16 %v394_v25, %v390_v24  ;;  %v396_v33 = vld [vmem:[%s7272_s2 + $0x148] sm:$0xff]  ;;  %v39_v35 = vld [vmem:[%s7273_s0 + $0x20] sm:$0xff]  ;;  %v5983_v36 = vpack.c.bf16 %v391_v28, %v387_v27  ;;  %v398_v37 = vld [vmem:[%s7272_s2 + $0x158] sm:$0xff]  ;;  %v5993_v40 = vpack.c.bf16 %v393_v31, %v389_v30  ;;  %v109_v28 = vlaneseq }
  0x26   :  { %307 = vmatmul.mubr.f32.vlgmr.msra.gmra.mrb[0].mxu1 %v35_v46  ;;  %4165 = vmatpush1.bf16.msra.mxu0 %v5822_v47  ;;  %v400_v34 = vld [vmem:[%s7272_s2 + $0x168] sm:$0xff]  ;;  %v402_v39 = vld [vmem:[%s7272_s2 + $0x178] sm:$0xff]  ;;  %v395_v42 = vld [vmem:[%s7272_s2 + $0x140] sm:$0xff] }
  0x27   :  { %4197 = vmatpush1.bf16.msra.mxu1 %v5831_v50  ;;  %199 = vmatprep.mubr.f32.mxu0 %v5533_v3  ;;  %v399_v43 = vld [vmem:[%s7272_s2 + $0x160] sm:$0xff]  ;;  %v6003_v44 = vpack.c.bf16 %v400_v34, %v396_v33  ;;  %v397_v45 = vld [vmem:[%s7272_s2 + $0x150] sm:$0xff]  ;;  %v6012_v48 = vpack.c.bf16 %v402_v39, %v398_v37  ;;  %v404_v49 = vld [vmem:[%s7272_s2 + $0x188] sm:$0xff]  ;;  %v110_v30 = vshrl.u32 %v109_v28, 7 }
  0x28   :  { %312 = vmatprep.mubr.f32.mxu1 %v5533_v3  ;;  %4167 = vmatprep.subr.bf16.mxu0 %v5840_v53  ;;  %v401_v46 = vld [vmem:[%s7272_s2 + $0x170] sm:$0xff]  ;;  %v408_v51 = vld [vmem:[%s7272_s2 + $0x1a8] sm:$0xff]  ;;  %v6024_v54 = vpack.c.bf16 %v399_v43, %v395_v42  ;;  %v406_v55 = vld [vmem:[%s7272_s2 + $0x198] sm:$0xff] }
  0x29   :  { %200 = vmatmul.mubr.f32.gmra.mrb[2].mxu0 %v36_v59  ;;  %4199 = vmatprep.subr.bf16.mxu1 %v5848_v56  ;;  %v40_v52 = vld [vmem:[%s7273_s0 + $0x28] sm:$0xff]  ;;  %v410_v57 = vld [vmem:[%s7272_s2 + $0x1b8] sm:$0xff]  ;;  %v6034_v58 = vpack.c.bf16 %v401_v46, %v397_v45  ;;  %v407_v61 = vld [vmem:[%s7272_s2 + $0x1a0] sm:$0xff]  ;;  %v6044_v62 = vpack.c.bf16 %v408_v51, %v404_v49  ;;  %v6151_v31 = vsub.s32 0, %v110_v30  ;;  %v6156_v34 = vsub.s32 1, %v110_v30 }
  0x2a   :  { %313 = vmatmul.mubr.f32.gmra.mrb[2].mxu1 %v36_v59  ;;  %4169 = vmatpush1.bf16.msra.mxu0 %v5860_v60  ;;  %v403_v59 = vld [vmem:[%s7272_s2 + $0x180] sm:$0xff]  ;;  %v405_v0 = vld [vmem:[%s7272_s2 + $0x190] sm:$0xff]  ;;  %v6053_v4 = vpack.c.bf16 %v410_v57, %v406_v55  ;;  %v412_v5 = vld [vmem:[%s7272_s2 + $0x1c8] sm:$0xff]  ;;  %v123_v42 = vsub.s32 3, %v110_v30 }
  0x2b   :  { %4201 = vmatpush1.bf16.msra.mxu1 %v5870_v63  ;;  %205 = vmatprep.mubr.f32.mxu0 %v5533_v3  ;;  %v409_v1 = vld [vmem:[%s7272_s2 + $0x1b0] sm:$0xff]  ;;  %v416_v7 = vld [vmem:[%s7272_s2 + $0x1e8] sm:$0xff]  ;;  %v414_v11 = vld [vmem:[%s7272_s2 + $0x1d8] sm:$0xff] }
  0x2c   :  { %318 = vmatprep.mubr.f32.mxu1 %v5533_v3  ;;  %4171 = vmatprep.subr.bf16.mxu0 %v5880_v2  ;;  %v41_v8 = vld [vmem:[%s7273_s0 + $0x30] sm:$0xff]  ;;  %v418_v12 = vld [vmem:[%s7272_s2 + $0x1f8] sm:$0xff]  ;;  %v6075_v14 = vpack.c.bf16 %v409_v1, %v405_v0  ;;  %v411_v15 = vld [vmem:[%s7272_s2 + $0x1c0] sm:$0xff]  ;;  %v6085_v18 = vpack.c.bf16 %v416_v7, %v412_v5 }
  0x2d   :  { %206 = vmatmul.mubr.f32.gmra.mrb[4].mxu0 %v37_v9  ;;  %4203 = vmatprep.subr.bf16.mxu1 %v5889_v6  ;;  %v415_v17 = vld [vmem:[%s7272_s2 + $0x1e0] sm:$0xff]  ;;  %v413_v20 = vld [vmem:[%s7272_s2 + $0x1d0] sm:$0xff]  ;;  %v42_v24 = vld [vmem:[%s7273_s0 + $0x38] sm:$0xff] }
  0x2e   :  { %319 = vmatmul.mubr.f32.gmra.mrb[4].mxu1 %v37_v9  ;;  %4173 = vmatpush1.bf16.msra.mxu0 %v5901_v10  ;;  %v6065_v9 = vpack.c.bf16 %v407_v61, %v403_v59  ;;  %v417_v21 = vld [vmem:[%s7272_s2 + $0x1f0] sm:$0xff]  ;;  %v6100_v25 = vpack.c.bf16 %v415_v17, %v411_v15  ;;  %v107_v33 = vld [vmem:[%s7274_s3] sm:$0xf]  ;;  %v6168_v59 = vsub.s32 2, %v110_v30 }
  0x2f   :  { %4205 = vmatpush1.bf16.msra.mxu1 %v5911_v13  ;;  %211 = vmatprep.mubr.f32.mxu0 %v5533_v3  ;;  %v6104_v27 = vpack.c.bf16 %v417_v21, %v413_v20  ;;  %v6162_v37 = vrot.slane %v107_v33, %v6156_v34  ;;  %v6166_v57 = vrot.slane %v107_v33, %v123_v42 }
  0x30   :  { %324 = vmatprep.mubr.f32.mxu1 %v5533_v3  ;;  %4175 = vmatprep.subr.bf16.mxu0 %v5921_v16  ;;  %v6172_v0 = vrot.slane %v107_v33, %v6168_v59 }
  0x31   :  { %212 = vmatmul.mubr.f32.gmra.mrb[6].mxu0 %v38_v22  ;;  %4207 = vmatprep.subr.bf16.mxu1 %v5930_v19 }
  0x32   :  { %325 = vmatmul.mubr.f32.gmra.mrb[6].mxu1 %v38_v22  ;;  %4177 = vmatpush1.bf16.msra.mxu0 %v5942_v23  ;;  %v6094_v22 = vpack.c.bf16 %v418_v12, %v414_v11 }
  0x33   :  { %4209 = vmatpush1.bf16.msra.mxu1 %v5952_v26  ;;  %217 = vmatprep.mubr.f32.mxu0 %v5533_v3 }
  0x34   :  { %330 = vmatprep.mubr.f32.mxu1 %v5533_v3  ;;  %4179 = vmatprep.subr.bf16.mxu0 %v5962_v29 }
  0x35   :  { %218 = vmatmul.mubr.f32.gmra.mrb[8].mxu0 %v39_v35  ;;  %4211 = vmatprep.subr.bf16.mxu1 %v5971_v32 }
  0x36   :  { %331 = vmatmul.mubr.f32.gmra.mrb[8].mxu1 %v39_v35  ;;  %4181 = vmatpush1.bf16.msra.mxu0 %v5983_v36  ;;  %v6159_v35 = vrot.slane %v107_v33, %v6151_v31 }
  0x37   :  { %4213 = vmatpush1.bf16.msra.mxu1 %v5993_v40  ;;  %223 = vmatprep.mubr.f32.mxu0 %v5533_v3 }
  0x38   :  { %336 = vmatprep.mubr.f32.mxu1 %v5533_v3  ;;  %4183 = vmatprep.subr.bf16.mxu0 %v6003_v44 }
  0x39   :  { %224 = vmatmul.mubr.f32.gmra.mrb[10].mxu0 %v40_v52  ;;  %4215 = vmatprep.subr.bf16.mxu1 %v6012_v48 }
  0x3a   :  { %337 = vmatmul.mubr.f32.gmra.mrb[10].mxu1 %v40_v52  ;;  %4185 = vmatpush1.bf16.msra.mxu0 %v6024_v54 }
  0x3b   :  { %4217 = vmatpush1.bf16.msra.mxu1 %v6034_v58  ;;  %229 = vmatprep.mubr.f32.mxu0 %v5533_v3 }
  0x3c   :  { %342 = vmatprep.mubr.f32.mxu1 %v5533_v3  ;;  %4187 = vmatprep.subr.bf16.mxu0 %v6044_v62 }
  0x3d   :  { %230 = vmatmul.mubr.f32.gmra.mrb[12].mxu0 %v41_v8  ;;  %4219 = vmatprep.subr.bf16.mxu1 %v6053_v4 }
  0x3e   :  { %343 = vmatmul.mubr.f32.gmra.mrb[12].mxu1 %v41_v8  ;;  %4189 = vmatpush1.bf16.msra.mxu0 %v6065_v9 }
  0x3f   :  { %4221 = vmatpush1.bf16.msra.mxu1 %v6075_v14  ;;  %235 = vmatprep.mubr.f32.mxu0 %v5533_v3 }
  0x40   :  { %348 = vmatprep.mubr.f32.mxu1 %v5533_v3  ;;  %4191 = vmatprep.subr.bf16.mxu0 %v6085_v18 }
  0x41   :  { %236 = vmatmul.mubr.f32.gmra.mrb[14].mxu0 %v42_v24  ;;  %4223 = vmatprep.subr.bf16.mxu1 %v6094_v22 }
  0x42   :  { %349 = vmatmul.mubr.f32.gmra.mrb[14].mxu1 %v42_v24  ;;  %4193 = vmatpush1.bf16.msra.mxu0 %v6100_v25 }
  0x43   :  { %4225 = vmatpush1.bf16.msra.mxu1 %v6104_v27  ;;  %483 = vmatprep.mubr.f32.mxu0 %v5533_v3 }
  0x44   :  { %554 = vmatprep.mubr.f32.mxu1 %v5533_v3  ;;  %4227 = vmatprep.subr.bf16.mxu0 %v5797_v38 }
  0x45   :  { %484 = vmatmul.mubr.f32.vlgmr.msra.gmra.mrb[0].mxu0 %v5533_v3  ;;  %4259 = vmatprep.subr.bf16.mxu1 %v5805_v41 }
  0x46   :  { %555 = vmatmul.mubr.f32.vlgmr.msra.gmra.mrb[0].mxu1 %v5533_v3  ;;  %4229 = vmatpush1.bf16.msra.mxu0 %v5822_v47 }
  0x47   :  { %4261 = vmatpush1.bf16.msra.mxu1 %v5831_v50  ;;  %4231 = vmatprep.subr.bf16.mxu0 %v5840_v53 }
  0x48   :  { %4263 = vmatprep.subr.bf16.mxu1 %v5848_v56  ;;  %653 = vmatprep.mubr.f32.mxu0 %v5533_v3 }
  0x49   :  { %724 = vmatprep.mubr.f32.mxu1 %v5533_v3 }
  0x4a   :  { %4233 = vmatpush1.bf16.msra.mxu0 %v5860_v60 }
  0x4b   :  { %4265 = vmatpush1.bf16.msra.mxu1 %v5870_v63  ;;  %4235 = vmatprep.subr.bf16.mxu0 %v5880_v2 }
  0x4c   :  { %4267 = vmatprep.subr.bf16.mxu1 %v5889_v6 }
  0x4e   :  { %4237 = vmatpush1.bf16.msra.mxu0 %v5901_v10 }
  0x4f   :  { %4269 = vmatpush1.bf16.msra.mxu1 %v5911_v13  ;;  %4239 = vmatprep.subr.bf16.mxu0 %v5921_v16 }
  0x50   :  { %4271 = vmatprep.subr.bf16.mxu1 %v5930_v19 }
  0x52   :  { %4241 = vmatpush1.bf16.msra.mxu0 %v5942_v23 }
  0x53   :  { %4273 = vmatpush1.bf16.msra.mxu1 %v5952_v26  ;;  %4243 = vmatprep.subr.bf16.mxu0 %v5962_v29 }
  0x54   :  { %4275 = vmatprep.subr.bf16.mxu1 %v5971_v32 }
  0x56   :  { %4245 = vmatpush1.bf16.msra.mxu0 %v5983_v36 }
  0x57   :  { %4277 = vmatpush1.bf16.msra.mxu1 %v5993_v40  ;;  %4247 = vmatprep.subr.bf16.mxu0 %v6003_v44 }
  0x58   :  { %4279 = vmatprep.subr.bf16.mxu1 %v6012_v48 }
  0x5a   :  { %4249 = vmatpush1.bf16.msra.mxu0 %v6024_v54 }
  0x5b   :  { %4281 = vmatpush1.bf16.msra.mxu1 %v6034_v58  ;;  %4251 = vmatprep.subr.bf16.mxu0 %v6044_v62 }
  0x5c   :  { %4283 = vmatprep.subr.bf16.mxu1 %v6053_v4 }
  0x5e   :  { %4253 = vmatpush1.bf16.msra.mxu0 %v6065_v9 }
  0x5f   :  { %4285 = vmatpush1.bf16.msra.mxu1 %v6075_v14  ;;  %4255 = vmatprep.subr.bf16.mxu0 %v6085_v18 }
  0x60   :  { %4287 = vmatprep.subr.bf16.mxu1 %v6094_v22 }
  0x62   :  { %4257 = vmatpush1.bf16.msra.mxu0 %v6100_v25 }
  0x63   :  { %4289 = vmatpush1.bf16.msra.mxu1 %v6104_v27  ;;  %4291 = vmatprep.subr.bf16.mxu0 %v5797_v38 }
  0x64   :  { %4323 = vmatprep.subr.bf16.mxu1 %v5805_v41 }
 0x118   :  { %v485_v39 = vpop.f32.mrb[0].mxu0 }
 0x119   :  { %v5210_v43 = vadd.f32 %v485_v39, %v6159_v35  ;;  %v556_v45 = vpop.f32.mrb[0].mxu1  ;;  %v487_v46 = vpop.f32.mrb[1].mxu0 }
 0x11a   :  { %v5211_v49 = vadd.f32 %v487_v46, %v6162_v37  ;;  %v558_v51 = vpop.f32.mrb[1].mxu1  ;;  %v5226_v5 = vadd.f32 %v556_v45, %v6172_v0 }
 0x11b   :  { %v3521_v52 = vmul.f32 -1.442695, %v5210_v43  ;;  %v5227_v61 = vadd.f32 %v558_v51, %v6166_v57 }
 0x11c   :  { %v3522_v55 = vmul.f32 -1.442695, %v5211_v49 }
 0x11d   :  { %5325 = vpow2.f32 %v3521_v52  ;;  %v3523_v1 = vmul.f32 -1.442695, %v5227_v61 }
 0x11e   :  { %5327 = vpow2.f32 %v3522_v55 }
 0x11f   :  { %5329 = vpow2.f32 %v3523_v1 }
 0x120   :  { %5331 = vtanh.f32 %v5226_v5 }
 0x127   :  { %v5326_v7 = vpop.eup %5325 }
 0x128   :  { %v5328_v8 = vpop.eup %5327  ;;  %v568_v11 = vadd.f32 1.0, %v5326_v7 }
 0x129   :  { %v574_v12 = vadd.f32 1.0, %v5328_v8  ;;  %v5330_v15 = vpop.eup %5329 }
 0x12a   :  { %5333 = vrcp.f32 %v568_v11  ;;  %v5332_v17 = vpop.eup %5331  ;;  %v581_v28 = vadd.f32 1.0, %v5330_v15 }
 0x12b   :  { %5335 = vrcp.f32 %v574_v12 }
 0x12c   :  { %5337 = vrcp.f32 %v581_v28 }
 0x134   :  { %v5334_v20 = vpop.eup %5333 }
 0x135   :  { %v5336_v21 = vpop.eup %5335  ;;  %v585_v24 = vmul.f32 %v5334_v20, %v5332_v17 }
 0x136   :  { %v584_v30 = vmul.f32 0.0, %v5336_v21  ;;  %v5338_v39 = vpop.eup %5337 }
 0x138   :  { %v6175_v33 = vadd.f32 %v585_v24, %v584_v30 }
 0x13a   :  { %5339 = vtanh.f32 %v6175_v33 }
 0x144   :  { %v5340_v42 = vpop.eup %5339 }
 0x145   :  { %v6178_v43 = vmul.f32 %v5340_v42, %v5338_v39 }
 0x147   :  { %654 = vmatmul.mubr.f32.vlgmr.msra.gmra.mrb[2].mxu0 %v6178_v43  ;;  %725 = vmatmul.mubr.f32.vlgmr.msra.gmra.mrb[2].mxu1 %v6178_v43 }
 0x148   :  { %4293 = vmatpush1.bf16.msra.mxu0 %v5822_v47  ;;  %4325 = vmatpush1.bf16.msra.mxu1 %v5831_v50 }
 0x149   :  { %4295 = vmatprep.subr.bf16.mxu0 %v5840_v53  ;;  %4327 = vmatprep.subr.bf16.mxu1 %v5848_v56 }
 0x14a   :  { %823 = vmatprep.mubr.f32.mxu0 %v5533_v3  ;;  %894 = vmatprep.mubr.f32.mxu1 %v5533_v3 }
 0x14c   :  { %4297 = vmatpush1.bf16.msra.mxu0 %v5860_v60  ;;  %4329 = vmatpush1.bf16.msra.mxu1 %v5870_v63 }
 0x14d   :  { %4299 = vmatprep.subr.bf16.mxu0 %v5880_v2  ;;  %4331 = vmatprep.subr.bf16.mxu1 %v5889_v6 }
 0x150   :  { %4301 = vmatpush1.bf16.msra.mxu0 %v5901_v10  ;;  %4333 = vmatpush1.bf16.msra.mxu1 %v5911_v13 }
 0x151   :  { %4303 = vmatprep.subr.bf16.mxu0 %v5921_v16  ;;  %4335 = vmatprep.subr.bf16.mxu1 %v5930_v19 }
 0x154   :  { %4305 = vmatpush1.bf16.msra.mxu0 %v5942_v23  ;;  %4337 = vmatpush1.bf16.msra.mxu1 %v5952_v26 }
 0x155   :  { %4307 = vmatprep.subr.bf16.mxu0 %v5962_v29  ;;  %4339 = vmatprep.subr.bf16.mxu1 %v5971_v32 }
 0x158   :  { %4309 = vmatpush1.bf16.msra.mxu0 %v5983_v36  ;;  %4341 = vmatpush1.bf16.msra.mxu1 %v5993_v40 }
 0x159   :  { %4311 = vmatprep.subr.bf16.mxu0 %v6003_v44  ;;  %4343 = vmatprep.subr.bf16.mxu1 %v6012_v48 }
 0x15c   :  { %4313 = vmatpush1.bf16.msra.mxu0 %v6024_v54  ;;  %4345 = vmatpush1.bf16.msra.mxu1 %v6034_v58 }
 0x15d   :  { %4315 = vmatprep.subr.bf16.mxu0 %v6044_v62  ;;  %4347 = vmatprep.subr.bf16.mxu1 %v6053_v4 }
 0x160   :  { %4317 = vmatpush1.bf16.msra.mxu0 %v6065_v9  ;;  %4349 = vmatpush1.bf16.msra.mxu1 %v6075_v14 }
 0x161   :  { %4319 = vmatprep.subr.bf16.mxu0 %v6085_v18  ;;  %4351 = vmatprep.subr.bf16.mxu1 %v6094_v22 }
 0x164   :  { %4321 = vmatpush1.bf16.msra.mxu0 %v6100_v25  ;;  %4353 = vmatpush1.bf16.msra.mxu1 %v6104_v27 }
 0x165   :  { %4355 = vmatprep.subr.bf16.mxu0 %v5797_v38  ;;  %4387 = vmatprep.subr.bf16.mxu1 %v5805_v41 }
 0x21a   :  { %v655_v45 = vpop.f32.mrb[2].mxu0  ;;  %v726_v46 = vpop.f32.mrb[2].mxu1 }
 0x21b   :  { %v5212_v49 = vadd.f32 %v655_v45, %v6159_v35  ;;  %v657_v51 = vpop.f32.mrb[3].mxu0  ;;  %v728_v52 = vpop.f32.mrb[3].mxu1  ;;  %v5228_v8 = vadd.f32 %v726_v46, %v6172_v0 }
 0x21c   :  { %v5213_v55 = vadd.f32 %v657_v51, %v6162_v37  ;;  %v5229_v5 = vadd.f32 %v728_v52, %v6166_v57 }
 0x21d   :  { %v3524_v61 = vmul.f32 -1.442695, %v5212_v49 }
 0x21e   :  { %v3525_v1 = vmul.f32 -1.442695, %v5213_v55  ;;  %v3526_v7 = vmul.f32 -1.442695, %v5229_v5 }
 0x21f   :  { %5341 = vpow2.f32 %v3524_v61 }
 0x220   :  { %5343 = vpow2.f32 %v3525_v1 }
 0x221   :  { %5345 = vpow2.f32 %v3526_v7 }
 0x222   :  { %5347 = vtanh.f32 %v5228_v8 }
 0x229   :  { %v5342_v11 = vpop.eup %5341 }
 0x22a   :  { %v5344_v12 = vpop.eup %5343  ;;  %v738_v15 = vadd.f32 1.0, %v5342_v11 }
 0x22b   :  { %v744_v17 = vadd.f32 1.0, %v5344_v12  ;;  %v5346_v20 = vpop.eup %5345 }
 0x22c   :  { %5349 = vrcp.f32 %v738_v15  ;;  %v5348_v21 = vpop.eup %5347  ;;  %v751_v39 = vadd.f32 1.0, %v5346_v20 }
 0x22d   :  { %5351 = vrcp.f32 %v744_v17 }
 0x22e   :  { %5353 = vrcp.f32 %v751_v39 }
 0x236   :  { %v5350_v24 = vpop.eup %5349 }
 0x237   :  { %v5352_v28 = vpop.eup %5351  ;;  %v755_v30 = vmul.f32 %v5350_v24, %v5348_v21 }
 0x238   :  { %v754_v42 = vmul.f32 %v5352_v28, %v6175_v33  ;;  %v5354_v46 = vpop.eup %5353 }
 0x23a   :  { %v6221_v45 = vadd.f32 %v755_v30, %v754_v42 }
 0x23c   :  { %5355 = vtanh.f32 %v6221_v45 }
 0x246   :  { %v5356_v49 = vpop.eup %5355 }
 0x247   :  { %v6224_v51 = vmul.f32 %v5356_v49, %v5354_v46 }
 0x249   :  { %824 = vmatmul.mubr.f32.vlgmr.msra.gmra.mrb[4].mxu0 %v6224_v51  ;;  %895 = vmatmul.mubr.f32.vlgmr.msra.gmra.mrb[4].mxu1 %v6224_v51 }
 0x24a   :  { %4357 = vmatpush1.bf16.msra.mxu0 %v5822_v47  ;;  %4389 = vmatpush1.bf16.msra.mxu1 %v5831_v50 }
 0x24b   :  { %4359 = vmatprep.subr.bf16.mxu0 %v5840_v53  ;;  %4391 = vmatprep.subr.bf16.mxu1 %v5848_v56 }
 0x24c   :  { %993 = vmatprep.mubr.f32.mxu0 %v5533_v3  ;;  %1064 = vmatprep.mubr.f32.mxu1 %v5533_v3 }
 0x24e   :  { %4361 = vmatpush1.bf16.msra.mxu0 %v5860_v60  ;;  %4393 = vmatpush1.bf16.msra.mxu1 %v5870_v63 }
 0x24f   :  { %4363 = vmatprep.subr.bf16.mxu0 %v5880_v2  ;;  %4395 = vmatprep.subr.bf16.mxu1 %v5889_v6 }
 0x252   :  { %4365 = vmatpush1.bf16.msra.mxu0 %v5901_v10  ;;  %4397 = vmatpush1.bf16.msra.mxu1 %v5911_v13 }
 0x253   :  { %4367 = vmatprep.subr.bf16.mxu0 %v5921_v16  ;;  %4399 = vmatprep.subr.bf16.mxu1 %v5930_v19 }
 0x256   :  { %4369 = vmatpush1.bf16.msra.mxu0 %v5942_v23  ;;  %4401 = vmatpush1.bf16.msra.mxu1 %v5952_v26 }
 0x257   :  { %4371 = vmatprep.subr.bf16.mxu0 %v5962_v29  ;;  %4403 = vmatprep.subr.bf16.mxu1 %v5971_v32 }
 0x25a   :  { %4373 = vmatpush1.bf16.msra.mxu0 %v5983_v36  ;;  %4405 = vmatpush1.bf16.msra.mxu1 %v5993_v40 }
 0x25b   :  { %4375 = vmatprep.subr.bf16.mxu0 %v6003_v44  ;;  %4407 = vmatprep.subr.bf16.mxu1 %v6012_v48 }
 0x25e   :  { %4377 = vmatpush1.bf16.msra.mxu0 %v6024_v54  ;;  %4409 = vmatpush1.bf16.msra.mxu1 %v6034_v58 }
 0x25f   :  { %4379 = vmatprep.subr.bf16.mxu0 %v6044_v62  ;;  %4411 = vmatprep.subr.bf16.mxu1 %v6053_v4 }
 0x262   :  { %4381 = vmatpush1.bf16.msra.mxu0 %v6065_v9  ;;  %4413 = vmatpush1.bf16.msra.mxu1 %v6075_v14 }
 0x263   :  { %4383 = vmatprep.subr.bf16.mxu0 %v6085_v18  ;;  %4415 = vmatprep.subr.bf16.mxu1 %v6094_v22 }
 0x266   :  { %4385 = vmatpush1.bf16.msra.mxu0 %v6100_v25  ;;  %4417 = vmatpush1.bf16.msra.mxu1 %v6104_v27 }
 0x267   :  { %4419 = vmatprep.subr.bf16.mxu0 %v5797_v38  ;;  %4451 = vmatprep.subr.bf16.mxu1 %v5805_v41 }
 0x31c   :  { %v825_v33 = vpop.f32.mrb[4].mxu0  ;;  %v896_v52 = vpop.f32.mrb[4].mxu1 }
 0x31d   :  { %v5214_v55 = vadd.f32 %v825_v33, %v6159_v35  ;;  %v827_v61 = vpop.f32.mrb[5].mxu0  ;;  %v898_v1 = vpop.f32.mrb[5].mxu1  ;;  %v5230_v15 = vadd.f32 %v896_v52, %v6172_v0 }
 0x31e   :  { %v5215_v5 = vadd.f32 %v827_v61, %v6162_v37  ;;  %v5231_v11 = vadd.f32 %v898_v1, %v6166_v57 }
 0x31f   :  { %v3527_v7 = vmul.f32 -1.442695, %v5214_v55 }
 0x320   :  { %v3528_v8 = vmul.f32 -1.442695, %v5215_v5  ;;  %v3529_v12 = vmul.f32 -1.442695, %v5231_v11 }
 0x321   :  { %5357 = vpow2.f32 %v3527_v7 }
 0x322   :  { %5359 = vpow2.f32 %v3528_v8 }
 0x323   :  { %5361 = vpow2.f32 %v3529_v12 }
 0x324   :  { %5363 = vtanh.f32 %v5230_v15 }
 0x32b   :  { %v5358_v17 = vpop.eup %5357 }
 0x32c   :  { %v5360_v20 = vpop.eup %5359  ;;  %v908_v21 = vadd.f32 1.0, %v5358_v17 }
 0x32d   :  { %v914_v24 = vadd.f32 1.0, %v5360_v20  ;;  %v5362_v28 = vpop.eup %5361 }
 0x32e   :  { %5365 = vrcp.f32 %v908_v21  ;;  %v5364_v30 = vpop.eup %5363  ;;  %v921_v49 = vadd.f32 1.0, %v5362_v28 }
 0x32f   :  { %5367 = vrcp.f32 %v914_v24 }
 0x330   :  { %5369 = vrcp.f32 %v921_v49 }
 0x338   :  { %v5366_v39 = vpop.eup %5365 }
 0x339   :  { %v5368_v42 = vpop.eup %5367  ;;  %v925_v46 = vmul.f32 %v5366_v39, %v5364_v30 }
 0x33a   :  { %v924_v33 = vmul.f32 %v5368_v42, %v6221_v45  ;;  %v5370_v52 = vpop.eup %5369 }
 0x33c   :  { %v6267_v55 = vadd.f32 %v925_v46, %v924_v33 }
 0x33e   :  { %5371 = vtanh.f32 %v6267_v55 }
 0x348   :  { %v5372_v61 = vpop.eup %5371 }
 0x349   :  { %v6270_v1 = vmul.f32 %v5372_v61, %v5370_v52 }
 0x34b   :  { %994 = vmatmul.mubr.f32.vlgmr.msra.gmra.mrb[6].mxu0 %v6270_v1  ;;  %1065 = vmatmul.mubr.f32.vlgmr.msra.gmra.mrb[6].mxu1 %v6270_v1 }
 0x34c   :  { %4421 = vmatpush1.bf16.msra.mxu0 %v5822_v47  ;;  %4453 = vmatpush1.bf16.msra.mxu1 %v5831_v50 }
 0x34d   :  { %4423 = vmatprep.subr.bf16.mxu0 %v5840_v53  ;;  %4455 = vmatprep.subr.bf16.mxu1 %v5848_v56 }
 0x34e   :  { %1163 = vmatprep.mubr.f32.mxu0 %v5533_v3  ;;  %1234 = vmatprep.mubr.f32.mxu1 %v5533_v3 }
 0x350   :  { %4425 = vmatpush1.bf16.msra.mxu0 %v5860_v60  ;;  %4457 = vmatpush1.bf16.msra.mxu1 %v5870_v63 }
 0x351   :  { %4427 = vmatprep.subr.bf16.mxu0 %v5880_v2  ;;  %4459 = vmatprep.subr.bf16.mxu1 %v5889_v6 }
 0x354   :  { %4429 = vmatpush1.bf16.msra.mxu0 %v5901_v10  ;;  %4461 = vmatpush1.bf16.msra.mxu1 %v5911_v13 }
 0x355   :  { %4431 = vmatprep.subr.bf16.mxu0 %v5921_v16  ;;  %4463 = vmatprep.subr.bf16.mxu1 %v5930_v19 }
 0x358   :  { %4433 = vmatpush1.bf16.msra.mxu0 %v5942_v23  ;;  %4465 = vmatpush1.bf16.msra.mxu1 %v5952_v26 }
 0x359   :  { %4435 = vmatprep.subr.bf16.mxu0 %v5962_v29  ;;  %4467 = vmatprep.subr.bf16.mxu1 %v5971_v32 }
 0x35c   :  { %4437 = vmatpush1.bf16.msra.mxu0 %v5983_v36  ;;  %4469 = vmatpush1.bf16.msra.mxu1 %v5993_v40 }
 0x35d   :  { %4439 = vmatprep.subr.bf16.mxu0 %v6003_v44  ;;  %4471 = vmatprep.subr.bf16.mxu1 %v6012_v48 }
 0x360   :  { %4441 = vmatpush1.bf16.msra.mxu0 %v6024_v54  ;;  %4473 = vmatpush1.bf16.msra.mxu1 %v6034_v58 }
 0x361   :  { %4443 = vmatprep.subr.bf16.mxu0 %v6044_v62  ;;  %4475 = vmatprep.subr.bf16.mxu1 %v6053_v4 }
 0x364   :  { %4445 = vmatpush1.bf16.msra.mxu0 %v6065_v9  ;;  %4477 = vmatpush1.bf16.msra.mxu1 %v6075_v14 }
 0x365   :  { %4447 = vmatprep.subr.bf16.mxu0 %v6085_v18  ;;  %4479 = vmatprep.subr.bf16.mxu1 %v6094_v22 }
 0x368   :  { %4449 = vmatpush1.bf16.msra.mxu0 %v6100_v25  ;;  %4481 = vmatpush1.bf16.msra.mxu1 %v6104_v27 }
 0x369   :  { %4483 = vmatprep.subr.bf16.mxu0 %v5797_v38  ;;  %4515 = vmatprep.subr.bf16.mxu1 %v5805_v41 }
 0x41e   :  { %v995_v45 = vpop.f32.mrb[6].mxu0  ;;  %v1066_v5 = vpop.f32.mrb[6].mxu1 }
 0x41f   :  { %v5216_v7 = vadd.f32 %v995_v45, %v6159_v35  ;;  %v997_v8 = vpop.f32.mrb[7].mxu0  ;;  %v1068_v11 = vpop.f32.mrb[7].mxu1  ;;  %v5232_v24 = vadd.f32 %v1066_v5, %v6172_v0 }
 0x420   :  { %v5217_v12 = vadd.f32 %v997_v8, %v6162_v37  ;;  %v5233_v20 = vadd.f32 %v1068_v11, %v6166_v57 }
 0x421   :  { %v3530_v15 = vmul.f32 -1.442695, %v5216_v7 }
 0x422   :  { %v3531_v17 = vmul.f32 -1.442695, %v5217_v12  ;;  %v3532_v21 = vmul.f32 -1.442695, %v5233_v20 }
 0x423   :  { %5373 = vpow2.f32 %v3530_v15 }
 0x424   :  { %5375 = vpow2.f32 %v3531_v17 }
 0x425   :  { %5377 = vpow2.f32 %v3532_v21 }
 0x426   :  { %5379 = vtanh.f32 %v5232_v24 }
 0x42d   :  { %v5374_v28 = vpop.eup %5373 }
 0x42e   :  { %v5376_v30 = vpop.eup %5375  ;;  %v1078_v39 = vadd.f32 1.0, %v5374_v28 }
 0x42f   :  { %v1084_v42 = vadd.f32 1.0, %v5376_v30  ;;  %v5378_v46 = vpop.eup %5377 }
 0x430   :  { %5381 = vrcp.f32 %v1078_v39  ;;  %v5380_v49 = vpop.eup %5379  ;;  %v1091_v45 = vadd.f32 1.0, %v5378_v46 }
 0x431   :  { %5383 = vrcp.f32 %v1084_v42 }
 0x432   :  { %5385 = vrcp.f32 %v1091_v45 }
 0x43a   :  { %v5382_v33 = vpop.eup %5381 }
 0x43b   :  { %v5384_v52 = vpop.eup %5383  ;;  %v1095_v61 = vmul.f32 %v5382_v33, %v5380_v49 }
 0x43c   :  { %v1094_v7 = vmul.f32 %v5384_v52, %v6267_v55  ;;  %v5386_v5 = vpop.eup %5385 }
 0x43e   :  { %v6313_v8 = vadd.f32 %v1095_v61, %v1094_v7 }
 0x440   :  { %5387 = vtanh.f32 %v6313_v8 }
 0x44a   :  { %v5388_v11 = vpop.eup %5387 }
 0x44b   :  { %v6316_v12 = vmul.f32 %v5388_v11, %v5386_v5 }
 0x44d   :  { %1164 = vmatmul.mubr.f32.vlgmr.msra.gmra.mrb[8].mxu0 %v6316_v12  ;;  %1235 = vmatmul.mubr.f32.vlgmr.msra.gmra.mrb[8].mxu1 %v6316_v12 }
 0x44e   :  { %4485 = vmatpush1.bf16.msra.mxu0 %v5822_v47  ;;  %4517 = vmatpush1.bf16.msra.mxu1 %v5831_v50 }
 0x44f   :  { %4487 = vmatprep.subr.bf16.mxu0 %v5840_v53  ;;  %4519 = vmatprep.subr.bf16.mxu1 %v5848_v56 }
 0x450   :  { %1333 = vmatprep.mubr.f32.mxu0 %v5533_v3  ;;  %1404 = vmatprep.mubr.f32.mxu1 %v5533_v3 }
 0x452   :  { %4489 = vmatpush1.bf16.msra.mxu0 %v5860_v60  ;;  %4521 = vmatpush1.bf16.msra.mxu1 %v5870_v63 }
 0x453   :  { %4491 = vmatprep.subr.bf16.mxu0 %v5880_v2  ;;  %4523 = vmatprep.subr.bf16.mxu1 %v5889_v6 }
 0x456   :  { %4493 = vmatpush1.bf16.msra.mxu0 %v5901_v10  ;;  %4525 = vmatpush1.bf16.msra.mxu1 %v5911_v13 }
 0x457   :  { %4495 = vmatprep.subr.bf16.mxu0 %v5921_v16  ;;  %4527 = vmatprep.subr.bf16.mxu1 %v5930_v19 }
 0x45a   :  { %4497 = vmatpush1.bf16.msra.mxu0 %v5942_v23  ;;  %4529 = vmatpush1.bf16.msra.mxu1 %v5952_v26 }
 0x45b   :  { %4499 = vmatprep.subr.bf16.mxu0 %v5962_v29  ;;  %4531 = vmatprep.subr.bf16.mxu1 %v5971_v32 }
 0x45e   :  { %4501 = vmatpush1.bf16.msra.mxu0 %v5983_v36  ;;  %4533 = vmatpush1.bf16.msra.mxu1 %v5993_v40 }
 0x45f   :  { %4503 = vmatprep.subr.bf16.mxu0 %v6003_v44  ;;  %4535 = vmatprep.subr.bf16.mxu1 %v6012_v48 }
 0x462   :  { %4505 = vmatpush1.bf16.msra.mxu0 %v6024_v54  ;;  %4537 = vmatpush1.bf16.msra.mxu1 %v6034_v58 }
 0x463   :  { %4507 = vmatprep.subr.bf16.mxu0 %v6044_v62  ;;  %4539 = vmatprep.subr.bf16.mxu1 %v6053_v4 }
 0x466   :  { %4509 = vmatpush1.bf16.msra.mxu0 %v6065_v9  ;;  %4541 = vmatpush1.bf16.msra.mxu1 %v6075_v14 }
 0x467   :  { %4511 = vmatprep.subr.bf16.mxu0 %v6085_v18  ;;  %4543 = vmatprep.subr.bf16.mxu1 %v6094_v22 }
 0x46a   :  { %4513 = vmatpush1.bf16.msra.mxu0 %v6100_v25  ;;  %4545 = vmatpush1.bf16.msra.mxu1 %v6104_v27 }
 0x46b   :  { %4547 = vmatprep.subr.bf16.mxu0 %v5797_v38  ;;  %4579 = vmatprep.subr.bf16.mxu1 %v5805_v41 }
 0x520   :  { %v1165_v55 = vpop.f32.mrb[8].mxu0  ;;  %v1236_v15 = vpop.f32.mrb[8].mxu1 }
 0x521   :  { %v5218_v17 = vadd.f32 %v1165_v55, %v6159_v35  ;;  %v1167_v20 = vpop.f32.mrb[9].mxu0  ;;  %v1238_v21 = vpop.f32.mrb[9].mxu1  ;;  %v5234_v46 = vadd.f32 %v1236_v15, %v6172_v0 }
 0x522   :  { %v5219_v24 = vadd.f32 %v1167_v20, %v6162_v37  ;;  %v5235_v39 = vadd.f32 %v1238_v21, %v6166_v57 }
 0x523   :  { %v3533_v28 = vmul.f32 -1.442695, %v5218_v17 }
 0x524   :  { %v3534_v30 = vmul.f32 -1.442695, %v5219_v24  ;;  %v3535_v42 = vmul.f32 -1.442695, %v5235_v39 }
 0x525   :  { %5389 = vpow2.f32 %v3533_v28 }
 0x526   :  { %5391 = vpow2.f32 %v3534_v30 }
 0x527   :  { %5393 = vpow2.f32 %v3535_v42 }
 0x528   :  { %5395 = vtanh.f32 %v5234_v46 }
 0x52f   :  { %v5390_v49 = vpop.eup %5389 }
 0x530   :  { %v5392_v33 = vpop.eup %5391  ;;  %v1248_v52 = vadd.f32 1.0, %v5390_v49 }
 0x531   :  { %v1254_v61 = vadd.f32 1.0, %v5392_v33  ;;  %v5394_v45 = vpop.eup %5393 }
 0x532   :  { %5397 = vrcp.f32 %v1248_v52  ;;  %v5396_v7 = vpop.eup %5395  ;;  %v1261_v17 = vadd.f32 1.0, %v5394_v45 }
 0x533   :  { %5399 = vrcp.f32 %v1254_v61 }
 0x534   :  { %5401 = vrcp.f32 %v1261_v17 }
 0x53c   :  { %v5398_v5 = vpop.eup %5397 }
 0x53d   :  { %v5400_v11 = vpop.eup %5399  ;;  %v1265_v55 = vmul.f32 %v5398_v5, %v5396_v7 }
 0x53e   :  { %v1264_v20 = vmul.f32 %v5400_v11, %v6313_v8  ;;  %v5402_v15 = vpop.eup %5401 }
 0x540   :  { %v6359_v21 = vadd.f32 %v1265_v55, %v1264_v20 }
 0x542   :  { %5403 = vtanh.f32 %v6359_v21 }
 0x54c   :  { %v5404_v24 = vpop.eup %5403 }
 0x54d   :  { %v6362_v28 = vmul.f32 %v5404_v24, %v5402_v15 }
 0x54f   :  { %1334 = vmatmul.mubr.f32.vlgmr.msra.gmra.mrb[10].mxu0 %v6362_v28  ;;  %1405 = vmatmul.mubr.f32.vlgmr.msra.gmra.mrb[10].mxu1 %v6362_v28 }
 0x550   :  { %4549 = vmatpush1.bf16.msra.mxu0 %v5822_v47  ;;  %4581 = vmatpush1.bf16.msra.mxu1 %v5831_v50 }
 0x551   :  { %4551 = vmatprep.subr.bf16.mxu0 %v5840_v53  ;;  %4583 = vmatprep.subr.bf16.mxu1 %v5848_v56 }
 0x552   :  { %1503 = vmatprep.mubr.f32.mxu0 %v5533_v3  ;;  %1574 = vmatprep.mubr.f32.mxu1 %v5533_v3 }
 0x554   :  { %4553 = vmatpush1.bf16.msra.mxu0 %v5860_v60  ;;  %4585 = vmatpush1.bf16.msra.mxu1 %v5870_v63 }
 0x555   :  { %4555 = vmatprep.subr.bf16.mxu0 %v5880_v2  ;;  %4587 = vmatprep.subr.bf16.mxu1 %v5889_v6 }
 0x558   :  { %4557 = vmatpush1.bf16.msra.mxu0 %v5901_v10  ;;  %4589 = vmatpush1.bf16.msra.mxu1 %v5911_v13 }
 0x559   :  { %4559 = vmatprep.subr.bf16.mxu0 %v5921_v16  ;;  %4591 = vmatprep.subr.bf16.mxu1 %v5930_v19 }
 0x55c   :  { %4561 = vmatpush1.bf16.msra.mxu0 %v5942_v23  ;;  %4593 = vmatpush1.bf16.msra.mxu1 %v5952_v26 }
 0x55d   :  { %4563 = vmatprep.subr.bf16.mxu0 %v5962_v29  ;;  %4595 = vmatprep.subr.bf16.mxu1 %v5971_v32 }
 0x560   :  { %4565 = vmatpush1.bf16.msra.mxu0 %v5983_v36  ;;  %4597 = vmatpush1.bf16.msra.mxu1 %v5993_v40 }
 0x561   :  { %4567 = vmatprep.subr.bf16.mxu0 %v6003_v44  ;;  %4599 = vmatprep.subr.bf16.mxu1 %v6012_v48 }
 0x564   :  { %4569 = vmatpush1.bf16.msra.mxu0 %v6024_v54  ;;  %4601 = vmatpush1.bf16.msra.mxu1 %v6034_v58 }
 0x565   :  { %4571 = vmatprep.subr.bf16.mxu0 %v6044_v62  ;;  %4603 = vmatprep.subr.bf16.mxu1 %v6053_v4 }
 0x568   :  { %4573 = vmatpush1.bf16.msra.mxu0 %v6065_v9  ;;  %4605 = vmatpush1.bf16.msra.mxu1 %v6075_v14 }
 0x569   :  { %4575 = vmatprep.subr.bf16.mxu0 %v6085_v18  ;;  %4607 = vmatprep.subr.bf16.mxu1 %v6094_v22 }
 0x56c   :  { %4577 = vmatpush1.bf16.msra.mxu0 %v6100_v25  ;;  %4609 = vmatpush1.bf16.msra.mxu1 %v6104_v27 }
 0x56d   :  { %4611 = vmatprep.subr.bf16.mxu0 %v5797_v38  ;;  %4643 = vmatprep.subr.bf16.mxu1 %v5805_v41 }
 0x622   :  { %v1335_v8 = vpop.f32.mrb[10].mxu0  ;;  %v1406_v30 = vpop.f32.mrb[10].mxu1 }
 0x623   :  { %v5220_v39 = vadd.f32 %v1335_v8, %v6159_v35  ;;  %v1337_v42 = vpop.f32.mrb[11].mxu0  ;;  %v1408_v46 = vpop.f32.mrb[11].mxu1  ;;  %v5236_v7 = vadd.f32 %v1406_v30, %v6172_v0 }
 0x624   :  { %v5221_v49 = vadd.f32 %v1337_v42, %v6162_v37  ;;  %v5237_v61 = vadd.f32 %v1408_v46, %v6166_v57 }
 0x625   :  { %v3536_v33 = vmul.f32 -1.442695, %v5220_v39 }
 0x626   :  { %v3537_v52 = vmul.f32 -1.442695, %v5221_v49  ;;  %v3538_v45 = vmul.f32 -1.442695, %v5237_v61 }
 0x627   :  { %5405 = vpow2.f32 %v3536_v33  ;;  %v1786_v33 = vld [vmem:[%s7275_s4 + $0x38] sm:$0xff] }
 0x628   :  { %5407 = vpow2.f32 %v3537_v52  ;;  %v1789_v52 = vld [vmem:[%s7275_s4 + $0x50] sm:$0xff] }
 0x629   :  { %5409 = vpow2.f32 %v3538_v45  ;;  %v1787_v45 = vld [vmem:[%s7275_s4 + $0x40] sm:$0xff] }
 0x62a   :  { %5411 = vtanh.f32 %v5236_v7  ;;  %v1790_v7 = vld [vmem:[%s7275_s4 + $0x58] sm:$0xff] }
 0x631   :  { %v5406_v38 = vpop.eup %5405 }
 0x632   :  { %v5408_v5 = vpop.eup %5407  ;;  %v1418_v41 = vadd.f32 1.0, %v5406_v38 }
 0x633   :  { %v1424_v11 = vadd.f32 1.0, %v5408_v5  ;;  %v5410_v55 = vpop.eup %5409 }
 0x634   :  { %5413 = vrcp.f32 %v1418_v41  ;;  %v5412_v17 = vpop.eup %5411  ;;  %v1431_v8 = vadd.f32 1.0, %v5410_v55  ;;  %v1785_v55 = vld [vmem:[%s7275_s4 + $0x30] sm:$0xff] }
 0x635   :  { %5415 = vrcp.f32 %v1424_v11  ;;  %v4678_v11 = vpack.c.bf16 %v1789_v52, %v1786_v33  ;;  %v1819_v33 = vld [vmem:[%s7275_s4 + $0x140] sm:$0xff]  ;;  %v1817_v52 = vld [vmem:[%s7275_s4 + $0x130] sm:$0xff] }
 0x636   :  { %5417 = vrcp.f32 %v1431_v8  ;;  %v1793_v8 = vld [vmem:[%s7275_s4 + $0x70] sm:$0xff] }
 0x63e   :  { %v5414_v20 = vpop.eup %5413 }
 0x63f   :  { %v5416_v15 = vpop.eup %5415  ;;  %v1435_v24 = vmul.f32 %v5414_v20, %v5412_v17  ;;  %v1788_v17 = vld [vmem:[%s7275_s4 + $0x48] sm:$0xff] }
 0x640   :  { %v1434_v39 = vmul.f32 %v5416_v15, %v6359_v21  ;;  %v5418_v30 = vpop.eup %5417  ;;  %v1782_v21 = vld [vmem:[%s7275_s4 + $0x18] sm:$0xff]  ;;  %v1792_v20 = vld [vmem:[%s7275_s4 + $0x68] sm:$0xff]  ;;  %v4710_v15 = vpack.c.bf16 %v1790_v7, %v1787_v45 }
 0x642   :  { %v6405_v42 = vadd.f32 %v1435_v24, %v1434_v39  ;;  %v1795_v24 = vld [vmem:[%s7275_s4 + $0x80] sm:$0xff]  ;;  %v1796_v39 = vld [vmem:[%s7275_s4 + $0x88] sm:$0xff] }
 0x644   :  { %5419 = vtanh.f32 %v6405_v42 }
 0x64e   :  { %v5420_v46 = vpop.eup %5419 }
 0x64f   :  { %v6408_v49 = vmul.f32 %v5420_v46, %v5418_v30  ;;  %v4682_v30 = vpack.c.bf16 %v1795_v24, %v1792_v20  ;;  %v4714_v46 = vpack.c.bf16 %v1796_v39, %v1793_v8  ;;  %v1823_v20 = vld [vmem:[%s7275_s4 + $0x160] sm:$0xff] }
 0x651   :  { %1504 = vmatmul.mubr.f32.vlgmr.msra.gmra.mrb[12].mxu0 %v6408_v49  ;;  %1575 = vmatmul.mubr.f32.vlgmr.msra.gmra.mrb[12].mxu1 %v6408_v49 }
 0x652   :  { %4613 = vmatpush1.bf16.msra.mxu0 %v5822_v47  ;;  %4645 = vmatpush1.bf16.msra.mxu1 %v5831_v50  ;;  %v1780_v47 = vld [vmem:[%s7275_s4 + $0x8] sm:$0xff]  ;;  %v1783_v50 = vld [vmem:[%s7275_s4 + $0x20] sm:$0xff] }
 0x653   :  { %4615 = vmatprep.subr.bf16.mxu0 %v5840_v53  ;;  %4647 = vmatprep.subr.bf16.mxu1 %v5848_v56  ;;  %v1781_v53 = vld [vmem:[%s7275_s4 + $0x10] sm:$0xff]  ;;  %v4674_v56 = vpack.c.bf16 %v1783_v50, %v1780_v47  ;;  %v1791_v47 = vld [vmem:[%s7275_s4 + $0x60] sm:$0xff]  ;;  %v1794_v50 = vld [vmem:[%s7275_s4 + $0x78] sm:$0xff] }
 0x654   :  { %1673 = vmatprep.mubr.f32.mxu0 %v5533_v3  ;;  %1744 = vmatprep.mubr.f32.mxu1 %v5533_v3 }
 0x656   :  { %4617 = vmatpush1.bf16.msra.mxu0 %v5860_v60  ;;  %4649 = vmatpush1.bf16.msra.mxu1 %v5870_v63  ;;  %v1784_v60 = vld [vmem:[%s7275_s4 + $0x28] sm:$0xff] }
 0x657   :  { %4619 = vmatprep.subr.bf16.mxu0 %v5880_v2  ;;  %4651 = vmatprep.subr.bf16.mxu1 %v5889_v6  ;;  %v4706_v63 = vpack.c.bf16 %v1784_v60, %v1781_v53  ;;  %v1798_v53 = vld [vmem:[%s7275_s4 + $0x98] sm:$0xff]  ;;  %v1799_v60 = vld [vmem:[%s7275_s4 + $0xa0] sm:$0xff] }
 0x65a   :  { %4621 = vmatpush1.bf16.msra.mxu0 %v5901_v10  ;;  %4653 = vmatpush1.bf16.msra.mxu1 %v5911_v13 }
 0x65b   :  { %4623 = vmatprep.subr.bf16.mxu0 %v5921_v16  ;;  %4655 = vmatprep.subr.bf16.mxu1 %v5930_v19 }
 0x65e   :  { %4625 = vmatpush1.bf16.msra.mxu0 %v5942_v23  ;;  %4657 = vmatpush1.bf16.msra.mxu1 %v5952_v26 }
 0x65f   :  { %4627 = vmatprep.subr.bf16.mxu0 %v5962_v29  ;;  %4659 = vmatprep.subr.bf16.mxu1 %v5971_v32 }
 0x662   :  { %4629 = vmatpush1.bf16.msra.mxu0 %v5983_v36  ;;  %4661 = vmatpush1.bf16.msra.mxu1 %v5993_v40 }
 0x663   :  { %4631 = vmatprep.subr.bf16.mxu0 %v6003_v44  ;;  %4663 = vmatprep.subr.bf16.mxu1 %v6012_v48 }
 0x666   :  { %4633 = vmatpush1.bf16.msra.mxu0 %v6024_v54  ;;  %4665 = vmatpush1.bf16.msra.mxu1 %v6034_v58 }
 0x667   :  { %4635 = vmatprep.subr.bf16.mxu0 %v6044_v62  ;;  %4667 = vmatprep.subr.bf16.mxu1 %v6053_v4 }
 0x66a   :  { %4637 = vmatpush1.bf16.msra.mxu0 %v6065_v9  ;;  %4669 = vmatpush1.bf16.msra.mxu1 %v6075_v14 }
 0x66b   :  { %4639 = vmatprep.subr.bf16.mxu0 %v6085_v18  ;;  %4671 = vmatprep.subr.bf16.mxu1 %v6094_v22 }
 0x66e   :  { %4641 = vmatpush1.bf16.msra.mxu0 %v6100_v25  ;;  %4673 = vmatpush1.bf16.msra.mxu1 %v6104_v27  ;;  %v1779_v27 = vld [vmem:[%s7275_s4] sm:$0xff] }
 0x66f   :  { %4675 = vmatprep.subr.bf16.mxu0 %v4674_v56  ;;  %4707 = vmatprep.subr.bf16.mxu1 %v4706_v63  ;;  %v4676_v5 = vpack.c.bf16 %v1782_v21, %v1779_v27  ;;  %v1801_v56 = vld [vmem:[%s7275_s4 + $0xb0] sm:$0xff]  ;;  %v1812_v27 = vld [vmem:[%s7275_s4 + $0x108] sm:$0xff] }
 0x670   :  { %v1816_v21 = vld [vmem:[%s7275_s4 + $0x128] sm:$0xff] }
 0x671   :  { %v4698_v7 = vpack.c.bf16 %v1819_v33, %v1816_v21  ;;  %v2116_v21 = vld [vmem:[%s7276_s5 + $0x128] sm:$0xff]  ;;  %v2119_v33 = vld [vmem:[%s7276_s5 + $0x140] sm:$0xff] }
 0x724   :  { %v1505_v2 = vpop.f32.mrb[12].mxu0  ;;  %v1576_v6 = vpop.f32.mrb[12].mxu1 }
 0x725   :  { %v5222_v10 = vadd.f32 %v1505_v2, %v6159_v35  ;;  %v1507_v13 = vpop.f32.mrb[13].mxu0  ;;  %v1578_v16 = vpop.f32.mrb[13].mxu1  ;;  %v5238_v36 = vadd.f32 %v1576_v6, %v6172_v0  ;;  %v4684_v2 = vpack.c.bf16 %v1794_v50, %v1791_v47  ;;  %v4686_v6 = vpack.c.bf16 %v1801_v56, %v1798_v53  ;;  %v2089_v47 = vld [vmem:[%s7276_s5 + $0x50] sm:$0xff]  ;;  %v2088_v56 = vld [vmem:[%s7276_s5 + $0x48] sm:$0xff] }
 0x726   :  { %v5223_v19 = vadd.f32 %v1507_v13, %v6162_v37  ;;  %v5239_v29 = vadd.f32 %v1578_v16, %v6166_v57  ;;  %v1797_v13 = vld [vmem:[%s7275_s4 + $0x90] sm:$0xff]  ;;  %v1800_v16 = vld [vmem:[%s7275_s4 + $0xa8] sm:$0xff] }
 0x727   :  { %v3539_v23 = vmul.f32 -1.442695, %v5222_v10  ;;  %v2085_v53 = vld [vmem:[%s7276_s5 + $0x30] sm:$0xff] }
 0x728   :  { %v3540_v26 = vmul.f32 -1.442695, %v5223_v19  ;;  %v3541_v32 = vmul.f32 -1.442695, %v5239_v29  ;;  %v1804_v19 = vld [vmem:[%s7275_s4 + $0xc8] sm:$0xff] }
 0x729   :  { %5421 = vpow2.f32 %v3539_v23  ;;  %v1807_v23 = vld [vmem:[%s7275_s4 + $0xe0] sm:$0xff]  ;;  %v1808_v29 = vld [vmem:[%s7275_s4 + $0xe8] sm:$0xff] }
 0x72a   :  { %5423 = vpow2.f32 %v3540_v26  ;;  %v1805_v26 = vld [vmem:[%s7275_s4 + $0xd0] sm:$0xff] }
 0x72b   :  { %5425 = vpow2.f32 %v3541_v32  ;;  %v4688_v32 = vpack.c.bf16 %v1800_v16, %v1797_v13  ;;  %v2094_v13 = vld [vmem:[%s7276_s5 + $0x78] sm:$0xff] }
 0x72c   :  { %5427 = vtanh.f32 %v5238_v36  ;;  %v4690_v36 = vpack.c.bf16 %v1807_v23, %v1804_v19  ;;  %v2098_v19 = vld [vmem:[%s7276_s5 + $0x98] sm:$0xff]  ;;  %v2101_v23 = vld [vmem:[%s7276_s5 + $0xb0] sm:$0xff] }
 0x733   :  { %v5422_v40 = vpop.eup %5421 }
 0x734   :  { %v5424_v44 = vpop.eup %5423  ;;  %v1588_v48 = vadd.f32 1.0, %v5422_v40  ;;  %v4722_v40 = vpack.c.bf16 %v1808_v29, %v1805_v26  ;;  %v6682_v26 = vpack.c.bf16 %v2101_v23, %v2098_v19  ;;  %v2097_v29 = vld [vmem:[%s7276_s5 + $0x90] sm:$0xff]  ;;  %v2120_v23 = vld [vmem:[%s7276_s5 + $0x148] sm:$0xff] }
 0x735   :  { %v1594_v54 = vadd.f32 1.0, %v5424_v44  ;;  %v5426_v58 = vpop.eup %5425  ;;  %v1803_v44 = vld [vmem:[%s7275_s4 + $0xc0] sm:$0xff]  ;;  %v2117_v19 = vld [vmem:[%s7276_s5 + $0x130] sm:$0xff] }
 0x736   :  { %5429 = vrcp.f32 %v1588_v48  ;;  %v5428_v62 = vpop.eup %5427  ;;  %v1601_v18 = vadd.f32 1.0, %v5426_v58  ;;  %v1806_v48 = vld [vmem:[%s7275_s4 + $0xd8] sm:$0xff]  ;;  %v1813_v58 = vld [vmem:[%s7275_s4 + $0x110] sm:$0xff] }
 0x737   :  { %5431 = vrcp.f32 %v1594_v54  ;;  %v1810_v54 = vld [vmem:[%s7275_s4 + $0xf8] sm:$0xff] }
 0x738   :  { %5433 = vrcp.f32 %v1601_v18 }
 0x740   :  { %v5430_v4 = vpop.eup %5429 }
 0x741   :  { %v5432_v9 = vpop.eup %5431  ;;  %v1605_v14 = vmul.f32 %v5430_v4, %v5428_v62  ;;  %v1811_v62 = vld [vmem:[%s7275_s4 + $0x100] sm:$0xff]  ;;  %v1814_v4 = vld [vmem:[%s7275_s4 + $0x118] sm:$0xff] }
 0x742   :  { %v1604_v22 = vmul.f32 %v5432_v9, %v6405_v42  ;;  %v5434_v61 = vpop.eup %5433  ;;  %v4680_v42 = vpack.c.bf16 %v1788_v17, %v1785_v55  ;;  %v4692_v9 = vpack.c.bf16 %v1806_v48, %v1803_v44  ;;  %v4726_v18 = vpack.c.bf16 %v1814_v4, %v1811_v62  ;;  %v1822_v55 = vld [vmem:[%s7275_s4 + $0x158] sm:$0xff]  ;;  %v1825_v17 = vld [vmem:[%s7275_s4 + $0x170] sm:$0xff]  ;;  %v2107_v44 = vld [vmem:[%s7276_s5 + $0xe0] sm:$0xff] }
 0x743   :  { %v4702_v8 = vpack.c.bf16 %v1825_v17, %v1822_v55  ;;  %v2110_v4 = vld [vmem:[%s7276_s5 + $0xf8] sm:$0xff] }
 0x744   :  { %v6461_v25 = vadd.f32 %v1605_v14, %v1604_v22  ;;  %v4694_v14 = vpack.c.bf16 %v1813_v58, %v1810_v54  ;;  %v1809_v22 = vld [vmem:[%s7275_s4 + $0xf0] sm:$0xff]  ;;  %v2103_v54 = vld [vmem:[%s7276_s5 + $0xc0] sm:$0xff]  ;;  %v2106_v58 = vld [vmem:[%s7276_s5 + $0xd8] sm:$0xff] }
 0x745   :  { %v4696_v45 = vpack.c.bf16 %v1812_v27, %v1809_v22  ;;  %v6708_v62 = vpack.c.bf16 %v2106_v58, %v2103_v54  ;;  %v2112_v22 = vld [vmem:[%s7276_s5 + $0x108] sm:$0xff]  ;;  %v2122_v17 = vld [vmem:[%s7276_s5 + $0x158] sm:$0xff] }
 0x746   :  { %5435 = vtanh.f32 %v6461_v25 }
 0x750   :  { %v5436_v38 = vpop.eup %5435 }
 0x751   :  { %v6482_v41 = vmul.f32 %v5436_v38, %v5434_v61  ;;  %v1820_v61 = vld [vmem:[%s7275_s4 + $0x148] sm:$0xff] }
 0x752   :  { %v4730_v38 = vpack.c.bf16 %v1820_v61, %v1817_v52  ;;  %v6736_v52 = vpack.c.bf16 %v2119_v33, %v2116_v21  ;;  %v2115_v61 = vld [vmem:[%s7276_s5 + $0x120] sm:$0xff] }
 0x753   :  { %1674 = vmatmul.mubr.f32.vlgmr.msra.gmra.mrb[14].mxu0 %v6482_v41  ;;  %1745 = vmatmul.mubr.f32.vlgmr.msra.gmra.mrb[14].mxu1 %v6482_v41 }
 0x754   :  { %4677 = vmatpush1.bf16.msra.mxu0 %v4676_v5  ;;  %4709 = vmatpush3.bf16.msra.mxu1 %v4706_v63  ;;  %v1802_v63 = vld [vmem:[%s7275_s4 + $0xb8] sm:$0xff]  ;;  %v1815_v5 = vld [vmem:[%s7275_s4 + $0x120] sm:$0xff] }
 0x755   :  { %3771 = vmatprep.mubr.f32.mxu1 %v6178_v43  ;;  %4679 = vmatprep.subr.bf16.mxu0 %v4678_v11  ;;  %v4718_v10 = vpack.c.bf16 %v1802_v63, %v1799_v60  ;;  %v1818_v11 = vld [vmem:[%s7275_s4 + $0x138] sm:$0xff]  ;;  %v6654_v60 = vpack.c.bf16 %v2088_v56, %v2085_v53  ;;  %v2092_v63 = vld [vmem:[%s7276_s5 + $0x68] sm:$0xff]  ;;  %v2105_v53 = vld [vmem:[%s7276_s5 + $0xd0] sm:$0xff] }
 0x756   :  { %4711 = vmatprep.subr.bf16.mxu1 %v4710_v15  ;;  %1908 = vmatprep.mubr.f32.mxu0 %v5533_v3  ;;  %v4700_v24 = vpack.c.bf16 %v1818_v11, %v1815_v5  ;;  %v5534_v5 = vmov 0.0|0.0   ;;  %v2084_v11 = vld [vmem:[%s7276_s5 + $0x28] sm:$0xff] }
 0x757   :  { %v2108_v56 = vld [vmem:[%s7276_s5 + $0xe8] sm:$0xff] }
 0x758   :  { %4681 = vmatpush1.bf16.msra.mxu0 %v4680_v42  ;;  %4713 = vmatpush3.bf16.msra.mxu1 %v4710_v15  ;;  %v1826_v15 = vld [vmem:[%s7275_s4 + $0x178] sm:$0xff]  ;;  %v1821_v42 = vld [vmem:[%s7275_s4 + $0x150] sm:$0xff] }
 0x759   :  { %4683 = vmatprep.subr.bf16.mxu0 %v4682_v30  ;;  %4715 = vmatprep.subr.bf16.mxu1 %v4714_v46  ;;  %v4734_v39 = vpack.c.bf16 %v1826_v15, %v1823_v20  ;;  %v1824_v30 = vld [vmem:[%s7275_s4 + $0x168] sm:$0xff]  ;;  %v2125_v20 = vld [vmem:[%s7276_s5 + $0x170] sm:$0xff] }
 0x75a   :  { %v6764_v15 = vpack.c.bf16 %v2125_v20, %v2122_v17 }
 0x75c   :  { %4685 = vmatpush1.bf16.msra.mxu0 %v4684_v2  ;;  %4717 = vmatpush3.bf16.msra.mxu1 %v4714_v46  ;;  %v4704_v46 = vpack.c.bf16 %v1824_v30, %v1821_v42  ;;  %v2095_v2 = vld [vmem:[%s7276_s5 + $0x80] sm:$0xff]  ;;  %v2090_v30 = vld [vmem:[%s7276_s5 + $0x58] sm:$0xff] }
 0x75d   :  { %4687 = vmatprep.subr.bf16.mxu0 %v4686_v6  ;;  %4719 = vmatprep.subr.bf16.mxu1 %v4718_v10  ;;  %v6664_v6 = vpack.c.bf16 %v2095_v2, %v2092_v63  ;;  %v2087_v42 = vld [vmem:[%s7276_s5 + $0x40] sm:$0xff]  ;;  %v6813_v63 = vpack.c.bf16 %v2108_v56, %v2105_v53 }
 0x75e   :  { %v2111_v2 = vld [vmem:[%s7276_s5 + $0x100] sm:$0xff] }
 0x760   :  { %4689 = vmatpush1.bf16.msra.mxu0 %v4688_v32  ;;  %4721 = vmatpush3.bf16.msra.mxu1 %v4718_v10  ;;  %v2091_v10 = vld [vmem:[%s7276_s5 + $0x60] sm:$0xff]  ;;  %v2100_v32 = vld [vmem:[%s7276_s5 + $0xa8] sm:$0xff] }
 0x761   :  { %4691 = vmatprep.subr.bf16.mxu0 %v4690_v36  ;;  %4723 = vmatprep.subr.bf16.mxu1 %v4722_v40  ;;  %v6672_v16 = vpack.c.bf16 %v2094_v13, %v2091_v10  ;;  %v6690_v36 = vpack.c.bf16 %v2100_v32, %v2097_v29  ;;  %v2114_v10 = vld [vmem:[%s7276_s5 + $0x118] sm:$0xff]  ;;  %v6833_v29 = vpack.c.bf16 %v2120_v23, %v2117_v19  ;;  %v2123_v32 = vld [vmem:[%s7276_s5 + $0x160] sm:$0xff] }
 0x762   :  { %v6823_v13 = vpack.c.bf16 %v2114_v10, %v2111_v2 }
 0x764   :  { %4693 = vmatpush1.bf16.msra.mxu0 %v4692_v9  ;;  %4725 = vmatpush3.bf16.msra.mxu1 %v4722_v40  ;;  %v2104_v40 = vld [vmem:[%s7276_s5 + $0xc8] sm:$0xff]  ;;  %v2113_v9 = vld [vmem:[%s7276_s5 + $0x110] sm:$0xff] }
 0x765   :  { %4695 = vmatprep.subr.bf16.mxu0 %v4694_v14  ;;  %4727 = vmatprep.subr.bf16.mxu1 %v4726_v18  ;;  %v6700_v48 = vpack.c.bf16 %v2107_v44, %v2104_v40  ;;  %v6718_v14 = vpack.c.bf16 %v2113_v9, %v2110_v4  ;;  %v2126_v40 = vld [vmem:[%s7276_s5 + $0x178] sm:$0xff] }
 0x766   :  { %v6843_v44 = vpack.c.bf16 %v2126_v40, %v2123_v32  ;;  %v1827_v32 = vld [vmem:[%s7278_s6] sm:$0x7] }
 0x767   :  { %v1832_v40 = vrot.slane %v1827_v32, %v6151_v31 }
 0x768   :  { %4697 = vmatpush1.bf16.msra.mxu0 %v4696_v45  ;;  %4729 = vmatpush3.bf16.msra.mxu1 %v4726_v18  ;;  %v2109_v18 = vld [vmem:[%s7276_s5 + $0xf0] sm:$0xff]  ;;  %v2118_v45 = vld [vmem:[%s7276_s5 + $0x138] sm:$0xff] }
 0x769   :  { %4699 = vmatprep.subr.bf16.mxu0 %v4698_v7  ;;  %4731 = vmatprep.subr.bf16.mxu1 %v4730_v38  ;;  %v6726_v27 = vpack.c.bf16 %v2112_v22, %v2109_v18  ;;  %v2081_v7 = vld [vmem:[%s7276_s5 + $0x10] sm:$0xff] }
 0x76a   :  { %v6754_v55 = vpack.c.bf16 %v2084_v11, %v2081_v7 }
 0x76c   :  { %4701 = vmatpush1.bf16.msra.mxu0 %v4700_v24  ;;  %4733 = vmatpush3.bf16.msra.mxu1 %v4730_v38  ;;  %v6747_v38 = vpack.c.bf16 %v2118_v45, %v2115_v61  ;;  %v2121_v24 = vld [vmem:[%s7276_s5 + $0x150] sm:$0xff] }
 0x76d   :  { %4703 = vmatprep.subr.bf16.mxu0 %v4702_v8  ;;  %4735 = vmatprep.subr.bf16.mxu1 %v4734_v39  ;;  %v2124_v8 = vld [vmem:[%s7276_s5 + $0x168] sm:$0xff] }
 0x770   :  { %4705 = vmatpush1.bf16.msra.mxu0 %v4704_v46  ;;  %4737 = vmatpush3.bf16.msra.mxu1 %v4734_v39  ;;  %v6772_v39 = vpack.c.bf16 %v2124_v8, %v2121_v24  ;;  %v6782_v46 = vpack.c.bf16 %v2090_v30, %v2087_v42 }
 0x771   :  { %4770 = vmatprep.subr.bf16.mxu1 %v5534_v5 }
 0x773   :  { %1909 = vmatmul.mubr.f32.vlgmr.msra.gmra.mrb[16].mxu0 %v6178_v43  ;;  %3772 = vmatmul.mubr.f32.vlgmr.msra.gmra.mrb[16].mxu1 %v6224_v51  ;;  %v2080_v43 = vld [vmem:[%s7276_s5 + $0x8] sm:$0xff] }
 0x774   :  { %3774 = vmatprep.mubr.f32.mxu1 %v6270_v1  ;;  %1914 = vmatprep.mubr.f32.mxu0 %v5533_v3 }
 0x775   :  { %4772 = vmatpush3.bf16.msra.mxu1 %v6754_v55 }
 0x776   :  { %4773 = vmatprep.subr.bf16.mxu1 %v5534_v5 }
 0x777   :  { %1915 = vmatmul.mubr.f32.gmra.mrb[18].mxu0 %v6224_v51  ;;  %3775 = vmatmul.mubr.f32.gmra.mrb[18].mxu1 %v6316_v12  ;;  %v2083_v51 = vld [vmem:[%s7276_s5 + $0x20] sm:$0xff] }
 0x778   :  { %3777 = vmatprep.mubr.f32.mxu1 %v6362_v28  ;;  %1920 = vmatprep.mubr.f32.mxu0 %v5533_v3 }
 0x779   :  { %4775 = vmatpush3.bf16.msra.mxu1 %v6782_v46 }
 0x77a   :  { %4776 = vmatprep.subr.bf16.mxu1 %v5534_v5 }
 0x77b   :  { %1921 = vmatmul.mubr.f32.gmra.mrb[20].mxu0 %v6270_v1  ;;  %3778 = vmatmul.mubr.f32.gmra.mrb[20].mxu1 %v6408_v49  ;;  %v6628_v1 = vpack.c.bf16 %v2083_v51, %v2080_v43  ;;  %v2093_v43 = vld [vmem:[%s7276_s5 + $0x70] sm:$0xff]  ;;  %v2096_v51 = vld [vmem:[%s7276_s5 + $0x88] sm:$0xff] }
 0x77c   :  { %3780 = vmatprep.mubr.f32.mxu1 %v6482_v41  ;;  %1926 = vmatprep.mubr.f32.mxu0 %v5533_v3 }
 0x77d   :  { %4739 = vmatprep.subr.bf16.mxu0 %v6628_v1 }
 0x77f   :  { %1927 = vmatmul.mubr.f32.gmra.mrb[22].mxu0 %v6316_v12  ;;  %v2079_v12 = vld [vmem:[%s7276_s5] sm:$0xff] }
 0x780   :  { %1932 = vmatprep.mubr.f32.mxu0 %v5533_v3 }
 0x783   :  { %1933 = vmatmul.mubr.f32.gmra.mrb[24].mxu0 %v6362_v28  ;;  %v2082_v28 = vld [vmem:[%s7276_s5 + $0x18] sm:$0xff] }
 0x784   :  { %1938 = vmatprep.mubr.f32.mxu0 %v5533_v3 }
 0x787   :  { %1939 = vmatmul.mubr.f32.gmra.mrb[26].mxu0 %v6408_v49  ;;  %v6636_v49 = vpack.c.bf16 %v2082_v28, %v2079_v12  ;;  %v2099_v12 = vld [vmem:[%s7276_s5 + $0xa0] sm:$0xff]  ;;  %v6797_v28 = vpack.c.bf16 %v2096_v51, %v2093_v43 }
 0x788   :  { %1944 = vmatprep.mubr.f32.mxu0 %v5533_v3 }
 0x789   :  { %4741 = vmatpush1.bf16.msra.mxu0 %v6636_v49  ;;  %4778 = vmatpush3.bf16.msra.mxu1 %v6797_v28 }
 0x78a   :  { %4779 = vmatprep.subr.bf16.mxu1 %v5534_v5 }
 0x78b   :  { %1945 = vmatmul.mubr.f32.gmra.mrb[28].mxu0 %v6482_v41  ;;  %v2086_v41 = vld [vmem:[%s7276_s5 + $0x38] sm:$0xff] }
 0x78c   :  { %1950 = vmatprep.mubr.f32.mxu0 %v5533_v3  ;;  %v6646_v50 = vpack.c.bf16 %v2089_v47, %v2086_v41  ;;  %v2102_v41 = vld [vmem:[%s7276_s5 + $0xb8] sm:$0xff] }
 0x78d   :  { %v6803_v47 = vpack.c.bf16 %v2102_v41, %v2099_v12 }
 0x78e   :  { %4743 = vmatprep.subr.bf16.mxu0 %v6646_v50 }
 0x78f   :  { %4745 = vmatpush1.bf16.msra.mxu0 %v6654_v60  ;;  %4781 = vmatpush3.bf16.msra.mxu1 %v6803_v47 }
 0x790   :  { %4747 = vmatprep.subr.bf16.mxu0 %v6664_v6  ;;  %4782 = vmatprep.subr.bf16.mxu1 %v5534_v5 }
 0x793   :  { %4749 = vmatpush1.bf16.msra.mxu0 %v6672_v16  ;;  %4784 = vmatpush3.bf16.msra.mxu1 %v6813_v63 }
 0x794   :  { %4751 = vmatprep.subr.bf16.mxu0 %v6682_v26  ;;  %4785 = vmatprep.subr.bf16.mxu1 %v5534_v5 }
 0x797   :  { %4753 = vmatpush1.bf16.msra.mxu0 %v6690_v36  ;;  %4787 = vmatpush3.bf16.msra.mxu1 %v6823_v13 }
 0x798   :  { %4755 = vmatprep.subr.bf16.mxu0 %v6700_v48  ;;  %4788 = vmatprep.subr.bf16.mxu1 %v5534_v5 }
 0x79b   :  { %4757 = vmatpush1.bf16.msra.mxu0 %v6708_v62  ;;  %4790 = vmatpush3.bf16.msra.mxu1 %v6833_v29 }
 0x79c   :  { %4759 = vmatprep.subr.bf16.mxu0 %v6718_v14  ;;  %4791 = vmatprep.subr.bf16.mxu1 %v5534_v5 }
 0x79f   :  { %4761 = vmatpush1.bf16.msra.mxu0 %v6726_v27  ;;  %4793 = vmatpush3.bf16.msra.mxu1 %v6843_v44 }
 0x7a0   :  { %4763 = vmatprep.subr.bf16.mxu0 %v6736_v52  ;;  %4826 = vmatprep.subr.bf16.mxu1 %v5534_v5 }
 0x7a3   :  { %4765 = vmatpush1.bf16.msra.mxu0 %v6747_v38 }
 0x7a4   :  { %4767 = vmatprep.subr.bf16.mxu0 %v6764_v15 }
 0x7a7   :  { %4769 = vmatpush1.bf16.msra.mxu0 %v6772_v39 }
 0x7a8   :  { %4795 = vmatprep.subr.bf16.mxu0 %v6628_v1 }
 0x826   :  { %v1675_v54 = vpop.f32.mrb[14].mxu0  ;;  %v1746_v58 = vpop.f32.mrb[14].mxu1 }
 0x827   :  { %v5224_v4 = vadd.f32 %v1675_v54, %v6159_v35  ;;  %v1677_v9 = vpop.f32.mrb[15].mxu0  ;;  %v1748_v18 = vpop.f32.mrb[15].mxu1  ;;  %v5240_v7 = vadd.f32 %v1746_v58, %v6172_v0 }
 0x828   :  { %v5225_v22 = vadd.f32 %v1677_v9, %v6162_v37  ;;  %v5241_v61 = vadd.f32 %v1748_v18, %v6166_v57 }
 0x829   :  { %v3542_v21 = vmul.f32 -1.442695, %v5224_v4  ;;  %v1836_v4 = vrot.slane %v1827_v32, %v6156_v34 }
 0x82a   :  { %v3543_v33 = vmul.f32 -1.442695, %v5225_v22  ;;  %v3544_v45 = vmul.f32 -1.442695, %v5241_v61 }
 0x82b   :  { %5437 = vpow2.f32 %v3542_v21 }
 0x82c   :  { %5439 = vpow2.f32 %v3543_v33 }
 0x82d   :  { %5441 = vpow2.f32 %v3544_v45 }
 0x82e   :  { %5443 = vtanh.f32 %v5240_v7 }
 0x835   :  { %v5438_v11 = vpop.eup %5437 }
 0x836   :  { %v5440_v17 = vpop.eup %5439  ;;  %v1758_v20 = vadd.f32 1.0, %v5438_v11 }
 0x837   :  { %v1764_v24 = vadd.f32 1.0, %v5440_v17  ;;  %v5442_v35 = vpop.eup %5441 }
 0x838   :  { %5445 = vrcp.f32 %v1758_v20  ;;  %v5444_v8 = vpop.eup %5443  ;;  %v1771_v43 = vadd.f32 1.0, %v5442_v35 }
 0x839   :  { %5447 = vrcp.f32 %v1764_v24 }
 0x83a   :  { %5449 = vrcp.f32 %v1771_v43 }
 0x842   :  { %v5446_v37 = vpop.eup %5445 }
 0x843   :  { %v5448_v42 = vpop.eup %5447  ;;  %v1775_v30 = vmul.f32 %v5446_v37, %v5444_v8  ;;  %v6929_v37 = vrot.slane %v1827_v32, %v6168_v59 }
 0x844   :  { %v1774_v51 = vmul.f32 %v5448_v42, %v6461_v25  ;;  %v5450_v10 = vpop.eup %5449  ;;  %v2062_v25 = vld [vmem:[%s7277_s7] sm:$0x7] }
 0x845   :  { %v2067_v54 = vrot.slane %v2062_v25, %v6151_v31  ;;  %v2071_v9 = vrot.slane %v2062_v25, %v6156_v34  ;;  %v6926_v35 = vrot.slane %v2062_v25, %v6168_v59 }
 0x846   :  { %v6853_v57 = vpop.f32.mrb[16].mxu1  ;;  %v1776_v12 = vadd.f32 %v1775_v30, %v1774_v51 }
 0x847   :  { %v6855_v0 = vpop.f32.mrb[17].mxu1  ;;  %v6919_v22 = vadd.f32 %v2067_v54, %v1832_v40  ;;  %v6921_v33 = vadd.f32 %v2071_v9, %v1836_v4 }
 0x848   :  { %5451 = vtanh.f32 %v1776_v12  ;;  %v2024_v51 = vadd.f32 %v6855_v0, %v6929_v37 }
 0x84a   :  { %v6857_v41 = vpop.f32.mrb[18].mxu1 }
 0x84b   :  { %v6859_v53 = vpop.f32.mrb[19].mxu1 }
 0x84e   :  { %v6861_v56 = vpop.f32.mrb[20].mxu1 }
 0x84f   :  { %v6863_v2 = vpop.f32.mrb[21].mxu1 }
 0x852   :  { %v5452_v19 = vpop.eup %5451 }
 0x853   :  { %v1778_v23 = vmul.f32 %v5452_v19, %v5450_v10 }
 0x855   :  { %1951 = vmatmul.mubr.f32.gmra.mrb[30].mxu0 %v1778_v23  ;;  %3781 = vmatmul.mubr.f32.gmra.mrb[22].mxu1 %v1778_v23 }
 0x856   :  { %2191 = vmatprep.mubr.f32.mxu0 %v5533_v3  ;;  %3815 = vmatprep.mubr.msk.f32.mxu1 %vm5535_vm0, %v5533_v3 }
 0x859   :  { %2192 = vmatmul.mubr.f32.vlgmr.msra.gmra.mrb[16].mxu0 %v5533_v3  ;;  %3816 = vmatmul.mubr.f32.vlgmr.msra.gmra.mrb[24].mxu1 %v5533_v3 }
 0x85a   :  { %4797 = vmatpush1.bf16.msra.mxu0 %v6636_v49  ;;  %4828 = vmatpush3.bf16.msra.mxu1 %v6754_v55 }
 0x85b   :  { %4799 = vmatprep.subr.bf16.mxu0 %v6646_v50  ;;  %4829 = vmatprep.subr.bf16.mxu1 %v5534_v5 }
 0x85c   :  { %2353 = vmatprep.mubr.f32.mxu0 %v5533_v3  ;;  %3850 = vmatprep.mubr.msk.f32.mxu1 %vm5535_vm0, %v5533_v3 }
 0x85e   :  { %4801 = vmatpush1.bf16.msra.mxu0 %v6654_v60  ;;  %4831 = vmatpush3.bf16.msra.mxu1 %v6782_v46 }
 0x85f   :  { %4803 = vmatprep.subr.bf16.mxu0 %v6664_v6  ;;  %4832 = vmatprep.subr.bf16.mxu1 %v5534_v5 }
 0x862   :  { %4805 = vmatpush1.bf16.msra.mxu0 %v6672_v16  ;;  %4834 = vmatpush3.bf16.msra.mxu1 %v6797_v28 }
 0x863   :  { %4807 = vmatprep.subr.bf16.mxu0 %v6682_v26  ;;  %4835 = vmatprep.subr.bf16.mxu1 %v5534_v5 }
 0x866   :  { %4809 = vmatpush1.bf16.msra.mxu0 %v6690_v36  ;;  %4837 = vmatpush3.bf16.msra.mxu1 %v6803_v47 }
 0x867   :  { %4811 = vmatprep.subr.bf16.mxu0 %v6700_v48  ;;  %4838 = vmatprep.subr.bf16.mxu1 %v5534_v5 }
 0x86a   :  { %4813 = vmatpush1.bf16.msra.mxu0 %v6708_v62  ;;  %4840 = vmatpush3.bf16.msra.mxu1 %v6813_v63 }
 0x86b   :  { %4815 = vmatprep.subr.bf16.mxu0 %v6718_v14  ;;  %4841 = vmatprep.subr.bf16.mxu1 %v5534_v5 }
 0x86e   :  { %4817 = vmatpush1.bf16.msra.mxu0 %v6726_v27  ;;  %4843 = vmatpush3.bf16.msra.mxu1 %v6823_v13 }
 0x86f   :  { %4819 = vmatprep.subr.bf16.mxu0 %v6736_v52  ;;  %4844 = vmatprep.subr.bf16.mxu1 %v5534_v5 }
 0x872   :  { %4821 = vmatpush1.bf16.msra.mxu0 %v6747_v38  ;;  %4846 = vmatpush3.bf16.msra.mxu1 %v6833_v29 }
 0x873   :  { %4823 = vmatprep.subr.bf16.mxu0 %v6764_v15  ;;  %4847 = vmatprep.subr.bf16.mxu1 %v5534_v5 }
 0x876   :  { %4825 = vmatpush1.bf16.msra.mxu0 %v6772_v39  ;;  %4849 = vmatpush3.bf16.msra.mxu1 %v6843_v44 }
 0x877   :  { %4851 = vmatprep.subr.bf16.mxu0 %v6628_v1  ;;  %4882 = vmatprep.subr.bf16.mxu1 %v5534_v5 }
 0x928   :  { %v6913_v58 = vpop.f32.mrb[22].mxu1 }
 0x929   :  { %v6917_v18 = vpop.f32.mrb[23].mxu1 }
 0x92c   :  { %v2193_v21 = vpop.f32.mrb[16].mxu0  ;;  %v2264_v61 = vpop.f32.mrb[24].mxu1 }
 0x92d   :  { %v5243_v45 = vadd.f32 %v6919_v22, %v2193_v21  ;;  %v2195_v7 = vpop.f32.mrb[17].mxu0  ;;  %v3817_v11 = vpop.f32.mrb[25].mxu1  ;;  %v2265_v30 = vadd.f32 %v2264_v61, %v6926_v35 }
 0x92e   :  { %v5245_v31 = vadd.f32 %v6921_v33, %v2195_v7 }
 0x92f   :  { %v3545_v17 = vmul.f32 -1.442695, %v5243_v45 }
 0x930   :  { %v3546_v20 = vmul.f32 -1.442695, %v5245_v31 }
 0x931   :  { %5453 = vpow2.f32 %v3545_v17 }
 0x932   :  { %5455 = vpow2.f32 %v3546_v20 }
 0x93b   :  { %v5454_v24 = vpop.eup %5453 }
 0x93c   :  { %v2272_v34 = vadd.f32 1.0, %v5454_v24  ;;  %v5456_v8 = vpop.eup %5455 }
 0x93d   :  { %v2279_v42 = vadd.f32 1.0, %v5456_v8  ;;  %v2029_v8 = vadd.f32 %v6853_v57, %v6929_v37 }
 0x93e   :  { %5457 = vrcp.f32 %v2272_v34 }
 0x93f   :  { %5459 = vrcp.f32 %v2279_v42 }
 0x948   :  { %v5458_v43 = vpop.eup %5457 }
 0x949   :  { %v2282_v12 = vmul.f32 %v5458_v43, %v2265_v30  ;;  %v5460_v19 = vpop.eup %5459 }
 0x94a   :  { %v2285_v23 = vsub.f32 1.0, %v5460_v19  ;;  %v2287_v54 = vmul.f32 0.0, %v5460_v19 }
 0x94b   :  { %v2283_v10 = vadd.f32 %v2282_v12, %v2024_v51 }
 0x94d   :  { %5461 = vtanh.f32 %v2283_v10 }
 0x957   :  { %v5462_v40 = vpop.eup %5461 }
 0x958   :  { %v2286_v25 = vmul.f32 %v5462_v40, %v2285_v23 }
 0x95a   :  { %v6934_v4 = vadd.f32 %v2287_v54, %v2286_v25 }
 0x95c   :  { %2354 = vmatmul.mubr.f32.vlgmr.msra.gmra.mrb[18].mxu0 %v6934_v4  ;;  %3851 = vmatmul.mubr.f32.vlgmr.msra.gmra.mrb[26].mxu1 %v6934_v4 }
 0x95d   :  { %4853 = vmatpush1.bf16.msra.mxu0 %v6636_v49  ;;  %4884 = vmatpush3.bf16.msra.mxu1 %v6754_v55 }
 0x95e   :  { %4855 = vmatprep.subr.bf16.mxu0 %v6646_v50  ;;  %4885 = vmatprep.subr.bf16.mxu1 %v5534_v5 }
 0x95f   :  { %2515 = vmatprep.mubr.f32.mxu0 %v5533_v3  ;;  %3885 = vmatprep.mubr.msk.f32.mxu1 %vm5535_vm0, %v5533_v3 }
 0x961   :  { %4857 = vmatpush1.bf16.msra.mxu0 %v6654_v60  ;;  %4887 = vmatpush3.bf16.msra.mxu1 %v6782_v46 }
 0x962   :  { %4859 = vmatprep.subr.bf16.mxu0 %v6664_v6  ;;  %4888 = vmatprep.subr.bf16.mxu1 %v5534_v5 }
 0x965   :  { %4861 = vmatpush1.bf16.msra.mxu0 %v6672_v16  ;;  %4890 = vmatpush3.bf16.msra.mxu1 %v6797_v28 }
 0x966   :  { %4863 = vmatprep.subr.bf16.mxu0 %v6682_v26  ;;  %4891 = vmatprep.subr.bf16.mxu1 %v5534_v5 }
 0x969   :  { %4865 = vmatpush1.bf16.msra.mxu0 %v6690_v36  ;;  %4893 = vmatpush3.bf16.msra.mxu1 %v6803_v47 }
 0x96a   :  { %4867 = vmatprep.subr.bf16.mxu0 %v6700_v48  ;;  %4894 = vmatprep.subr.bf16.mxu1 %v5534_v5 }
 0x96d   :  { %4869 = vmatpush1.bf16.msra.mxu0 %v6708_v62  ;;  %4896 = vmatpush3.bf16.msra.mxu1 %v6813_v63 }
 0x96e   :  { %4871 = vmatprep.subr.bf16.mxu0 %v6718_v14  ;;  %4897 = vmatprep.subr.bf16.mxu1 %v5534_v5 }
 0x971   :  { %4873 = vmatpush1.bf16.msra.mxu0 %v6726_v27  ;;  %4899 = vmatpush3.bf16.msra.mxu1 %v6823_v13 }
 0x972   :  { %4875 = vmatprep.subr.bf16.mxu0 %v6736_v52  ;;  %4900 = vmatprep.subr.bf16.mxu1 %v5534_v5 }
 0x975   :  { %4877 = vmatpush1.bf16.msra.mxu0 %v6747_v38  ;;  %4902 = vmatpush3.bf16.msra.mxu1 %v6833_v29 }
 0x976   :  { %4879 = vmatprep.subr.bf16.mxu0 %v6764_v15  ;;  %4903 = vmatprep.subr.bf16.mxu1 %v5534_v5 }
 0x979   :  { %4881 = vmatpush1.bf16.msra.mxu0 %v6772_v39  ;;  %4905 = vmatpush3.bf16.msra.mxu1 %v6843_v44 }
 0x97a   :  { %4907 = vmatprep.subr.bf16.mxu0 %v6628_v1  ;;  %4938 = vmatprep.subr.bf16.mxu1 %v5534_v5 }
 0xa2f   :  { %v2355_v59 = vpop.f32.mrb[18].mxu0  ;;  %v2426_v0 = vpop.f32.mrb[26].mxu1 }
 0xa30   :  { %v5247_v32 = vadd.f32 %v6919_v22, %v2355_v59  ;;  %v2357_v9 = vpop.f32.mrb[19].mxu0  ;;  %v3852_v21 = vpop.f32.mrb[27].mxu1  ;;  %v2427_v24 = vadd.f32 %v2426_v0, %v6926_v35 }
 0xa31   :  { %v5249_v45 = vadd.f32 %v6921_v33, %v2357_v9 }
 0xa32   :  { %v3547_v61 = vmul.f32 -1.442695, %v5247_v32 }
 0xa33   :  { %v3548_v7 = vmul.f32 -1.442695, %v5249_v45 }
 0xa34   :  { %5463 = vpow2.f32 %v3547_v61 }
 0xa35   :  { %5465 = vpow2.f32 %v3548_v7 }
 0xa3e   :  { %v5464_v11 = vpop.eup %5463 }
 0xa3f   :  { %v2434_v17 = vadd.f32 1.0, %v5464_v11  ;;  %v5466_v31 = vpop.eup %5465 }
 0xa40   :  { %v2441_v20 = vadd.f32 1.0, %v5466_v31 }
 0xa41   :  { %5467 = vrcp.f32 %v2434_v17  ;;  %v2034_v17 = vadd.f32 %v6859_v53, %v6929_v37 }
 0xa42   :  { %5469 = vrcp.f32 %v2441_v20 }
 0xa4b   :  { %v5468_v34 = vpop.eup %5467 }
 0xa4c   :  { %v2444_v42 = vmul.f32 %v5468_v34, %v2427_v24  ;;  %v5470_v43 = vpop.eup %5469 }
 0xa4d   :  { %v2447_v51 = vsub.f32 1.0, %v5470_v43  ;;  %v2449_v19 = vmul.f32 %v5470_v43, %v6934_v4 }
 0xa4e   :  { %v2445_v30 = vadd.f32 %v2444_v42, %v2029_v8 }
 0xa50   :  { %5471 = vtanh.f32 %v2445_v30 }
 0xa5a   :  { %v5472_v12 = vpop.eup %5471 }
 0xa5b   :  { %v2448_v10 = vmul.f32 %v5472_v12, %v2447_v51 }
 0xa5d   :  { %v6979_v23 = vadd.f32 %v2449_v19, %v2448_v10 }
 0xa5f   :  { %2516 = vmatmul.mubr.f32.vlgmr.msra.gmra.mrb[20].mxu0 %v6979_v23  ;;  %3886 = vmatmul.mubr.f32.vlgmr.msra.gmra.mrb[28].mxu1 %v6979_v23 }
 0xa60   :  { %4909 = vmatpush1.bf16.msra.mxu0 %v6636_v49  ;;  %4940 = vmatpush3.bf16.msra.mxu1 %v6754_v55 }
 0xa61   :  { %4911 = vmatprep.subr.bf16.mxu0 %v6646_v50  ;;  %4941 = vmatprep.subr.bf16.mxu1 %v5534_v5 }
 0xa62   :  { %2677 = vmatprep.mubr.f32.mxu0 %v5533_v3  ;;  %3920 = vmatprep.mubr.msk.f32.mxu1 %vm5535_vm0, %v5533_v3 }
 0xa64   :  { %4913 = vmatpush1.bf16.msra.mxu0 %v6654_v60  ;;  %4943 = vmatpush3.bf16.msra.mxu1 %v6782_v46 }
 0xa65   :  { %4915 = vmatprep.subr.bf16.mxu0 %v6664_v6  ;;  %4944 = vmatprep.subr.bf16.mxu1 %v5534_v5 }
 0xa68   :  { %4917 = vmatpush1.bf16.msra.mxu0 %v6672_v16  ;;  %4946 = vmatpush3.bf16.msra.mxu1 %v6797_v28 }
 0xa69   :  { %4919 = vmatprep.subr.bf16.mxu0 %v6682_v26  ;;  %4947 = vmatprep.subr.bf16.mxu1 %v5534_v5 }
 0xa6c   :  { %4921 = vmatpush1.bf16.msra.mxu0 %v6690_v36  ;;  %4949 = vmatpush3.bf16.msra.mxu1 %v6803_v47 }
 0xa6d   :  { %4923 = vmatprep.subr.bf16.mxu0 %v6700_v48  ;;  %4950 = vmatprep.subr.bf16.mxu1 %v5534_v5 }
 0xa70   :  { %4925 = vmatpush1.bf16.msra.mxu0 %v6708_v62  ;;  %4952 = vmatpush3.bf16.msra.mxu1 %v6813_v63 }
 0xa71   :  { %4927 = vmatprep.subr.bf16.mxu0 %v6718_v14  ;;  %4953 = vmatprep.subr.bf16.mxu1 %v5534_v5 }
 0xa74   :  { %4929 = vmatpush1.bf16.msra.mxu0 %v6726_v27  ;;  %4955 = vmatpush3.bf16.msra.mxu1 %v6823_v13 }
 0xa75   :  { %4931 = vmatprep.subr.bf16.mxu0 %v6736_v52  ;;  %4956 = vmatprep.subr.bf16.mxu1 %v5534_v5 }
 0xa78   :  { %4933 = vmatpush1.bf16.msra.mxu0 %v6747_v38  ;;  %4958 = vmatpush3.bf16.msra.mxu1 %v6833_v29 }
 0xa79   :  { %4935 = vmatprep.subr.bf16.mxu0 %v6764_v15  ;;  %4959 = vmatprep.subr.bf16.mxu1 %v5534_v5 }
 0xa7c   :  { %4937 = vmatpush1.bf16.msra.mxu0 %v6772_v39  ;;  %4961 = vmatpush3.bf16.msra.mxu1 %v6843_v44 }
 0xa7d   :  { %4963 = vmatprep.subr.bf16.mxu0 %v6628_v1  ;;  %4994 = vmatprep.subr.bf16.mxu1 %v5534_v5 }
 0xb32   :  { %v2517_v57 = vpop.f32.mrb[20].mxu0  ;;  %v2588_v40 = vpop.f32.mrb[28].mxu1 }
 0xb33   :  { %v5251_v25 = vadd.f32 %v6919_v22, %v2517_v57  ;;  %v2519_v54 = vpop.f32.mrb[21].mxu0  ;;  %v3887_v4 = vpop.f32.mrb[29].mxu1  ;;  %v2589_v7 = vadd.f32 %v2588_v40, %v6926_v35 }
 0xb34   :  { %v5253_v0 = vadd.f32 %v6921_v33, %v2519_v54 }
 0xb35   :  { %v3549_v59 = vmul.f32 -1.442695, %v5251_v25 }
 0xb36   :  { %v3550_v32 = vmul.f32 -1.442695, %v5253_v0 }
 0xb37   :  { %5473 = vpow2.f32 %v3549_v59 }
 0xb38   :  { %5475 = vpow2.f32 %v3550_v32 }
 0xb41   :  { %v5474_v9 = vpop.eup %5473 }
 0xb42   :  { %v2596_v21 = vadd.f32 1.0, %v5474_v9  ;;  %v5476_v61 = vpop.eup %5475  ;;  %v2039_v9 = vadd.f32 %v6857_v41, %v6929_v37 }
 0xb43   :  { %v2603_v45 = vadd.f32 1.0, %v5476_v61 }
 0xb44   :  { %5477 = vrcp.f32 %v2596_v21 }
 0xb45   :  { %5479 = vrcp.f32 %v2603_v45 }
 0xb4e   :  { %v5478_v11 = vpop.eup %5477 }
 0xb4f   :  { %v2606_v31 = vmul.f32 %v5478_v11, %v2589_v7  ;;  %v5480_v24 = vpop.eup %5479 }
 0xb50   :  { %v2609_v34 = vsub.f32 1.0, %v5480_v24  ;;  %v2611_v30 = vmul.f32 %v5480_v24, %v6979_v23 }
 0xb51   :  { %v2607_v20 = vadd.f32 %v2606_v31, %v2034_v17 }
 0xb53   :  { %5481 = vtanh.f32 %v2607_v20 }
 0xb5d   :  { %v5482_v8 = vpop.eup %5481 }
 0xb5e   :  { %v2610_v42 = vmul.f32 %v5482_v8, %v2609_v34 }
 0xb60   :  { %v7024_v43 = vadd.f32 %v2611_v30, %v2610_v42 }
 0xb62   :  { %2678 = vmatmul.mubr.f32.vlgmr.msra.gmra.mrb[22].mxu0 %v7024_v43  ;;  %3921 = vmatmul.mubr.f32.vlgmr.msra.gmra.mrb[30].mxu1 %v7024_v43 }
 0xb63   :  { %4965 = vmatpush1.bf16.msra.mxu0 %v6636_v49  ;;  %4996 = vmatpush3.bf16.msra.mxu1 %v6754_v55 }
 0xb64   :  { %4967 = vmatprep.subr.bf16.mxu0 %v6646_v50  ;;  %4997 = vmatprep.subr.bf16.mxu1 %v5534_v5 }
 0xb65   :  { %2839 = vmatprep.mubr.f32.mxu0 %v5533_v3  ;;  %3955 = vmatprep.mubr.msk.f32.mxu1 %vm5535_vm0, %v5533_v3 }
 0xb67   :  { %4969 = vmatpush1.bf16.msra.mxu0 %v6654_v60  ;;  %4999 = vmatpush3.bf16.msra.mxu1 %v6782_v46 }
 0xb68   :  { %4971 = vmatprep.subr.bf16.mxu0 %v6664_v6  ;;  %5000 = vmatprep.subr.bf16.mxu1 %v5534_v5 }
 0xb6b   :  { %4973 = vmatpush1.bf16.msra.mxu0 %v6672_v16  ;;  %5002 = vmatpush3.bf16.msra.mxu1 %v6797_v28 }
 0xb6c   :  { %4975 = vmatprep.subr.bf16.mxu0 %v6682_v26  ;;  %5003 = vmatprep.subr.bf16.mxu1 %v5534_v5 }
 0xb6f   :  { %4977 = vmatpush1.bf16.msra.mxu0 %v6690_v36  ;;  %5005 = vmatpush3.bf16.msra.mxu1 %v6803_v47 }
 0xb70   :  { %4979 = vmatprep.subr.bf16.mxu0 %v6700_v48  ;;  %5006 = vmatprep.subr.bf16.mxu1 %v5534_v5 }
 0xb73   :  { %4981 = vmatpush1.bf16.msra.mxu0 %v6708_v62  ;;  %5008 = vmatpush3.bf16.msra.mxu1 %v6813_v63 }
 0xb74   :  { %4983 = vmatprep.subr.bf16.mxu0 %v6718_v14  ;;  %5009 = vmatprep.subr.bf16.mxu1 %v5534_v5 }
 0xb77   :  { %4985 = vmatpush1.bf16.msra.mxu0 %v6726_v27  ;;  %5011 = vmatpush3.bf16.msra.mxu1 %v6823_v13 }
 0xb78   :  { %4987 = vmatprep.subr.bf16.mxu0 %v6736_v52  ;;  %5012 = vmatprep.subr.bf16.mxu1 %v5534_v5 }
 0xb7b   :  { %4989 = vmatpush1.bf16.msra.mxu0 %v6747_v38  ;;  %5014 = vmatpush3.bf16.msra.mxu1 %v6833_v29 }
 0xb7c   :  { %4991 = vmatprep.subr.bf16.mxu0 %v6764_v15  ;;  %5015 = vmatprep.subr.bf16.mxu1 %v5534_v5 }
 0xb7f   :  { %4993 = vmatpush1.bf16.msra.mxu0 %v6772_v39  ;;  %5017 = vmatpush3.bf16.msra.mxu1 %v6843_v44 }
 0xb80   :  { %5019 = vmatprep.subr.bf16.mxu0 %v6628_v1  ;;  %5050 = vmatprep.subr.bf16.mxu1 %v5534_v5 }
 0xc35   :  { %v2679_v53 = vpop.f32.mrb[22].mxu0  ;;  %v2750_v51 = vpop.f32.mrb[30].mxu1 }
 0xc36   :  { %v5255_v12 = vadd.f32 %v6919_v22, %v2679_v53  ;;  %v2681_v10 = vpop.f32.mrb[23].mxu0  ;;  %v3922_v19 = vpop.f32.mrb[31].mxu1  ;;  %v2751_v0 = vadd.f32 %v2750_v51, %v6926_v35 }
 0xc37   :  { %v5257_v57 = vadd.f32 %v6921_v33, %v2681_v10 }
 0xc38   :  { %v3551_v23 = vmul.f32 -1.442695, %v5255_v12 }
 0xc39   :  { %v3552_v40 = vmul.f32 -1.442695, %v5257_v57 }
 0xc3a   :  { %5483 = vpow2.f32 %v3551_v23 }
 0xc3b   :  { %5485 = vpow2.f32 %v3552_v40  ;;  %v2044_v40 = vadd.f32 %v6863_v2, %v6929_v37 }
 0xc44   :  { %v5484_v25 = vpop.eup %5483 }
 0xc45   :  { %v2758_v54 = vadd.f32 1.0, %v5484_v25  ;;  %v5486_v4 = vpop.eup %5485 }
 0xc46   :  { %v2765_v59 = vadd.f32 1.0, %v5486_v4 }
 0xc47   :  { %5487 = vrcp.f32 %v2758_v54 }
 0xc48   :  { %5489 = vrcp.f32 %v2765_v59 }
 0xc51   :  { %v5488_v32 = vpop.eup %5487 }
 0xc52   :  { %v2768_v21 = vmul.f32 %v5488_v32, %v2751_v0  ;;  %v5490_v45 = vpop.eup %5489 }
 0xc53   :  { %v2771_v7 = vsub.f32 1.0, %v5490_v45  ;;  %v2773_v31 = vmul.f32 %v5490_v45, %v7024_v43 }
 0xc54   :  { %v2769_v61 = vadd.f32 %v2768_v21, %v2039_v9 }
 0xc56   :  { %5491 = vtanh.f32 %v2769_v61 }
 0xc60   :  { %v5492_v11 = vpop.eup %5491 }
 0xc61   :  { %v2772_v17 = vmul.f32 %v5492_v11, %v2771_v7 }
 0xc63   :  { %v7069_v20 = vadd.f32 %v2773_v31, %v2772_v17 }
 0xc65   :  { %2840 = vmatmul.mubr.f32.vlgmr.msra.gmra.mrb[24].mxu0 %v7069_v20  ;;  %3956 = vmatmul.mubr.f32.vlgmr.msra.gmra.mrb[32].mxu1 %v7069_v20 }
 0xc66   :  { %5021 = vmatpush1.bf16.msra.mxu0 %v6636_v49  ;;  %5052 = vmatpush3.bf16.msra.mxu1 %v6754_v55 }
 0xc67   :  { %5023 = vmatprep.subr.bf16.mxu0 %v6646_v50  ;;  %5053 = vmatprep.subr.bf16.mxu1 %v5534_v5 }
 0xc68   :  { %3001 = vmatprep.mubr.f32.mxu0 %v5533_v3  ;;  %3990 = vmatprep.mubr.msk.f32.mxu1 %vm5535_vm0, %v5533_v3 }
 0xc6a   :  { %5025 = vmatpush1.bf16.msra.mxu0 %v6654_v60  ;;  %5055 = vmatpush3.bf16.msra.mxu1 %v6782_v46 }
 0xc6b   :  { %5027 = vmatprep.subr.bf16.mxu0 %v6664_v6  ;;  %5056 = vmatprep.subr.bf16.mxu1 %v5534_v5 }
 0xc6e   :  { %5029 = vmatpush1.bf16.msra.mxu0 %v6672_v16  ;;  %5058 = vmatpush3.bf16.msra.mxu1 %v6797_v28 }
 0xc6f   :  { %5031 = vmatprep.subr.bf16.mxu0 %v6682_v26  ;;  %5059 = vmatprep.subr.bf16.mxu1 %v5534_v5 }
 0xc72   :  { %5033 = vmatpush1.bf16.msra.mxu0 %v6690_v36  ;;  %5061 = vmatpush3.bf16.msra.mxu1 %v6803_v47 }
 0xc73   :  { %5035 = vmatprep.subr.bf16.mxu0 %v6700_v48  ;;  %5062 = vmatprep.subr.bf16.mxu1 %v5534_v5 }
 0xc76   :  { %5037 = vmatpush1.bf16.msra.mxu0 %v6708_v62  ;;  %5064 = vmatpush3.bf16.msra.mxu1 %v6813_v63 }
 0xc77   :  { %5039 = vmatprep.subr.bf16.mxu0 %v6718_v14  ;;  %5065 = vmatprep.subr.bf16.mxu1 %v5534_v5 }
 0xc7a   :  { %5041 = vmatpush1.bf16.msra.mxu0 %v6726_v27  ;;  %5067 = vmatpush3.bf16.msra.mxu1 %v6823_v13 }
 0xc7b   :  { %5043 = vmatprep.subr.bf16.mxu0 %v6736_v52  ;;  %5068 = vmatprep.subr.bf16.mxu1 %v5534_v5 }
 0xc7e   :  { %5045 = vmatpush1.bf16.msra.mxu0 %v6747_v38  ;;  %5070 = vmatpush3.bf16.msra.mxu1 %v6833_v29 }
 0xc7f   :  { %5047 = vmatprep.subr.bf16.mxu0 %v6764_v15  ;;  %5071 = vmatprep.subr.bf16.mxu1 %v5534_v5 }
 0xc82   :  { %5049 = vmatpush1.bf16.msra.mxu0 %v6772_v39  ;;  %5073 = vmatpush3.bf16.msra.mxu1 %v6843_v44 }
 0xc83   :  { %5075 = vmatprep.subr.bf16.mxu0 %v6628_v1  ;;  %5106 = vmatprep.subr.bf16.mxu1 %v5534_v5 }
 0xd38   :  { %v2841_v41 = vpop.f32.mrb[24].mxu0  ;;  %v2912_v24 = vpop.f32.mrb[32].mxu1 }
 0xd39   :  { %v5259_v34 = vadd.f32 %v6919_v22, %v2841_v41  ;;  %v2843_v8 = vpop.f32.mrb[25].mxu0  ;;  %v3957_v42 = vpop.f32.mrb[33].mxu1  ;;  %v2913_v23 = vadd.f32 %v2912_v24, %v6926_v35 }
 0xd3a   :  { %v5261_v43 = vadd.f32 %v6921_v33, %v2843_v8 }
 0xd3b   :  { %v3553_v30 = vmul.f32 -1.442695, %v5259_v34 }
 0xd3c   :  { %v3554_v53 = vmul.f32 -1.442695, %v5261_v43 }
 0xd3d   :  { %5493 = vpow2.f32 %v3553_v30  ;;  %v2049_v30 = vadd.f32 %v6861_v56, %v6929_v37  ;;  %v3423_v56 = vld [vmem:[%s7279_s8] sm:$0xff] }
 0xd3e   :  { %5495 = vpow2.f32 %v3554_v53 }
 0xd47   :  { %v5494_v51 = vpop.eup %5493 }
 0xd48   :  { %v2920_v12 = vadd.f32 1.0, %v5494_v51  ;;  %v5496_v10 = vpop.eup %5495 }
 0xd49   :  { %v2927_v19 = vadd.f32 1.0, %v5496_v10 }
 0xd4a   :  { %5497 = vrcp.f32 %v2920_v12 }
 0xd4b   :  { %5499 = vrcp.f32 %v2927_v19 }
 0xd54   :  { %v5498_v57 = vpop.eup %5497 }
 0xd55   :  { %v2930_v25 = vmul.f32 %v5498_v57, %v2913_v23  ;;  %v5500_v4 = vpop.eup %5499 }
 0xd56   :  { %v2933_v59 = vsub.f32 1.0, %v5500_v4  ;;  %v2935_v9 = vmul.f32 %v5500_v4, %v7069_v20  ;;  %v3427_v4 = vld [vmem:[%s7279_s8 + $0x20] sm:$0xff] }
 0xd57   :  { %v2931_v54 = vadd.f32 %v2930_v25, %v2044_v40  ;;  %v3425_v25 = vld [vmem:[%s7279_s8 + $0x10] sm:$0xff] }
 0xd59   :  { %5501 = vtanh.f32 %v2931_v54 }
 0xd63   :  { %v5502_v0 = vpop.eup %5501 }
 0xd64   :  { %v2934_v32 = vmul.f32 %v5502_v0, %v2933_v59  ;;  %v3428_v59 = vld [vmem:[%s7279_s8 + $0x28] sm:$0xff] }
 0xd65   :  { %v5193_v0 = vpack.c.bf16 %v3428_v59, %v3427_v4 }
 0xd66   :  { %v7114_v21 = vadd.f32 %v2935_v9, %v2934_v32  ;;  %v3429_v32 = vld [vmem:[%s7279_s8 + $0x30] sm:$0xff]  ;;  %v3430_v9 = vld [vmem:[%s7279_s8 + $0x38] sm:$0xff] }
 0xd68   :  { %3002 = vmatmul.mubr.f32.vlgmr.msra.gmra.mrb[26].mxu0 %v7114_v21  ;;  %3991 = vmatmul.mubr.f32.vlgmr.msra.gmra.mrb[34].mxu1 %v7114_v21 }
 0xd69   :  { %5077 = vmatpush1.bf16.msra.mxu0 %v6636_v49  ;;  %5108 = vmatpush3.bf16.msra.mxu1 %v6754_v55 }
 0xd6a   :  { %5079 = vmatprep.subr.bf16.mxu0 %v6646_v50  ;;  %5109 = vmatprep.subr.bf16.mxu1 %v5534_v5 }
 0xd6b   :  { %3163 = vmatprep.mubr.f32.mxu0 %v5533_v3  ;;  %4025 = vmatprep.mubr.msk.f32.mxu1 %vm5535_vm0, %v5533_v3 }
 0xd6d   :  { %5081 = vmatpush1.bf16.msra.mxu0 %v6654_v60  ;;  %5111 = vmatpush3.bf16.msra.mxu1 %v6782_v46 }
 0xd6e   :  { %5083 = vmatprep.subr.bf16.mxu0 %v6664_v6  ;;  %5112 = vmatprep.subr.bf16.mxu1 %v5534_v5 }
 0xd71   :  { %5085 = vmatpush1.bf16.msra.mxu0 %v6672_v16  ;;  %5114 = vmatpush3.bf16.msra.mxu1 %v6797_v28 }
 0xd72   :  { %5087 = vmatprep.subr.bf16.mxu0 %v6682_v26  ;;  %5115 = vmatprep.subr.bf16.mxu1 %v5534_v5 }
 0xd75   :  { %5089 = vmatpush1.bf16.msra.mxu0 %v6690_v36  ;;  %5117 = vmatpush3.bf16.msra.mxu1 %v6803_v47 }
 0xd76   :  { %5091 = vmatprep.subr.bf16.mxu0 %v6700_v48  ;;  %5118 = vmatprep.subr.bf16.mxu1 %v5534_v5 }
 0xd79   :  { %5093 = vmatpush1.bf16.msra.mxu0 %v6708_v62  ;;  %5120 = vmatpush3.bf16.msra.mxu1 %v6813_v63 }
 0xd7a   :  { %5095 = vmatprep.subr.bf16.mxu0 %v6718_v14  ;;  %5121 = vmatprep.subr.bf16.mxu1 %v5534_v5 }
 0xd7d   :  { %5097 = vmatpush1.bf16.msra.mxu0 %v6726_v27  ;;  %5123 = vmatpush3.bf16.msra.mxu1 %v6823_v13 }
 0xd7e   :  { %5099 = vmatprep.subr.bf16.mxu0 %v6736_v52  ;;  %5124 = vmatprep.subr.bf16.mxu1 %v5534_v5 }
 0xd81   :  { %5101 = vmatpush1.bf16.msra.mxu0 %v6747_v38  ;;  %5126 = vmatpush3.bf16.msra.mxu1 %v6833_v29 }
 0xd82   :  { %5103 = vmatprep.subr.bf16.mxu0 %v6764_v15  ;;  %5127 = vmatprep.subr.bf16.mxu1 %v5534_v5 }
 0xd85   :  { %5105 = vmatpush1.bf16.msra.mxu0 %v6772_v39  ;;  %5129 = vmatpush3.bf16.msra.mxu1 %v6843_v44 }
 0xd86   :  { %5131 = vmatprep.subr.bf16.mxu0 %v6628_v1  ;;  %5162 = vmatprep.subr.bf16.mxu1 %v5534_v5 }
 0xe3b   :  { %v3003_v2 = vpop.f32.mrb[26].mxu0  ;;  %v3074_v61 = vpop.f32.mrb[34].mxu1 }
 0xe3c   :  { %v5263_v45 = vadd.f32 %v6919_v22, %v3003_v2  ;;  %v3005_v7 = vpop.f32.mrb[27].mxu0  ;;  %v3992_v11 = vpop.f32.mrb[35].mxu1  ;;  %v3075_v1 = vadd.f32 %v3074_v61, %v6926_v35  ;;  %v3431_v2 = vld [vmem:[%s7279_s8 + $0x40] sm:$0xff]  ;;  %v3432_v61 = vld [vmem:[%s7279_s8 + $0x48] sm:$0xff] }
 0xe3d   :  { %v5265_v31 = vadd.f32 %v6921_v33, %v3005_v7  ;;  %v3433_v7 = vld [vmem:[%s7279_s8 + $0x50] sm:$0xff]  ;;  %v3434_v11 = vld [vmem:[%s7279_s8 + $0x58] sm:$0xff] }
 0xe3e   :  { %v3555_v17 = vmul.f32 -1.442695, %v5263_v45  ;;  %v5199_v45 = vpack.c.bf16 %v3432_v61, %v3431_v2 }
 0xe3f   :  { %v3556_v20 = vmul.f32 -1.442695, %v5265_v31  ;;  %v3435_v31 = vld [vmem:[%s7279_s8 + $0x60] sm:$0xff] }
 0xe40   :  { %5503 = vpow2.f32 %v3555_v17  ;;  %v5202_v17 = vpack.c.bf16 %v3434_v11, %v3433_v7 }
 0xe41   :  { %5505 = vpow2.f32 %v3556_v20  ;;  %v3436_v20 = vld [vmem:[%s7279_s8 + $0x68] sm:$0xff] }
 0xe4a   :  { %v5504_v41 = vpop.eup %5503 }
 0xe4b   :  { %v3082_v24 = vadd.f32 1.0, %v5504_v41  ;;  %v5506_v34 = vpop.eup %5505  ;;  %v5205_v41 = vpack.c.bf16 %v3436_v20, %v3435_v31 }
 0xe4c   :  { %v3089_v8 = vadd.f32 1.0, %v5506_v34  ;;  %v3438_v34 = vld [vmem:[%s7279_s8 + $0x78] sm:$0xff] }
 0xe4d   :  { %5507 = vrcp.f32 %v3082_v24  ;;  %v3437_v24 = vld [vmem:[%s7279_s8 + $0x70] sm:$0xff] }
 0xe4e   :  { %5509 = vrcp.f32 %v3089_v8  ;;  %v5208_v8 = vpack.c.bf16 %v3438_v34, %v3437_v24 }
 0xe57   :  { %v5508_v42 = vpop.eup %5507 }
 0xe58   :  { %v3092_v43 = vmul.f32 %v5508_v42, %v3075_v1  ;;  %v5510_v51 = vpop.eup %5509 }
 0xe59   :  { %v3095_v12 = vsub.f32 1.0, %v5510_v51  ;;  %v3097_v23 = vmul.f32 %v5510_v51, %v7114_v21  ;;  %v5196_v21 = vpack.c.bf16 %v3430_v9, %v3429_v32 }
 0xe5a   :  { %v3093_v53 = vadd.f32 %v3092_v43, %v2049_v30 }
 0xe5c   :  { %5511 = vtanh.f32 %v3093_v53 }
 0xe66   :  { %v5512_v10 = vpop.eup %5511 }
 0xe67   :  { %v3096_v19 = vmul.f32 %v5512_v10, %v3095_v12 }
 0xe69   :  { %v3098_v57 = vadd.f32 %v3097_v23, %v3096_v19 }
 0xe6b   :  { %3164 = vmatmul.mubr.f32.vlgmr.msra.gmra.mrb[28].mxu0 %v3098_v57  ;;  %4026 = vmatmul.mubr.f32.vlgmr.msra.gmra.mrb[36].mxu1 %v3098_v57 }
 0xe6c   :  { %5133 = vmatpush1.bf16.msra.mxu0 %v6636_v49  ;;  %5164 = vmatpush3.bf16.msra.mxu1 %v6754_v55 }
 0xe6d   :  { %5135 = vmatprep.subr.bf16.mxu0 %v6646_v50  ;;  %5165 = vmatprep.subr.bf16.mxu1 %v5534_v5 }
 0xe6e   :  { %3325 = vmatprep.mubr.f32.mxu0 %v5533_v3  ;;  %4060 = vmatprep.mubr.msk.f32.mxu1 %vm5535_vm0, %v5533_v3 }
 0xe70   :  { %5137 = vmatpush1.bf16.msra.mxu0 %v6654_v60  ;;  %5167 = vmatpush3.bf16.msra.mxu1 %v6782_v46 }
 0xe71   :  { %5139 = vmatprep.subr.bf16.mxu0 %v6664_v6  ;;  %5168 = vmatprep.subr.bf16.mxu1 %v5534_v5 }
 0xe74   :  { %5141 = vmatpush1.bf16.msra.mxu0 %v6672_v16  ;;  %5170 = vmatpush3.bf16.msra.mxu1 %v6797_v28 }
 0xe75   :  { %5143 = vmatprep.subr.bf16.mxu0 %v6682_v26  ;;  %5171 = vmatprep.subr.bf16.mxu1 %v5534_v5 }
 0xe78   :  { %5145 = vmatpush1.bf16.msra.mxu0 %v6690_v36  ;;  %5173 = vmatpush3.bf16.msra.mxu1 %v6803_v47 }
 0xe79   :  { %5147 = vmatprep.subr.bf16.mxu0 %v6700_v48  ;;  %5174 = vmatprep.subr.bf16.mxu1 %v5534_v5 }
 0xe7c   :  { %5149 = vmatpush1.bf16.msra.mxu0 %v6708_v62  ;;  %5176 = vmatpush3.bf16.msra.mxu1 %v6813_v63 }
 0xe7d   :  { %5151 = vmatprep.subr.bf16.mxu0 %v6718_v14  ;;  %5177 = vmatprep.subr.bf16.mxu1 %v5534_v5 }
 0xe80   :  { %5153 = vmatpush1.bf16.msra.mxu0 %v6726_v27  ;;  %5179 = vmatpush3.bf16.msra.mxu1 %v6823_v13 }
 0xe81   :  { %5155 = vmatprep.subr.bf16.mxu0 %v6736_v52  ;;  %5180 = vmatprep.subr.bf16.mxu1 %v5534_v5 }
 0xe84   :  { %5157 = vmatpush1.bf16.msra.mxu0 %v6747_v38  ;;  %5182 = vmatpush3.bf16.msra.mxu1 %v6833_v29 }
 0xe85   :  { %5159 = vmatprep.subr.bf16.mxu0 %v6764_v15  ;;  %5183 = vmatprep.subr.bf16.mxu1 %v5534_v5  ;;  %v2054_v15 = vadd.f32 %v6917_v18, %v6929_v37  ;;  %v3424_v18 = vld [vmem:[%s7279_s8 + $0x8] sm:$0xff] }
 0xe86   :  { %v5187_v40 = vpack.c.bf16 %v3424_v18, %v3423_v56 }
 0xe88   :  { %5161 = vmatpush1.bf16.msra.mxu0 %v6772_v39  ;;  %5185 = vmatpush3.bf16.msra.mxu1 %v6843_v44 }
 0xe89   :  { %5186 = vmatprep.subr.bf16.mxu0 %v5534_v5 }
 0xf3e   :  { %v3165_v49 = vpop.f32.mrb[28].mxu0  ;;  %v3236_v50 = vpop.f32.mrb[36].mxu1 }
 0xf3f   :  { %v5267_v60 = vadd.f32 %v6919_v22, %v3165_v49  ;;  %v3167_v6 = vpop.f32.mrb[29].mxu0  ;;  %v4027_v16 = vpop.f32.mrb[37].mxu1  ;;  %v3237_v38 = vadd.f32 %v3236_v50, %v6926_v35 }
 0xf40   :  { %v5269_v36 = vadd.f32 %v6921_v33, %v3167_v6 }
 0xf41   :  { %v3557_v26 = vmul.f32 -1.442695, %v5267_v60  ;;  %v2059_v60 = vadd.f32 %v6913_v58, %v6929_v37 }
 0xf42   :  { %v3558_v48 = vmul.f32 -1.442695, %v5269_v36 }
 0xf43   :  { %5513 = vpow2.f32 %v3557_v26 }
 0xf44   :  { %5515 = vpow2.f32 %v3558_v48 }
 0xf4d   :  { %v5514_v62 = vpop.eup %5513 }
 0xf4e   :  { %v3244_v14 = vadd.f32 1.0, %v5514_v62  ;;  %v5516_v27 = vpop.eup %5515 }
 0xf4f   :  { %v3251_v52 = vadd.f32 1.0, %v5516_v27 }
 0xf50   :  { %5517 = vrcp.f32 %v3244_v14 }
 0xf51   :  { %5519 = vrcp.f32 %v3251_v52 }
 0xf5a   :  { %v5518_v55 = vpop.eup %5517 }
 0xf5b   :  { %v3254_v39 = vmul.f32 %v5518_v55, %v3237_v38  ;;  %v5520_v28 = vpop.eup %5519 }
 0xf5c   :  { %v3257_v47 = vsub.f32 1.0, %v5520_v28  ;;  %v3259_v29 = vmul.f32 %v5520_v28, %v3098_v57 }
 0xf5d   :  { %v3255_v46 = vadd.f32 %v3254_v39, %v2054_v15 }
 0xf5f   :  { %5521 = vtanh.f32 %v3255_v46 }
 0xf69   :  { %v5522_v63 = vpop.eup %5521 }
 0xf6a   :  { %v3258_v13 = vmul.f32 %v5522_v63, %v3257_v47 }
 0xf6c   :  { %v7198_v44 = vadd.f32 %v3259_v29, %v3258_v13 }
 0xf6e   :  { %3326 = vmatmul.mubr.f32.vlgmr.msra.gmra.mrb[30].mxu0 %v7198_v44  ;;  %4061 = vmatmul.mubr.f32.vlgmr.msra.gmra.mrb[38].mxu1 %v7198_v44 }
 0xf6f   :  { %4095 = vmatprep.mubr.msk.f32.mxu0 %vm5535_vm0, %v5533_v3  ;;  %5188 = vmatpush3.bf16.msra.mxu0 %v5187_v40  ;;  %v3426_v3 = vld [vmem:[%s7279_s8 + $0x18] sm:$0xff] }
 0xf70   :  { %5189 = vmatprep.subr.bf16.mxu0 %v5534_v5  ;;  %v5190_v54 = vpack.c.bf16 %v3426_v3, %v3425_v25 }
 0xf73   :  { %5191 = vmatpush3.bf16.msra.mxu0 %v5190_v54 }
 0xf74   :  { %5192 = vmatprep.subr.bf16.mxu0 %v5534_v5 }
 0xf77   :  { %5194 = vmatpush3.bf16.msra.mxu0 %v5193_v0 }
 0xf78   :  { %5195 = vmatprep.subr.bf16.mxu0 %v5534_v5 }
 0xf7b   :  { %5197 = vmatpush3.bf16.msra.mxu0 %v5196_v21 }
 0xf7c   :  { %5198 = vmatprep.subr.bf16.mxu0 %v5534_v5 }
 0xf7f   :  { %5200 = vmatpush3.bf16.msra.mxu0 %v5199_v45 }
 0xf80   :  { %5201 = vmatprep.subr.bf16.mxu0 %v5534_v5 }
 0xf83   :  { %5203 = vmatpush3.bf16.msra.mxu0 %v5202_v17 }
 0xf84   :  { %5204 = vmatprep.subr.bf16.mxu0 %v5534_v5 }
 0xf87   :  { %5206 = vmatpush3.bf16.msra.mxu0 %v5205_v41 }
 0xf88   :  { %5207 = vmatprep.subr.bf16.mxu0 %v5534_v5 }
 0xf8b   :  { %5209 = vmatpush3.bf16.msra.mxu0 %v5208_v8 }
0x1041   :  { %v3327_v1 = vpop.f32.mrb[30].mxu0  ;;  %v3398_v42 = vpop.f32.mrb[38].mxu1 }
0x1042   :  { %v5271_v30 = vadd.f32 %v6919_v22, %v3327_v1  ;;  %v3329_v43 = vpop.f32.mrb[31].mxu0  ;;  %v4062_v53 = vpop.f32.mrb[39].mxu1  ;;  %v3399_v5 = vadd.f32 %v3398_v42, %v6926_v35  ;;  %v3561_v35 = vld [vmem:[%s7280_s9] ss:$0 sm:$0xff] }
0x1043   :  { %v5273_v12 = vadd.f32 %v6921_v33, %v3329_v43 }
0x1044   :  { %v3559_v51 = vmul.f32 -1.442695, %v5271_v30 }
0x1045   :  { %v3560_v10 = vmul.f32 -1.442695, %v5273_v12 }
0x1046   :  { %5523 = vpow2.f32 %v3559_v51 }
0x1047   :  { %5525 = vpow2.f32 %v3560_v10 }
0x1050   :  { %v5524_v19 = vpop.eup %5523 }
0x1051   :  { %v3406_v23 = vadd.f32 1.0, %v5524_v19  ;;  %v5526_v57 = vpop.eup %5525 }
0x1052   :  { %v3413_v49 = vadd.f32 1.0, %v5526_v57 }
0x1053   :  { %5527 = vrcp.f32 %v3406_v23 }
0x1054   :  { %5529 = vrcp.f32 %v3413_v49 }
0x105d   :  { %v5528_v50 = vpop.eup %5527 }
0x105e   :  { %v3416_v22 = vmul.f32 %v5528_v50, %v3399_v5  ;;  %v5530_v16 = vpop.eup %5529 }
0x105f   :  { %v3419_v33 = vsub.f32 1.0, %v5530_v16  ;;  %v3421_v48 = vmul.f32 %v5530_v16, %v7198_v44 }
0x1060   :  { %v3417_v6 = vadd.f32 %v3416_v22, %v2059_v60 }
0x1062   :  { %5531 = vtanh.f32 %v3417_v6 }
0x106c   :  { %v5532_v26 = vpop.eup %5531 }
0x106d   :  { %v3420_v36 = vmul.f32 %v5532_v26, %v3419_v33 }
0x106f   :  { %v3422_v62 = vadd.f32 %v3421_v48, %v3420_v36 }
0x1071   :  { %4096 = vmatmul.mubr.f32.vlgmr.msra.gmra.mrb[32].mxu0 %v3422_v62 }
0x1144   :  { %v3512_v14 = vpop.f32.mrb[32].mxu0 }
0x1145   :  { %v3513_v27 = vadd.f32 %v3561_v35, %v3512_v14  ;;  %v4097_v52 = vpop.f32.mrb[33].mxu0 }
0x1147   :  { %3516 = vst [vmem:[%s7281_s10] sm:$0xff] %v3513_v27 }

</bundles_post_ra>
